<compile_context>
chip_gen: v7x
topology: tpu7x:2x2x1
jax: 0.10.0
libtpu: 0.0.40
codegen_flags: <defaults>
</compile_context>

<pallas_src>
import functools

import jax
import jax.numpy as jnp
from jax.experimental import pallas as pl
from jax.experimental.pallas import tpu as pltpu


def _round_up(v, m):
    return ((v + m - 1) // m) * m


def gnn_kernel(x0_ref, a_ref, lng_ref, lnb_ref, wc_ref, bc_ref, w2_ref, b2_ref,
               o_ref, x_sc, t_sc, *rest, h_true, eps, cache_a, tm, n_pad):
    f32 = jnp.float32
    bf16 = jnp.bfloat16
    a_cache = rest[0] if cache_a else None

    l = pl.program_id(0)                  # 0 = init pass, 1..L = conv layers
    j = pl.program_id(1)                  # node-row block
    last_l = pl.num_programs(0) - 1       # == num_layers
    row = pl.multiple_of(j * tm, tm)

    # t (= relu(LN(x)) @ Wc) ping-pongs between the two halves of t_sc:
    # written for conv layer l during grid pass l, read during grid pass l+1.
    ws = l & 1
    rs = 1 - ws
    w_off = pl.multiple_of(ws * n_pad + row, tm)
    r_off = pl.multiple_of(rs * n_pad, n_pad)

    def ln_relu_wc(xv):
        # Fused single-pass LayerNorm statistics over the TRUE hidden width.
        # Invariant: padded hidden lanes of xv are exactly zero (zero-padded
        # weights/biases keep them zero through every layer), so lane sums are exact.
        inv_h = 1.0 / h_true
        s1 = jnp.sum(xv, axis=-1, keepdims=True)
        s2 = jnp.sum(xv * xv, axis=-1, keepdims=True)
        mean = s1 * inv_h
        var = jnp.maximum(s2 * inv_h - mean * mean, 0.0)
        h = (xv - mean) * jax.lax.rsqrt(var + eps)
        h = h * lng_ref[0] + lnb_ref[0]        # padded lanes: gamma = beta = 0 -> 0
        h = jnp.maximum(h, 0.0)                # ReLU; dropout = identity (eval mode)
        return jnp.dot(h.astype(bf16), wc_ref[0],
                       preferred_element_type=f32).astype(bf16)

    # ---- init pass (l == 0): load x0 rows, seed JK logits, t for conv layer 0 ----
    @pl.when(l == 0)
    def _():
        x0 = x0_ref[...]                                            # (tm, h_pad) f32
        x_sc[pl.ds(row, tm), :] = x0
        o_ref[pl.ds(row, tm), :] = jnp.dot(x0.astype(bf16), w2_ref[...],
                                           preferred_element_type=f32)
        t_sc[pl.ds(row, tm), :] = ln_relu_wc(x0)                    # slot 0 (ws == 0)
        if cache_a:
            a_cache[pl.ds(row, tm), :] = a_ref[...]                 # cache A in VMEM

    # ---- conv passes (1 <= l <= L): aggregate, residual, JK logits, next-layer t ----
    @pl.when(l > 0)
    def _():
        if cache_a:
            a_blk = a_cache[pl.ds(row, tm), :]                      # A from VMEM cache
        else:
            a_blk = a_ref[...]                                      # streamed A block
        t_full = t_sc[pl.ds(r_off, n_pad), :]                       # full t of prev pass
        agg = jnp.dot(a_blk, t_full, preferred_element_type=f32)
        xn = agg + bc_ref[0] + x_sc[pl.ds(row, tm), :]              # GCN bias + residual
        x_sc[pl.ds(row, tm), :] = xn
        o_ref[pl.ds(row, tm), :] += jnp.dot(xn.astype(bf16), w2_ref[...],
                                            preferred_element_type=f32)

        @pl.when(l < last_l)
        def _():
            t_sc[pl.ds(w_off, tm), :] = ln_relu_wc(xn)              # t for conv layer l

    # ---- epilogue (l == L): bias + log_softmax on the accumulated JK logits ----
    @pl.when(l == last_l)
    def _():
        z = o_ref[pl.ds(row, tm), :] + b2_ref[...]      # padded class columns -> -1e30
        m = jnp.max(z, axis=-1, keepdims=True)
        e = jnp.exp(z - m)
        o_ref[pl.ds(row, tm), :] = z - m - jnp.log(
            jnp.sum(e, axis=-1, keepdims=True))


def gnn_new_forward(x, a_norm, params, *, num_layers):
    f32, bf16 = jnp.float32, jnp.bfloat16
    n, in_c = x.shape
    hidden = params["w1"].shape[1]
    out_c = params["w2"].shape[1]

    h_pad = _round_up(hidden, 128)
    out_pad = _round_up(out_c, 128)
    n_pad = _round_up(n, 256)                 # MXU-friendly row padding

    # ---- lin1 hoisted to plain XLA (drops x / W1 / b1 from the kernel) ----
    x0 = x.astype(f32) @ params["w1"].astype(f32) + params["b1"].astype(f32)
    x0_p = jnp.pad(x0, ((0, n_pad - n), (0, h_pad - hidden)))

    # zero padding keeps padded lanes / rows numerically inert
    a_p = jnp.pad(a_norm, ((0, n_pad - n), (0, n_pad - n))).astype(bf16)
    lng_p = jnp.pad(params["ln_g"], ((0, 0), (0, 0), (0, h_pad - hidden))).astype(f32)
    lnb_p = jnp.pad(params["ln_b"], ((0, 0), (0, 0), (0, h_pad - hidden))).astype(f32)
    wc_p = jnp.pad(params["wc"],
                   ((0, 0), (0, h_pad - hidden), (0, h_pad - hidden))).astype(bf16)
    bc_p = jnp.pad(params["bc"], ((0, 0), (0, 0), (0, h_pad - hidden))).astype(f32)
    w2_p = jnp.pad(params["w2"],
                   ((0, h_pad - hidden), (0, out_pad - out_c))).astype(bf16)
    # padded class columns get a -1e30 bias so they vanish under log_softmax
    b2_p = jnp.concatenate(
        [params["b2"].astype(f32),
         jnp.full((1, out_pad - out_c), -1e30, f32)], axis=1)

    # ---- device VMEM capacity (v5e/v6e: 128 MiB, v7x: 64 MiB) drives all sizing ----
    vmem_cap = 64 * 1024 * 1024               # conservative default (v7x)
    try:
        vmem_cap = int(getattr(pltpu.get_tpu_info(), "vmem_capacity_bytes", vmem_cap))
    except Exception:
        pass
    budget = vmem_cap - (4 << 20)             # headroom for Mosaic internal scratch

    def footprint(tm_, cached):
        b = 2 * tm_ * h_pad * 4                                    # x0 block (dbl-buf)
        b += 2 * tm_ * n_pad * 2                                   # A block (dbl-buf, bf16)
        b += 2 * (2 * h_pad * 4 + h_pad * h_pad * 2 + h_pad * 4)   # LN g/b, Wc, bc
        b += 2 * (h_pad * out_pad * 2 + out_pad * 4)               # W2, b2
        b += 2 * n_pad * out_pad * 4                               # resident output / JK logits
        b += n_pad * h_pad * 4                                     # x_sc (f32)
        b += 2 * n_pad * h_pad * 2                                 # t_sc ping-pong (bf16)
        if cached:
            b += n_pad * n_pad * 2                                 # A VMEM cache (bf16)
        return b

    tm = 256
    if footprint(tm, False) > budget:
        tm = 128
    cache_a = footprint(tm, True) <= budget    # cache A across layers when it fits
    if (not cache_a) and n_pad % 512 == 0 and footprint(512, False) <= budget:
        tm = 512                               # otherwise amortize with bigger row tiles
    n_blk = n_pad // tm

    fp = footprint(tm, cache_a)
    vmem_limit = min(vmem_cap, max(32 << 20, int(fp * 1.25) + (4 << 20)))

    L = num_layers

    def x0_map(l, j):
        # stream x0 row blocks only during the init pass; pin afterwards
        return (jnp.where(l == 0, j, 0), 0)

    if cache_a:
        def a_map(l, j):
            # stream A row blocks exactly once (init pass) into the VMEM cache
            return (jnp.where(l == 0, j, 0), 0)
    else:
        def a_map(l, j):
            # re-stream A row blocks every conv pass; pinned during the init pass
            return (jnp.where(l == 0, 0, j), 0)

    lw_map = lambda l, j: (jnp.minimum(l, L - 1), 0, 0)   # LN/Wc of the NEXT conv layer
    bc_map = lambda l, j: (jnp.maximum(l - 1, 0), 0, 0)   # bc of the CURRENT conv layer
    const2 = lambda l, j: (0, 0)

    scratch = [
        pltpu.VMEM((n_pad, h_pad), f32),          # x_sc: current activations
        pltpu.VMEM((2 * n_pad, h_pad), bf16),     # t_sc: ping-pong pre-aggregation feats
    ]
    if cache_a:
        scratch.append(pltpu.VMEM((n_pad, n_pad), bf16))   # A cached across layers

    flops = int(L * (2 * n_pad * h_pad * h_pad + 2 * n_pad * n_pad * h_pad)
                + (L + 1) * 2 * n_pad * h_pad * out_pad)
    transcendentals = int((L + 1) * n_pad + 2 * n_pad * out_pad)
    a_bytes = n_pad * n_pad * 2 * (1 if cache_a else L)
    bytes_accessed = int(n_pad * h_pad * 4 + a_bytes + n_pad * out_pad * 4
                         + L * (h_pad * h_pad * 2 + 4 * h_pad * 4)
                         + h_pad * out_pad * 2 + out_pad * 4)

    kernel = functools.partial(gnn_kernel, h_true=hidden, eps=1e-5,
                               cache_a=cache_a, tm=tm, n_pad=n_pad)

    out_p = pl.pallas_call(
        kernel,
        out_shape=jax.ShapeDtypeStruct((n_pad, out_pad), f32),
        grid_spec=pltpu.PrefetchScalarGridSpec(
            num_scalar_prefetch=0,
            grid=(L + 1, n_blk),
            in_specs=[
                pl.BlockSpec((tm, h_pad), x0_map),              # x0 = lin1(x) row block
                pl.BlockSpec((tm, n_pad), a_map),               # A_norm row block
                pl.BlockSpec((1, 1, h_pad), lw_map),            # LN gamma (per layer)
                pl.BlockSpec((1, 1, h_pad), lw_map),            # LN beta  (per layer)
                pl.BlockSpec((1, h_pad, h_pad), lw_map),        # Wc       (per layer, bf16)
                pl.BlockSpec((1, 1, h_pad), bc_map),            # bc       (per layer)
                pl.BlockSpec((h_pad, out_pad), const2),         # W2 (bf16, resident)
                pl.BlockSpec((1, out_pad), const2),             # b2
            ],
            out_specs=pl.BlockSpec((n_pad, out_pad), const2),   # resident JK-logit acc
            scratch_shapes=scratch,
        ),
        compiler_params=pltpu.CompilerParams(
            dimension_semantics=("arbitrary", "arbitrary"),
            vmem_limit_bytes=vmem_limit,
        ),
        cost_estimate=pl.CostEstimate(
            flops=flops, transcendentals=transcendentals,
            bytes_accessed=bytes_accessed),
    )(x0_p, a_p, lng_p, lnb_p, wc_p, bc_p, w2_p, b2_p)

    return out_p[:n, :out_c]


def build_gcn_adjacency(edge_index, num_nodes):
    """Dense symmetric-normalized adjacency D^-1/2 (A + I) D^-1/2 (plain-JAX glue)."""
    src, dst = edge_index[0], edge_index[1]
    a = jnp.zeros((num_nodes, num_nodes), jnp.float32)
    a = a.at[dst, src].add(1.0)            # message j -> i lands in row i
    a_hat = a + jnp.eye(num_nodes, dtype=jnp.float32)
    deg = jnp.sum(a_hat, axis=1)
    d_inv_sqrt = jnp.where(deg > 0, 1.0 / jnp.sqrt(deg), 0.0)
    return d_inv_sqrt[:, None] * a_hat * d_inv_sqrt[None, :]


def init_params(key, in_channels, hidden, out_channels, num_layers):
    ks = jax.random.split(key, 6)
    scale = 0.1
    return {
        "w1": scale * jax.random.normal(ks[0], (in_channels, hidden), jnp.float32),
        "b1": scale * jax.random.normal(ks[1], (1, hidden), jnp.float32),
        "ln_g": jnp.ones((num_layers, 1, hidden), jnp.float32),
        "ln_b": jnp.zeros((num_layers, 1, hidden), jnp.float32),
        "wc": scale * jax.random.normal(ks[2], (num_layers, hidden, hidden), jnp.float32),
        "bc": scale * jax.random.normal(ks[3], (num_layers, 1, hidden), jnp.float32),
        "w2": scale * jax.random.normal(ks[4], (hidden, out_channels), jnp.float32),
        "b2": scale * jax.random.normal(ks[5], (1, out_channels), jnp.float32),
    }


def reference_forward(x, a_norm, params, *, num_layers, eps=1e-5):
    x = x @ params["w1"] + params["b1"]
    xf = x
    for l in range(num_layers):
        mean = jnp.mean(x, axis=-1, keepdims=True)
        var = jnp.mean((x - mean) ** 2, axis=-1, keepdims=True)
        h = (x - mean) / jnp.sqrt(var + eps)
        h = h * params["ln_g"][l] + params["ln_b"][l]
        h = jnp.maximum(h, 0.0)
        t = h @ params["wc"][l]
        xn = a_norm @ t + params["bc"][l] + x
        x = xn
        xf = xf + xn
    z = xf @ params["w2"] + params["b2"]
    return jax.nn.log_softmax(z, axis=-1)


if __name__ == "__main__":
    N, IN_C, HID, OUT_C, L = 16, 8, 32, 4, 3

    key = jax.random.PRNGKey(0)
    k_x, k_p = jax.random.split(key)

    x = jax.random.normal(k_x, (N, IN_C), jnp.float32)
    # deterministic symmetric ring graph edge_index [2, 2N]
    idx = jnp.arange(N)
    src = jnp.concatenate([idx, (idx + 1) % N])
    dst = jnp.concatenate([(idx + 1) % N, idx])
    edge_index = jnp.stack([src, dst], axis=0)

    a_norm = build_gcn_adjacency(edge_index, N)
    params = init_params(k_p, IN_C, HID, OUT_C, L)

    out = gnn_new_forward(x, a_norm, params, num_layers=L)
    out = jax.block_until_ready(out)

    ref = reference_forward(x, a_norm, params, num_layers=L)
    assert out.shape == (N, OUT_C)
    # bf16 MXU inputs with f32 accumulation -> slightly looser tolerance vs f32 ref
    assert jnp.allclose(out, ref, atol=5e-2, rtol=5e-2), "mismatch vs JAX reference"

    print("KERNEL_OK")
</pallas_src>

<mosaic_0001>
module attributes {stable_mosaic.version = 11 : i64} {
  func.func @gnn_kernel(%arg0: i32, %arg1: i32, %arg2: memref<256x128xf32, #tpu.memory_space<vmem>>, %arg3: memref<256x256xbf16, #tpu.memory_space<vmem>>, %arg4: memref<1x1x128xf32, #tpu.memory_space<vmem>>, %arg5: memref<1x1x128xf32, #tpu.memory_space<vmem>>, %arg6: memref<1x128x128xbf16, #tpu.memory_space<vmem>>, %arg7: memref<1x1x128xf32, #tpu.memory_space<vmem>>, %arg8: memref<128x128xbf16, #tpu.memory_space<vmem>>, %arg9: memref<1x128xf32, #tpu.memory_space<vmem>>, %arg10: memref<256x128xf32, #tpu.memory_space<vmem>>, %arg11: memref<256x128xf32, #tpu.memory_space<vmem>>, %arg12: memref<512x128xbf16, #tpu.memory_space<vmem>>, %arg13: memref<256x256xbf16, #tpu.memory_space<vmem>>) attributes {dimension_semantics = [#tpu.dimension_semantics<arbitrary>, #tpu.dimension_semantics<arbitrary>], iteration_bounds = array<i64: 4, 1>, scalar_prefetch = 0 : i64, scratch_operands = 3 : i64, tpu.core_type = #tpu.core_type<tc>, window_params = [{transform_indices = @transform_0, window_bounds = array<i64: 256, 128>}, {transform_indices = @transform_1, window_bounds = array<i64: 256, 256>}, {transform_indices = @transform_2, window_bounds = array<i64: 1, 1, 128>}, {transform_indices = @transform_3, window_bounds = array<i64: 1, 1, 128>}, {transform_indices = @transform_4, window_bounds = array<i64: 1, 128, 128>}, {transform_indices = @transform_5, window_bounds = array<i64: 1, 1, 128>}, {pipeline_mode = #tpu.pipeline_mode<synchronous>, transform_indices = @transform_6, window_bounds = array<i64: 128, 128>}, {pipeline_mode = #tpu.pipeline_mode<synchronous>, transform_indices = @transform_7, window_bounds = array<i64: 1, 128>}, {pipeline_mode = #tpu.pipeline_mode<synchronous>, transform_indices = @transform_8, window_bounds = array<i64: 256, 128>}]} {
    %c256_i32 = arith.constant 256 : i32
    %0 = arith.muli %arg1, %c256_i32 : i32
    %1 = tpu.assume_multiple %0, 256 : i32
    %c1_i32 = arith.constant 1 : i32
    %2 = arith.andi %arg0, %c1_i32 : i32
    %c1_i32_0 = arith.constant 1 : i32
    %3 = arith.subi %c1_i32_0, %2 : i32
    %c256_i32_1 = arith.constant 256 : i32
    %4 = arith.muli %2, %c256_i32_1 : i32
    %5 = arith.addi %4, %1 : i32
    %6 = tpu.assume_multiple %5, 256 : i32
    %c256_i32_2 = arith.constant 256 : i32
    %7 = arith.muli %3, %c256_i32_2 : i32
    %8 = tpu.assume_multiple %7, 256 : i32
    %c0_i32 = arith.constant 0 : i32
    %9 = arith.cmpi eq, %arg0, %c0_i32 : i32
    %10 = arith.extui %9 : i1 to i32
    %c0_i32_3 = arith.constant 0 : i32
    %11 = arith.cmpi ne, %10, %c0_i32_3 : i32
    scf.if %11 {
      %c0 = arith.constant 0 : index
      %c0_7 = arith.constant 0 : index
      %18 = vector.load %arg2[%c0, %c0_7] : memref<256x128xf32, #tpu.memory_space<vmem>>, vector<256x128xf32>
      %19 = arith.index_cast %1 : i32 to index
      %c0_8 = arith.constant 0 : index
      %20 = vector.load %arg11[%19, %c0_8] : memref<256x128xf32, #tpu.memory_space<vmem>>, vector<256x128xf32>
      tpu.vector_store %arg11[%19, %c0_8], %18 {strides = array<i32>} : memref<256x128xf32, #tpu.memory_space<vmem>>, vector<256x128xf32>,
      %21 = arith.truncf %18 : vector<256x128xf32> to vector<256x128xbf16>
      %c0_9 = arith.constant 0 : index
      %c0_10 = arith.constant 0 : index
      %22 = vector.load %arg8[%c0_9, %c0_10] : memref<128x128xbf16, #tpu.memory_space<vmem>>, vector<128x128xbf16>
      %cst = arith.constant dense<0.000000e+00> : vector<256x128xf32>
      %23 = tpu.matmul %21, %22, %cst {dimension_numbers = #tpu.dot_dimension_numbers<[1], [0], [0], [1], [0, 0, 1, 1], [], []>} : vector<256x128xbf16>, vector<128x128xbf16>, vector<256x128xf32> -> vector<256x128xf32>
      %24 = arith.index_cast %1 : i32 to index
      %c0_11 = arith.constant 0 : index
      %25 = vector.load %arg10[%24, %c0_11] : memref<256x128xf32, #tpu.memory_space<vmem>>, vector<256x128xf32>
      tpu.vector_store %arg10[%24, %c0_11], %23 {strides = array<i32>} : memref<256x128xf32, #tpu.memory_space<vmem>>, vector<256x128xf32>,
      %cst_12 = arith.constant dense<0.000000e+00> : vector<256xf32>
      %26 = vector.multi_reduction <add>, %18, %cst_12 [1] : vector<256x128xf32> to vector<256xf32>
      %27 = vector.shape_cast %26 : vector<256xf32> to vector<256x1xf32>
      %28 = arith.mulf %18, %18 : vector<256x128xf32>
      %cst_13 = arith.constant dense<0.000000e+00> : vector<256xf32>
      %29 = vector.multi_reduction <add>, %28, %cst_13 [1] : vector<256x128xf32> to vector<256xf32>
      %30 = vector.shape_cast %29 : vector<256xf32> to vector<256x1xf32>
      %cst_14 = arith.constant 3.125000e-02 : f32
      %31 = vector.broadcast %cst_14 : f32 to vector<256x1xf32>
      %32 = arith.mulf %27, %31 : vector<256x1xf32>
      %cst_15 = arith.constant 3.125000e-02 : f32
      %33 = vector.broadcast %cst_15 : f32 to vector<256x1xf32>
      %34 = arith.mulf %30, %33 : vector<256x1xf32>
      %35 = arith.mulf %32, %32 : vector<256x1xf32>
      %36 = arith.subf %34, %35 : vector<256x1xf32>
      %cst_16 = arith.constant 0.000000e+00 : f32
      %37 = vector.broadcast %cst_16 : f32 to vector<256x1xf32>
      %38 = arith.maximumf %36, %37 : vector<256x1xf32>
      %39 = vector.broadcast %32 : vector<256x1xf32> to vector<256x128xf32>
      %40 = arith.subf %18, %39 : vector<256x128xf32>
      %cst_17 = arith.constant 9.99999974E-6 : f32
      %41 = vector.broadcast %cst_17 : f32 to vector<256x1xf32>
      %42 = arith.addf %38, %41 : vector<256x1xf32>
      %43 = math.rsqrt %42 : vector<256x1xf32>
      %44 = vector.broadcast %43 : vector<256x1xf32> to vector<256x128xf32>
      %45 = arith.mulf %40, %44 : vector<256x128xf32>
      %c0_18 = arith.constant 0 : index
      %c0_19 = arith.constant 0 : index
      %c0_20 = arith.constant 0 : index
      %46 = vector.load %arg4[%c0_18, %c0_19, %c0_20] : memref<1x1x128xf32, #tpu.memory_space<vmem>>, vector<1x1x128xf32>
      %47 = vector.shape_cast %46 : vector<1x1x128xf32> to vector<1x128xf32>
      %48 = vector.broadcast %47 : vector<1x128xf32> to vector<256x128xf32>
      %49 = arith.mulf %45, %48 : vector<256x128xf32>
      %c0_21 = arith.constant 0 : index
      %c0_22 = arith.constant 0 : index
      %c0_23 = arith.constant 0 : index
      %50 = vector.load %arg5[%c0_21, %c0_22, %c0_23] : memref<1x1x128xf32, #tpu.memory_space<vmem>>, vector<1x1x128xf32>
      %51 = vector.shape_cast %50 : vector<1x1x128xf32> to vector<1x128xf32>
      %52 = vector.broadcast %51 : vector<1x128xf32> to vector<256x128xf32>
      %53 = arith.addf %49, %52 : vector<256x128xf32>
      %cst_24 = arith.constant 0.000000e+00 : f32
      %54 = vector.broadcast %cst_24 : f32 to vector<256x128xf32>
      %55 = arith.maximumf %53, %54 : vector<256x128xf32>
      %56 = arith.truncf %55 : vector<256x128xf32> to vector<256x128xbf16>
      %c0_25 = arith.constant 0 : index
      %c0_26 = arith.constant 0 : index
      %c0_27 = arith.constant 0 : index
      %57 = vector.load %arg6[%c0_25, %c0_26, %c0_27] : memref<1x128x128xbf16, #tpu.memory_space<vmem>>, vector<1x128x128xbf16>
      %58 = vector.shape_cast %57 : vector<1x128x128xbf16> to vector<128x128xbf16>
      %cst_28 = arith.constant dense<0.000000e+00> : vector<256x128xf32>
      %59 = tpu.matmul %56, %58, %cst_28 {dimension_numbers = #tpu.dot_dimension_numbers<[1], [0], [0], [1], [0, 0, 1, 1], [], []>} : vector<256x128xbf16>, vector<128x128xbf16>, vector<256x128xf32> -> vector<256x128xf32>
      %60 = arith.truncf %59 : vector<256x128xf32> to vector<256x128xbf16>
      %61 = arith.index_cast %1 : i32 to index
      %c0_29 = arith.constant 0 : index
      %62 = vector.load %arg12[%61, %c0_29] : memref<512x128xbf16, #tpu.memory_space<vmem>>, vector<256x128xbf16>
      tpu.vector_store %arg12[%61, %c0_29], %60 {strides = array<i32>} : memref<512x128xbf16, #tpu.memory_space<vmem>>, vector<256x128xbf16>,
      %c0_30 = arith.constant 0 : index
      %c0_31 = arith.constant 0 : index
      %63 = vector.load %arg3[%c0_30, %c0_31] : memref<256x256xbf16, #tpu.memory_space<vmem>>, vector<256x256xbf16>
      %64 = arith.index_cast %1 : i32 to index
      %c0_32 = arith.constant 0 : index
      %65 = vector.load %arg13[%64, %c0_32] : memref<256x256xbf16, #tpu.memory_space<vmem>>, vector<256x256xbf16>
      tpu.vector_store %arg13[%64, %c0_32], %63 {strides = array<i32>} : memref<256x256xbf16, #tpu.memory_space<vmem>>, vector<256x256xbf16>,
    } else {
    }
    %c0_i32_4 = arith.constant 0 : i32
    %12 = arith.cmpi sgt, %arg0, %c0_i32_4 : i32
    %13 = arith.extui %12 : i1 to i32
    %c0_i32_5 = arith.constant 0 : i32
    %14 = arith.cmpi ne, %13, %c0_i32_5 : i32
    scf.if %14 {
      %18 = arith.index_cast %1 : i32 to index
      %c0 = arith.constant 0 : index
      %19 = vector.load %arg13[%18, %c0] : memref<256x256xbf16, #tpu.memory_space<vmem>>, vector<256x256xbf16>
      %20 = arith.index_cast %8 : i32 to index
      %c0_7 = arith.constant 0 : index
      %21 = vector.load %arg12[%20, %c0_7] : memref<512x128xbf16, #tpu.memory_space<vmem>>, vector<256x128xbf16>
      %cst = arith.constant dense<0.000000e+00> : vector<256x128xf32>
      %22 = tpu.matmul %19, %21, %cst {dimension_numbers = #tpu.dot_dimension_numbers<[1], [0], [0], [1], [0, 0, 1, 1], [], []>} : vector<256x256xbf16>, vector<256x128xbf16>, vector<256x128xf32> -> vector<256x128xf32>
      %c0_8 = arith.constant 0 : index
      %c0_9 = arith.constant 0 : index
      %c0_10 = arith.constant 0 : index
      %23 = vector.load %arg7[%c0_8, %c0_9, %c0_10] : memref<1x1x128xf32, #tpu.memory_space<vmem>>, vector<1x1x128xf32>
      %24 = vector.shape_cast %23 : vector<1x1x128xf32> to vector<1x128xf32>
      %25 = vector.broadcast %24 : vector<1x128xf32> to vector<256x128xf32>
      %26 = arith.addf %22, %25 : vector<256x128xf32>
      %27 = arith.index_cast %1 : i32 to index
      %c0_11 = arith.constant 0 : index
      %28 = vector.load %arg11[%27, %c0_11] : memref<256x128xf32, #tpu.memory_space<vmem>>, vector<256x128xf32>
      %29 = arith.addf %26, %28 : vector<256x128xf32>
      %30 = arith.index_cast %1 : i32 to index
      %c0_12 = arith.constant 0 : index
      %31 = vector.load %arg11[%30, %c0_12] : memref<256x128xf32, #tpu.memory_space<vmem>>, vector<256x128xf32>
      tpu.vector_store %arg11[%30, %c0_12], %29 {strides = array<i32>} : memref<256x128xf32, #tpu.memory_space<vmem>>, vector<256x128xf32>,
      %32 = arith.index_cast %1 : i32 to index
      %c0_13 = arith.constant 0 : index
      %33 = vector.load %arg10[%32, %c0_13] : memref<256x128xf32, #tpu.memory_space<vmem>>, vector<256x128xf32>
      %34 = arith.truncf %29 : vector<256x128xf32> to vector<256x128xbf16>
      %c0_14 = arith.constant 0 : index
      %c0_15 = arith.constant 0 : index
      %35 = vector.load %arg8[%c0_14, %c0_15] : memref<128x128xbf16, #tpu.memory_space<vmem>>, vector<128x128xbf16>
      %cst_16 = arith.constant dense<0.000000e+00> : vector<256x128xf32>
      %36 = tpu.matmul %34, %35, %cst_16 {dimension_numbers = #tpu.dot_dimension_numbers<[1], [0], [0], [1], [0, 0, 1, 1], [], []>} : vector<256x128xbf16>, vector<128x128xbf16>, vector<256x128xf32> -> vector<256x128xf32>
      %37 = arith.addf %33, %36 : vector<256x128xf32>
      %38 = arith.index_cast %1 : i32 to index
      %c0_17 = arith.constant 0 : index
      %39 = vector.load %arg10[%38, %c0_17] : memref<256x128xf32, #tpu.memory_space<vmem>>, vector<256x128xf32>
      tpu.vector_store %arg10[%38, %c0_17], %37 {strides = array<i32>} : memref<256x128xf32, #tpu.memory_space<vmem>>, vector<256x128xf32>,
      %c3_i32_18 = arith.constant 3 : i32
      %40 = arith.cmpi slt, %arg0, %c3_i32_18 : i32
      %41 = arith.extui %40 : i1 to i32
      %c0_i32_19 = arith.constant 0 : i32
      %42 = arith.cmpi ne, %41, %c0_i32_19 : i32
      scf.if %42 {
        %cst_20 = arith.constant dense<0.000000e+00> : vector<256xf32>
        %43 = vector.multi_reduction <add>, %29, %cst_20 [1] : vector<256x128xf32> to vector<256xf32>
        %44 = vector.shape_cast %43 : vector<256xf32> to vector<256x1xf32>
        %45 = arith.mulf %29, %29 : vector<256x128xf32>
        %cst_21 = arith.constant dense<0.000000e+00> : vector<256xf32>
        %46 = vector.multi_reduction <add>, %45, %cst_21 [1] : vector<256x128xf32> to vector<256xf32>
        %47 = vector.shape_cast %46 : vector<256xf32> to vector<256x1xf32>
        %cst_22 = arith.constant 3.125000e-02 : f32
        %48 = vector.broadcast %cst_22 : f32 to vector<256x1xf32>
        %49 = arith.mulf %44, %48 : vector<256x1xf32>
        %cst_23 = arith.constant 3.125000e-02 : f32
        %50 = vector.broadcast %cst_23 : f32 to vector<256x1xf32>
        %51 = arith.mulf %47, %50 : vector<256x1xf32>
        %52 = arith.mulf %49, %49 : vector<256x1xf32>
        %53 = arith.subf %51, %52 : vector<256x1xf32>
        %cst_24 = arith.constant 0.000000e+00 : f32
        %54 = vector.broadcast %cst_24 : f32 to vector<256x1xf32>
        %55 = arith.maximumf %53, %54 : vector<256x1xf32>
        %56 = vector.broadcast %49 : vector<256x1xf32> to vector<256x128xf32>
        %57 = arith.subf %29, %56 : vector<256x128xf32>
        %cst_25 = arith.constant 9.99999974E-6 : f32
        %58 = vector.broadcast %cst_25 : f32 to vector<256x1xf32>
        %59 = arith.addf %55, %58 : vector<256x1xf32>
        %60 = math.rsqrt %59 : vector<256x1xf32>
        %61 = vector.broadcast %60 : vector<256x1xf32> to vector<256x128xf32>
        %62 = arith.mulf %57, %61 : vector<256x128xf32>
        %c0_26 = arith.constant 0 : index
        %c0_27 = arith.constant 0 : index
        %c0_28 = arith.constant 0 : index
        %63 = vector.load %arg4[%c0_26, %c0_27, %c0_28] : memref<1x1x128xf32, #tpu.memory_space<vmem>>, vector<1x1x128xf32>
        %64 = vector.shape_cast %63 : vector<1x1x128xf32> to vector<1x128xf32>
        %65 = vector.broadcast %64 : vector<1x128xf32> to vector<256x128xf32>
        %66 = arith.mulf %62, %65 : vector<256x128xf32>
        %c0_29 = arith.constant 0 : index
        %c0_30 = arith.constant 0 : index
        %c0_31 = arith.constant 0 : index
        %67 = vector.load %arg5[%c0_29, %c0_30, %c0_31] : memref<1x1x128xf32, #tpu.memory_space<vmem>>, vector<1x1x128xf32>
        %68 = vector.shape_cast %67 : vector<1x1x128xf32> to vector<1x128xf32>
        %69 = vector.broadcast %68 : vector<1x128xf32> to vector<256x128xf32>
        %70 = arith.addf %66, %69 : vector<256x128xf32>
        %cst_32 = arith.constant 0.000000e+00 : f32
        %71 = vector.broadcast %cst_32 : f32 to vector<256x128xf32>
        %72 = arith.maximumf %70, %71 : vector<256x128xf32>
        %73 = arith.truncf %72 : vector<256x128xf32> to vector<256x128xbf16>
        %c0_33 = arith.constant 0 : index
        %c0_34 = arith.constant 0 : index
        %c0_35 = arith.constant 0 : index
        %74 = vector.load %arg6[%c0_33, %c0_34, %c0_35] : memref<1x128x128xbf16, #tpu.memory_space<vmem>>, vector<1x128x128xbf16>
        %75 = vector.shape_cast %74 : vector<1x128x128xbf16> to vector<128x128xbf16>
        %cst_36 = arith.constant dense<0.000000e+00> : vector<256x128xf32>
        %76 = tpu.matmul %73, %75, %cst_36 {dimension_numbers = #tpu.dot_dimension_numbers<[1], [0], [0], [1], [0, 0, 1, 1], [], []>} : vector<256x128xbf16>, vector<128x128xbf16>, vector<256x128xf32> -> vector<256x128xf32>
        %77 = arith.truncf %76 : vector<256x128xf32> to vector<256x128xbf16>
        %78 = arith.index_cast %6 : i32 to index
        %c0_37 = arith.constant 0 : index
        %79 = vector.load %arg12[%78, %c0_37] : memref<512x128xbf16, #tpu.memory_space<vmem>>, vector<256x128xbf16>
        tpu.vector_store %arg12[%78, %c0_37], %77 {strides = array<i32>} : memref<512x128xbf16, #tpu.memory_space<vmem>>, vector<256x128xbf16>,
      } else {
      }
    } else {
    }
    %c3_i32 = arith.constant 3 : i32
    %15 = arith.cmpi eq, %arg0, %c3_i32 : i32
    %16 = arith.extui %15 : i1 to i32
    %c0_i32_6 = arith.constant 0 : i32
    %17 = arith.cmpi ne, %16, %c0_i32_6 : i32
    scf.if %17 {
      %18 = arith.index_cast %1 : i32 to index
      %c0 = arith.constant 0 : index
      %19 = vector.load %arg10[%18, %c0] : memref<256x128xf32, #tpu.memory_space<vmem>>, vector<256x128xf32>
      %c0_7 = arith.constant 0 : index
      %c0_8 = arith.constant 0 : index
      %20 = vector.load %arg9[%c0_7, %c0_8] : memref<1x128xf32, #tpu.memory_space<vmem>>, vector<1x128xf32>
      %21 = vector.broadcast %20 : vector<1x128xf32> to vector<256x128xf32>
      %22 = arith.addf %19, %21 : vector<256x128xf32>
      %cst = arith.constant dense<0xFF800000> : vector<256xf32>
      %23 = vector.multi_reduction <maximumf>, %22, %cst [1] : vector<256x128xf32> to vector<256xf32>
      %24 = vector.shape_cast %23 : vector<256xf32> to vector<256x1xf32>
      %25 = vector.broadcast %24 : vector<256x1xf32> to vector<256x128xf32>
      %26 = arith.subf %22, %25 : vector<256x128xf32>
      %27 = math.exp %26 : vector<256x128xf32>
      %28 = vector.broadcast %24 : vector<256x1xf32> to vector<256x128xf32>
      %29 = arith.subf %22, %28 : vector<256x128xf32>
      %cst_9 = arith.constant dense<0.000000e+00> : vector<256xf32>
      %30 = vector.multi_reduction <add>, %27, %cst_9 [1] : vector<256x128xf32> to vector<256xf32>
      %31 = vector.shape_cast %30 : vector<256xf32> to vector<256x1xf32>
      %32 = math.log %31 : vector<256x1xf32>
      %33 = vector.broadcast %32 : vector<256x1xf32> to vector<256x128xf32>
      %34 = arith.subf %29, %33 : vector<256x128xf32>
      %35 = arith.index_cast %1 : i32 to index
      %c0_10 = arith.constant 0 : index
      %36 = vector.load %arg10[%35, %c0_10] : memref<256x128xf32, #tpu.memory_space<vmem>>, vector<256x128xf32>
      tpu.vector_store %arg10[%35, %c0_10], %34 {strides = array<i32>} : memref<256x128xf32, #tpu.memory_space<vmem>>, vector<256x128xf32>,
    } else {
    }
    return
  }
  func.func @transform_0(%arg0: i32, %arg1: i32) -> (i32, i32) {
    %c0_i32 = arith.constant 0 : i32
    %0 = arith.cmpi eq, %arg0, %c0_i32 : i32
    %c0_i32_0 = arith.constant 0 : i32
    %1 = arith.select %0, %arg1, %c0_i32_0 : i32
    %c0_i32_1 = arith.constant 0 : i32
    %c0_i32_2 = arith.constant 0 : i32
    return %1, %c0_i32_1 : i32, i32
  }
  func.func @transform_1(%arg0: i32, %arg1: i32) -> (i32, i32) {
    %c0_i32 = arith.constant 0 : i32
    %0 = arith.cmpi eq, %arg0, %c0_i32 : i32
    %c0_i32_0 = arith.constant 0 : i32
    %1 = arith.select %0, %arg1, %c0_i32_0 : i32
    %c0_i32_1 = arith.constant 0 : i32
    %c0_i32_2 = arith.constant 0 : i32
    return %1, %c0_i32_1 : i32, i32
  }
  func.func @transform_2(%arg0: i32, %arg1: i32) -> (i32, i32, i32) {
    %c2_i32 = arith.constant 2 : i32
    %0 = arith.minsi %arg0, %c2_i32 : i32
    %c0_i32 = arith.constant 0 : i32
    %c0_i32_0 = arith.constant 0 : i32
    %c0_i32_1 = arith.constant 0 : i32
    return %0, %c0_i32, %c0_i32_0 : i32, i32, i32
  }
  func.func @transform_3(%arg0: i32, %arg1: i32) -> (i32, i32, i32) {
    %c2_i32 = arith.constant 2 : i32
    %0 = arith.minsi %arg0, %c2_i32 : i32
    %c0_i32 = arith.constant 0 : i32
    %c0_i32_0 = arith.constant 0 : i32
    %c0_i32_1 = arith.constant 0 : i32
    return %0, %c0_i32, %c0_i32_0 : i32, i32, i32
  }
  func.func @transform_4(%arg0: i32, %arg1: i32) -> (i32, i32, i32) {
    %c2_i32 = arith.constant 2 : i32
    %0 = arith.minsi %arg0, %c2_i32 : i32
    %c0_i32 = arith.constant 0 : i32
    %c0_i32_0 = arith.constant 0 : i32
    %c0_i32_1 = arith.constant 0 : i32
    return %0, %c0_i32, %c0_i32_0 : i32, i32, i32
  }
  func.func @transform_5(%arg0: i32, %arg1: i32) -> (i32, i32, i32) {
    %c1_i32 = arith.constant 1 : i32
    %0 = arith.subi %arg0, %c1_i32 : i32
    %c0_i32 = arith.constant 0 : i32
    %1 = arith.maxsi %0, %c0_i32 : i32
    %c0_i32_0 = arith.constant 0 : i32
    %c0_i32_1 = arith.constant 0 : i32
    %c0_i32_2 = arith.constant 0 : i32
    return %1, %c0_i32_0, %c0_i32_1 : i32, i32, i32
  }
  func.func @transform_6(%arg0: i32, %arg1: i32) -> (i32, i32) {
    %c0_i32 = arith.constant 0 : i32
    %c0_i32_0 = arith.constant 0 : i32
    %c0_i32_1 = arith.constant 0 : i32
    return %c0_i32, %c0_i32_0 : i32, i32
  }
  func.func @transform_7(%arg0: i32, %arg1: i32) -> (i32, i32) {
    %c0_i32 = arith.constant 0 : i32
    %c0_i32_0 = arith.constant 0 : i32
    %c0_i32_1 = arith.constant 0 : i32
    return %c0_i32, %c0_i32_0 : i32, i32
  }
  func.func @transform_8(%arg0: i32, %arg1: i32) -> (i32, i32) {
    %c0_i32 = arith.constant 0 : i32
    %c0_i32_0 = arith.constant 0 : i32
    %c0_i32_1 = arith.constant 0 : i32
    return %c0_i32, %c0_i32_0 : i32, i32
  }
}

</mosaic_0001>

<bundles_post_ra>
// kernel: tpu_custom_call.1
= control target key start
LH: loop header
LB: loop body
LE: loop exit
PB: predicated region body
PF: predicated region fallthrough
CT: control target
= control target key end

     0   :  { %s6963_s0 = inlined_call_operand.hbm [shape: f32[256,128], index: 0, kind: input, shape index: {}]   ;;  %s6964_s1 = inlined_call_operand.hbm [shape: bf16[256,256], index: 1, kind: input, shape index: {}]   ;;  %s6965_s2 = inlined_call_operand.vmem [shape: f32[3,1,128], index: 2, kind: input, shape index: {}]   ;;  %s6966_s3 = inlined_call_operand.vmem [shape: f32[3,1,128], index: 3, kind: input, shape index: {}]   ;;  %s6967_s4 = inlined_call_operand.hbm [shape: bf16[3,128,128], index: 4, kind: input, shape index: {}]   ;;  %s6968_s5 = inlined_call_operand.vmem [shape: f32[3,1,128], index: 5, kind: input, shape index: {}]   ;;  %s6969_s6 = inlined_call_operand.hbm [shape: bf16[128,128], index: 6, kind: input, shape index: {}]   ;;  %s6970_s7 = inlined_call_operand.vmem [shape: f32[1,128], index: 7, kind: input, shape index: {}]   ;;  %s6971_s8 = inlined_call_operand.hbm [shape: f32[256,128], index: 8, kind: output, shape index: {}]  }
   0x1   :  { %6986 = sst [smem:[#allocation20_spill]] %s6964_s1 }
   0x2   :  { %13 = vsyncpa [#allocation6], 0 }
   0x3   :  { %15 = vsyncpa [#allocation6 + $0x1], 0 }
   0x4   :  { %16 = vsyncpa [#allocation9], 0 }
   0x5   :  { %18 = vsyncpa [#allocation9 + $0x1], 0 }
   0x6   :  { %19 = vsyncpa [#allocation12], 0 }
   0x7   :  { %20 = vsyncpa [#allocation7], 0  ;;  %s5308_s27 = smov 0   ;;  %s5310_s28 = smov 0  }
   0x8   :  { %s5312_s29 = smov 0   ;;  %s5314_s30 = smov 0  }
   0x9   :  { %s5316_s9 = smov 0   ;;  %s5318_s10 = smov 0  }
   0xa LB: > { %6987 = sst [smem:[#allocation19_spill]] %s5250_s10  ;;  %p6973_p0 = scmp.eq.s32.totalorder %s5250_s10, 0  ;;  %s5250_s10 = sphi %s5318_s10, %s26_s10   ;;  %s5246_s9 = sphi %s5316_s9, %s7018_s9   ;;  %s5242_s30 = sphi %s5314_s30, %s7017_s30   ;;  %s5238_s29 = sphi %s5312_s29, %s7016_s29   ;;  %s5234_s28 = sphi %s5310_s28, %s7015_s28   ;;  %s5230_s27 = sphi %s5308_s27, %s7014_s27  }
   0xb   : > { %p6972_p1 = scmp.lt.s32.totalorder %s5250_s10, 4  ;;  %s340_s11 = sand.u32 1, %s5250_s10  }
   0xc   : > { %s5252_s13 = smov [#allocation8]   ;;  %s5349_s15 = scalar_lea.sflag [#allocation9], %s340_s11 }
   0xd   : > { %p5345_p2 = pnand %p6972_p1, %p6973_p0  ;;  %s354_s14 = sshll.u32 %s5252_s13, 4  ;;  %s355_s14 = int_to_ptr.vmem [resolvable:$true] %s354_s14 }
   0xe   : > { %s6989_s1 = sld [smem:[#allocation20_spill]] }
   0xf   : > { %s6988_s12 = scalar_select %p5345_p2, 1, 0 }
  0x10   : > { %p6977_p4 = pneg %p5345_p2 }
  0x14   : > { %s5044_s18 = scalar_lea.hbm %s6989_s1, 4096 }
  0x15   : > { %p5045_p3 = scmp.ne.s32.totalorder %s6989_s1, %s5044_s18  ;;  %p5051_p7 = scmp.lt.u32.totalorder %s5044_s18, %s6989_s1 }
  0x17   : > { %p5047_p5 = pnand %p6977_p4, %p5045_p3 }
  0x19   : > { %p5048_p6 = pneg %p5047_p5 }
  0x1b   : > { %p5053_p8 = pnand %p5051_p7, %p5048_p6 }
  0x1d   : > { %5056 = shalt.err (!%p5053_p8)
}
  0x1e   : > { %s5057_s23 = scalar_lea.vmem %s355_s14, 4096  ;;  %s5064_s24 = scalar_lea.vmem %s355_s14, 8192 }
  0x1f   : > { %p5058_p9 = scmp.ne.s32.totalorder %s355_s14, %s5057_s23  ;;  %p5065_p12 = scmp.lt.s32.totalorder %s355_s14, %s355_s14 }
  0x20   : > { %p5066_p13 = scmp.lt.s32.totalorder %s5064_s24, %s5057_s23 }
  0x21   : > { %p5060_p10 = pnand %p5058_p9, %p6977_p4 }
  0x22   : > { %p5067_p1 = por %p5066_p13, %p5065_p12 }
  0x23   : > { %p5061_p11 = pneg %p5060_p10 }
  0x25   : > { %p5068_p0 = pnand %p5067_p1, %p5061_p11 }
  0x27   : > { %5071 = shalt.err (!%p5068_p0)
}
  0x28   : > { %s6974_s25 = smov 128   ;;  %s6975_s26 = smov 8  }
  0x29   : > { %4618 = dma.hbm_to_vmem [thread:$0]  (!%p5345_p2), %s6989_s1, 4096, %s355_s14, %s5349_s15, %s6974_s25, %s6974_s25, %s6975_s26  }
  0x2a   : > { %s5378_s16 = sadd.s32 4294967295, %s5250_s10   ;;  %p176_p0 = scmp.ne.s32.totalorder %s5238_s29, %s5234_s28 }
  0x2b   : > { %p182_p1 = scmp.ne.s32.totalorder %s5234_s28, %s5230_s27  ;;  %p6976_p3 = scmp.eq.s32.totalorder %s5378_s16, 0 }
  0x2c   : > { %p4048_p5 = scmp.ge.s32.totalorder %s5250_s10, 1  ;;  %p6990_p6 = scmp.eq.s32.totalorder %s5250_s10, 0 }
  0x2d   : > { %p288_p8 = scmp.lt.s32.totalorder %s5250_s10, 5  ;;  %p5391_p9 = por %p6976_p3, %p182_p1 }
  0x2e   : > { %p178_p7 = por %p6990_p6, %p176_p0  ;;  %s5255_s14 = smov [#allocation11]  }
  0x2f   : > { %s6991_s17 = scalar_select %p5391_p9, 1, 0 }
  0x30   : > { %p5395_p10 = pnand %p4048_p5, %p288_p8  ;;  %s300_s19 = sshll.u32 %s5255_s14, 4  ;;  %s301_s19 = int_to_ptr.vmem [resolvable:$true] %s300_s19 }
  0x31   : > { %p6993_p12 = scmp.lt.s32.totalorder %s5250_s10, 4  ;;  %s5256_s21 = smov [#allocation5]  }
  0x32   : > { %s6992_s18 = scalar_select %p5395_p10, 1, 0 }
  0x33   : > { %p4608_p11 = pneg %p5395_p10  ;;  %p5403_p13 = pnand %p6993_p12, %p178_p7 }
  0x34   : > { %s330_s22 = sshll.u32 %s5256_s21, 4  ;;  %s5072_s11 = scalar_lea.hbm %s6969_s6, 1024  ;;  %s5413_s22 = int_to_ptr.vmem [resolvable:$true] %s330_s22 }
  0x35   : > { %s6994_s27 = scalar_select %p5403_p13, 1, 0 }
  0x36   : > { %p5409_p0 = pnand %p4608_p11, %p6976_p3  ;;  %p5073_p1 = scmp.ne.s32.totalorder %s6969_s6, %s5072_s11 }
  0x37   : > { %p5079_p8 = scmp.lt.u32.totalorder %s5072_s11, %s6969_s6 }
  0x38   : > { %p5074_p5 = pneg %p5409_p0 }
  0x3a   : > { %p5075_p6 = pnand %p5074_p5, %p5073_p1 }
  0x3c   : > { %p5076_p7 = pneg %p5075_p6 }
  0x3e   : > { %p5081_p11 = pnand %p5079_p8, %p5076_p7 }
  0x40   : > { %5084 = shalt.err (!%p5081_p11)
}
  0x41   : > { %s5085_s21 = scalar_lea.vmem %s301_s19, 1024  ;;  %p5093_p9 = scmp.lt.s32.totalorder %s301_s19, %s301_s19 }
  0x42   : > { %p5086_p12 = scmp.ne.s32.totalorder %s301_s19, %s5085_s21  ;;  %p5094_p10 = scmp.lt.s32.totalorder %s5085_s21, %s5085_s21 }
  0x44   : > { %p5088_p3 = pnand %p5086_p12, %p5074_p5  ;;  %p5095_p13 = por %p5094_p10, %p5093_p9 }
  0x46   : > { %p5089_p4 = pneg %p5088_p3 }
  0x48   : > { %p5096_p2 = pnand %p5095_p13, %p5089_p4 }
  0x4a   : > { %5099 = shalt.err (!%p5096_p2)
}
  0x4b   : > { %s6984_s23 = smov 64   ;;  %s6985_s24 = smov 4  }
  0x4c   : > { %4611 = dma.hbm_to_vmem [thread:$0]  (!%p5409_p0), %s6969_s6, 1024, %s301_s19, [#allocation12], %s6984_s23, %s6984_s23, %s6985_s24  }
  0x4d   : > { %s5100_s14 = scalar_lea.hbm %s6963_s0, 4096  ;;  %p6996_p4 = scmp.ne.s32.totalorder %s6988_s12, 0 }
  0x4e   : > { %p5101_p2 = scmp.ne.s32.totalorder %s6963_s0, %s5100_s14  ;;  %p5107_p13 = scmp.lt.u32.totalorder %s5100_s14, %s6963_s0 }
  0x4f   : > { %p6997_p3 = pneg %p6996_p4 }
  0x51   : > { %p5103_p9 = pnand %p5101_p2, %p6997_p3 }
  0x53   : > { %p5104_p10 = pneg %p5103_p9 }
  0x55   : > { %p5109_p1 = pnand %p5107_p13, %p5104_p10 }
  0x57   : > { %5112 = shalt.err (!%p5109_p1)
}
  0x58   : > { %s5113_s19 = scalar_lea.vmem %s5413_s22, 4096  ;;  %p6998_p5 = pmov %p6997_p3 }
  0x59   : > { %p5114_p0 = scmp.ne.s32.totalorder %s5413_s22, %s5113_s19  ;;  %s5120_s1 = scalar_lea.vmem %s5413_s22, 8192 }
  0x5a   : > { %p5121_p8 = scmp.lt.s32.totalorder %s5413_s22, %s5413_s22  ;;  %p5122_p11 = scmp.lt.s32.totalorder %s5120_s1, %s5113_s19 }
  0x5b   : > { %p5116_p6 = pnand %p5114_p0, %p6998_p5 }
  0x5c   : > { %p5123_p12 = por %p5122_p11, %p5121_p8 }
  0x5d   : > { %p5117_p7 = pneg %p5116_p6 }
  0x5f   : > { %p5124_p2 = pnand %p5123_p12, %p5117_p7 }
  0x61   : > { %5127 = shalt.err (!%p5124_p2)
}
  0x62   : > { %s6999_s10 = smov 8   ;;  %s7000_s25 = smov 128  }
  0x63   : > { %4615 = dma.hbm_to_vmem [thread:$0]  (!%p6996_p4), %s6963_s0, 4096, %s5413_s22, [#allocation6], %s7000_s25, %s7000_s25, %s6999_s10  }
  0x64   : > { %s386_s13 = sand.u32 1, %s5238_s29   ;;  %s38_s14 = sadd.s32 1, %s5246_s9 }
  0x65   : > { %p162_p3 = scmp.lt.s32.totalorder %s5246_s9, 2  ;;  %p40_p9 = scmp.ge.s32.totalorder %s38_s14, 4 }
  0x66   : > { %s4053_s21 = sshll.u32 %s386_s13, 6  ;;  %s169_s13 = sadd.s32 1, %s5238_s29 }
  0x67   : > { %s163_s12 = scalar_select %p162_p3, %s5246_s9, 2 }
  0x68   : > { %s7020_s14 = smov (%p40_p9, %s38_s14), 0  ;;  %s388_s19 = scalar_lea.vmem [#allocation10], %s4053_s21 }
  0x69   : > { %p164_p10 = scmp.lt.s32.totalorder %s7020_s14, 2  ;;  %s4155_s20 = sshll.u32 %s163_s12, 10 }
  0x6a   : > { %s397_s1 = sshll.u32 %s388_s19, 4  ;;  %s5474_s10 = scalar_lea.hbm %s6967_s4, %s4155_s20  ;;  %s5476_s1 = int_to_ptr.vmem [resolvable:$true] %s397_s1 }
  0x6b   : > { %s165_s26 = scalar_select %p164_p10, %s7020_s14, 2 }
  0x6c   : > { %s5128_s21 = scalar_lea.hbm %s5474_s10, 1024  ;;  %p7002_p1 = scmp.ne.s32.totalorder %s6994_s27, 0 }
  0x6d   : > { %s166_s25 = ssub.s32 %s163_s12, %s165_s26  ;;  %p5129_p13 = scmp.ne.s32.totalorder %s5474_s10, %s5128_s21 }
  0x6e   : > { %p5479_p4 = scmp.eq.s32.totalorder %s166_s25, 0  ;;  %p5130_p0 = pneg %p7002_p1 }
  0x6f   : > { %s5133_s11 = scalar_lea.hbm %s6967_s4, 3072  ;;  %p5134_p7 = scmp.lt.u32.totalorder %s5474_s10, %s6967_s4 }
  0x70   : > { %p5131_p5 = pnand %p5130_p0, %p5129_p13  ;;  %p5135_p8 = scmp.lt.u32.totalorder %s5133_s11, %s5128_s21 }
  0x71   : > { %p5137_p12 = scmp.lt.u32.totalorder %s5128_s21, %s5474_s10 }
  0x72   : > { %p5132_p6 = pneg %p5131_p5  ;;  %p5136_p11 = por %p5135_p8, %p5134_p7 }
  0x74   : > { %p5138_p2 = por %p5137_p12, %p5136_p11 }
  0x76   : > { %p5139_p3 = pnand %p5138_p2, %p5132_p6 }
  0x78   : > { %5142 = shalt.err (!%p5139_p3)
}
  0x79   : > { %s5143_s12 = scalar_lea.vmem %s5476_s1, 1024  ;;  %s5259_s26 = smov [#allocation10]  }
  0x7a   : > { %p5144_p9 = scmp.ne.s32.totalorder %s5476_s1, %s5143_s12  ;;  %s5148_s25 = sshll.u32 %s5259_s26, 4  ;;  %s5149_s25 = int_to_ptr.vmem [resolvable:$false] %s5148_s25 }
  0x7b   : > { %s5150_s24 = scalar_lea.vmem %s5149_s25, 2048  ;;  %p5151_p5 = scmp.lt.s32.totalorder %s5476_s1, %s5149_s25 }
  0x7c   : > { %p5146_p10 = pnand %p5144_p9, %p5130_p0  ;;  %p5152_p7 = scmp.lt.s32.totalorder %s5150_s24, %s5143_s12 }
  0x7e   : > { %p5147_p13 = pneg %p5146_p10  ;;  %p5153_p8 = por %p5152_p7, %p5151_p5 }
  0x80   : > { %p5154_p11 = pnand %p5153_p8, %p5147_p13 }
  0x82   : > { %5157 = shalt.err (!%p5154_p11)
}
  0x83   : > { %s7003_s21 = smov 4   ;;  %s7004_s20 = smov 64  }
  0x84   : > { %4621 = dma.hbm_to_vmem [thread:$0]  (!%p7002_p1), %s5474_s10, 1024, %s5476_s1, %s5349_s15, %s7004_s20, %s7004_s20, %s7003_s21  }
  0x85   : > { %s5517_s19 = scalar_select %p5479_p4, %s5238_s29, %s169_s13  }
  0x86   : > { %p7005_p0 = scmp.ne.s32.totalorder %s6992_s18, 0 }
  0x87   : > { %p7006_p6 = scmp.eq.s32.totalorder (!%p7005_p0), %s5378_s16, 0 }
  0x88   : > { %421 = sbr.rel (%p7005_p0) target bundleno = 2152 (0x868), region = 52 }
  0x8f   : > { %5209 = dma.done.wait (%p7006_p6), [#allocation6], 4096   ;;  %p7007_p12 = pmov %p7006_p6 }
  0x90   : > { %s432_s27 = sand.u32 1, %s5378_s16   ;;  %p7008_p2 = pmov %p7006_p6 }
  0x91   : > { %5211 = vsyncadd (%p7007_p12), [#allocation6], 4294963200  ;;  %s433_s11 = scalar_lea.sflag [#allocation9], %s432_s27 }
  0x92   : > { %5213 = dma.done.wait (%p7008_p2), %s433_s11, 4096   ;;  %p7009_p1 = pmov %p7008_p2 }
  0x93   : > { %s443_s15 = sand.u32 1, %s5234_s28   ;;  %p7010_p4 = scmp.ne.s32.totalorder %s6991_s17, 0 }
  0x94   : > { %5215 = vsyncadd (%p7009_p1), %s433_s11, 4294963200  ;;  %s4059_s18 = sshll.u32 %s443_s15, 6 }
  0x95   : > { %s5531_s23 = scalar_lea.vmem [#allocation10], %s4059_s18 }
  0x96   : > { %5217 = dma.done.wait (%p7010_p4), %s433_s11, 1024  }
  0x97   : > { %5219 = vsyncadd (%p7010_p4), %s433_s11, 4294966272  ;;  %p7011_p3 = pmov %p7009_p1 }
  0x98   : > { %p7012_p9 = pmov %p7009_p1 }
  0x99   : > { %5221 = dma.done.wait (%p7011_p3), [#allocation12], 1024  }
  0x9a   : > { %5223 = vsyncadd (%p7012_p9), [#allocation12], 4294966272  ;;  %p509_p10 = scmp.lt.s32.totalorder %s5242_s30, 2  ;;  %s4067_s1 = sadd.s32 4294967295, %s5242_s30 }
  0x9b   : > { %p526_p13 = scmp.gt.s32.totalorder %s4067_s1, 0  ;;  %p4068_p5 = scmp.lt.s32.totalorder %s4067_s1, 2 }
  0x9c   : > { %s510_s10 = scalar_select %p509_p10, %s5242_s30, 2 }
  0x9d   : > { %s7022_s1 = smov (!%p526_p13, %s4067_s1), 0  ;;  %s536_s27 = sand.u32 1, %s5242_s30 }
  0x9e   : > { %s7024_s10 = smov (!%p509_p10, %s510_s10), 2  ;;  %s7026_s1 = smov (!%p4068_p5, %s7022_s1), 2 }
  0x9f   : > { %s5549_s22 = scalar_lea.vmem %s6965_s2, %s7024_s10  ;;  %s5554_s25 = scalar_lea.vmem %s6966_s3, %s7024_s10 }
  0xa0   : > { %s530_s20 = scalar_lea.vmem %s6968_s5, %s7026_s1  ;;  %s5561_s11 = ssub.s32 1, %s536_s27 }
  0xa1   : > { %s5563_s15 = sshll.u32 %s536_s27, 8  ;;  %s4074_s18 = sshll.u32 %s5561_s11, 8 }
  0xa2   : > { %p4075_p7 = scmp.ne.s32.totalorder %s5242_s30, 0 }
  0xa3   : > { %v5567_v0 = vld [vmem:[#allocation5 + $0x10] sm:$0xff] (!%p4075_p7)  ;;  %v5569_v1 = vld [vmem:[#allocation5] sm:$0xff] (!%p4075_p7)  ;;  %v5571_v2 = vld [vmem:[#allocation5 + $0x18] sm:$0xff] (!%p4075_p7) }
  0xa4   : > { %544 = sbr.rel (%p4075_p7) target bundleno = 678 (0x2a6), region = 72  ;;  %888 = vadd.xlane.f32.xlu1 (!%p4075_p7), %v5567_v0  ;;  %580 = vst [vmem:[#allocation2 + $0x10] sm:$0xff] (!%p4075_p7), %v5567_v0  ;;  %884 = vadd.xlane.f32.xlu0 (!%p4075_p7), %v5569_v1  ;;  %578 = vst [vmem:[#allocation2] sm:$0xff] (!%p4075_p7), %v5569_v1  ;;  %v5578_v3 = vld [vmem:[#allocation5 + $0x8] sm:$0xff] (!%p4075_p7)  ;;  %v5582_v5 = vld [vmem:[#allocation5 + $0x20] sm:$0xff] (!%p4075_p7)  ;;  %v948_v16 = vmul.f32 (!%p4075_p7), %v5569_v1, %v5569_v1  ;;  %v951_v29 = vmul.f32 (!%p4075_p7), %v5571_v2, %v5571_v2 }
  0xa5   : > { %581 = vst [vmem:[#allocation2 + $0x18] sm:$0xff] (!%p4075_p7), %v5571_v2  ;;  %v5580_v4 = vld [vmem:[#allocation5 + $0x28] sm:$0xff] (!%p4075_p7)  ;;  %579 = vst [vmem:[#allocation2 + $0x8] sm:$0xff] (!%p4075_p7), %v5578_v3  ;;  %v5587_v6 = vld [vmem:[#allocation5 + $0x38] sm:$0xff] (!%p4075_p7)  ;;  %v949_v15 = vmul.f32 (!%p4075_p7), %v5578_v3, %v5578_v3  ;;  %v950_v30 = vmul.f32 (!%p4075_p7), %v5567_v0, %v5567_v0  ;;  %v952_v37 = vmul.f32 (!%p4075_p7), %v5582_v5, %v5582_v5 }
  0xa6   : > { %583 = vst [vmem:[#allocation2 + $0x28] sm:$0xff] (!%p4075_p7), %v5580_v4  ;;  %582 = vst [vmem:[#allocation2 + $0x20] sm:$0xff] (!%p4075_p7), %v5582_v5  ;;  %v5589_v7 = vld [vmem:[#allocation5 + $0x30] sm:$0xff] (!%p4075_p7)  ;;  %v5591_v8 = vld [vmem:[#allocation5 + $0x48] sm:$0xff] (!%p4075_p7)  ;;  %v953_v36 = vmul.f32 (!%p4075_p7), %v5580_v4, %v5580_v4  ;;  %v955_v39 = vmul.f32 (!%p4075_p7), %v5587_v6, %v5587_v6 }
  0xa7   : > { %585 = vst [vmem:[#allocation2 + $0x38] sm:$0xff] (!%p4075_p7), %v5587_v6  ;;  %584 = vst [vmem:[#allocation2 + $0x30] sm:$0xff] (!%p4075_p7), %v5589_v7  ;;  %v5596_v9 = vld [vmem:[#allocation5 + $0x40] sm:$0xff] (!%p4075_p7)  ;;  %v5598_v10 = vld [vmem:[#allocation5 + $0x58] sm:$0xff] (!%p4075_p7)  ;;  %v954_v40 = vmul.f32 (!%p4075_p7), %v5589_v7, %v5589_v7  ;;  %v957_v44 = vmul.f32 (!%p4075_p7), %v5591_v8, %v5591_v8 }
  0xa8   : > { %587 = vst [vmem:[#allocation2 + $0x48] sm:$0xff] (!%p4075_p7), %v5591_v8  ;;  %v5600_v11 = vld [vmem:[#allocation5 + $0x50] sm:$0xff] (!%p4075_p7)  ;;  %586 = vst [vmem:[#allocation2 + $0x40] sm:$0xff] (!%p4075_p7), %v5596_v9  ;;  %v5605_v12 = vld [vmem:[#allocation5 + $0x68] sm:$0xff] (!%p4075_p7)  ;;  %890 = vadd.xlane.f32.xlu1 (!%p4075_p7), %v5571_v2  ;;  %886 = vadd.xlane.f32.xlu0 (!%p4075_p7), %v5578_v3  ;;  %v956_v45 = vmul.f32 (!%p4075_p7), %v5596_v9, %v5596_v9  ;;  %v959_v47 = vmul.f32 (!%p4075_p7), %v5598_v10, %v5598_v10 }
  0xa9   : > { %589 = vst [vmem:[#allocation2 + $0x58] sm:$0xff] (!%p4075_p7), %v5598_v10  ;;  %588 = vst [vmem:[#allocation2 + $0x50] sm:$0xff] (!%p4075_p7), %v5600_v11  ;;  %v5607_v13 = vld [vmem:[#allocation5 + $0x60] sm:$0xff] (!%p4075_p7)  ;;  %v5609_v14 = vld [vmem:[#allocation5 + $0x78] sm:$0xff] (!%p4075_p7)  ;;  %v958_v48 = vmul.f32 (!%p4075_p7), %v5600_v11, %v5600_v11  ;;  %v961_v52 = vmul.f32 (!%p4075_p7), %v5605_v12, %v5605_v12 }
  0xaa   : > { %591 = vst [vmem:[#allocation2 + $0x68] sm:$0xff] (!%p4075_p7), %v5605_v12  ;;  %590 = vst [vmem:[#allocation2 + $0x60] sm:$0xff] (!%p4075_p7), %v5607_v13  ;;  %v5620_v17 = vld [vmem:[#allocation5 + $0x70] sm:$0xff] (!%p4075_p7)  ;;  %v5622_v18 = vld [vmem:[#allocation5 + $0x88] sm:$0xff] (!%p4075_p7)  ;;  %v960_v53 = vmul.f32 (!%p4075_p7), %v5607_v13, %v5607_v13  ;;  %v963_v54 = vmul.f32 (!%p4075_p7), %v5609_v14, %v5609_v14 }
  0xab   : > { %593 = vst [vmem:[#allocation2 + $0x78] sm:$0xff] %v5609_v14  ;;  %v5624_v19 = vld [vmem:[#allocation5 + $0x80] sm:$0xff]  ;;  %592 = vst [vmem:[#allocation2 + $0x70] sm:$0xff] %v5620_v17  ;;  %v5629_v20 = vld [vmem:[#allocation5 + $0x98] sm:$0xff]  ;;  %v962_v55 = vmul.f32 %v5620_v17, %v5620_v17  ;;  %v965_v56 = vmul.f32 %v5622_v18, %v5622_v18 }
  0xac   : > { %595 = vst [vmem:[#allocation2 + $0x88] sm:$0xff] %v5622_v18  ;;  %594 = vst [vmem:[#allocation2 + $0x80] sm:$0xff] %v5624_v19  ;;  %v5631_v21 = vld [vmem:[#allocation5 + $0x90] sm:$0xff]  ;;  %v5633_v22 = vld [vmem:[#allocation5 + $0xa8] sm:$0xff]  ;;  %982 = vadd.xlane.f32.xlu1 %v949_v15  ;;  %980 = vadd.xlane.f32.xlu0 %v948_v16  ;;  %v964_v57 = vmul.f32 %v5624_v19, %v5624_v19  ;;  %v967_v58 = vmul.f32 %v5629_v20, %v5629_v20 }
  0xad   : > { %597 = vst [vmem:[#allocation2 + $0x98] sm:$0xff] %v5629_v20  ;;  %596 = vst [vmem:[#allocation2 + $0x90] sm:$0xff] %v5631_v21  ;;  %v5638_v23 = vld [vmem:[#allocation5 + $0xa0] sm:$0xff]  ;;  %v5640_v24 = vld [vmem:[#allocation5 + $0xb8] sm:$0xff]  ;;  %v966_v59 = vmul.f32 %v5631_v21, %v5631_v21  ;;  %v969_v61 = vmul.f32 %v5633_v22, %v5633_v22 }
  0xae   : > { %599 = vst [vmem:[#allocation2 + $0xa8] sm:$0xff] %v5633_v22  ;;  %v5642_v25 = vld [vmem:[#allocation5 + $0xb0] sm:$0xff]  ;;  %598 = vst [vmem:[#allocation2 + $0xa0] sm:$0xff] %v5638_v23  ;;  %v5647_v26 = vld [vmem:[#allocation5 + $0xc8] sm:$0xff]  ;;  %v968_v62 = vmul.f32 %v5638_v23, %v5638_v23  ;;  %v971_v15 = vmul.f32 %v5640_v24, %v5640_v24 }
  0xaf   : > { %601 = vst [vmem:[#allocation2 + $0xb8] sm:$0xff] %v5640_v24  ;;  %600 = vst [vmem:[#allocation2 + $0xb0] sm:$0xff] %v5642_v25  ;;  %v5649_v27 = vld [vmem:[#allocation5 + $0xc0] sm:$0xff]  ;;  %v5651_v28 = vld [vmem:[#allocation5 + $0xd8] sm:$0xff]  ;;  %v970_v16 = vmul.f32 %v5642_v25, %v5642_v25 }
  0xb0   : > { %603 = vst [vmem:[#allocation2 + $0xc8] sm:$0xff] %v5647_v26  ;;  %602 = vst [vmem:[#allocation2 + $0xc0] sm:$0xff] %v5649_v27  ;;  %v5660_v31 = vld [vmem:[#allocation5 + $0xd0] sm:$0xff]  ;;  %v5662_v32 = vld [vmem:[#allocation5 + $0xe8] sm:$0xff]  ;;  %986 = vadd.xlane.f32.xlu1 %v951_v29  ;;  %984 = vadd.xlane.f32.xlu0 %v950_v30 }
  0xb1   : > { %605 = vst [vmem:[#allocation2 + $0xd8] sm:$0xff] %v5651_v28  ;;  %v5664_v33 = vld [vmem:[#allocation5 + $0xe0] sm:$0xff]  ;;  %604 = vst [vmem:[#allocation2 + $0xd0] sm:$0xff] %v5660_v31  ;;  %v5669_v34 = vld [vmem:[#allocation5 + $0xf8] sm:$0xff] }
  0xb2   : > { %607 = vst [vmem:[#allocation2 + $0xe8] sm:$0xff] %v5662_v32  ;;  %606 = vst [vmem:[#allocation2 + $0xe0] sm:$0xff] %v5664_v33  ;;  %v5671_v35 = vld [vmem:[#allocation5 + $0xf0] sm:$0xff]  ;;  %v4689_v38 = vld [vmem:[%s5531_s23] sm:$0xff]  }
  0xb3   : > { %609 = vst [vmem:[#allocation2 + $0xf8] sm:$0xff] %v5669_v34  ;;  %608 = vst [vmem:[#allocation2 + $0xf0] sm:$0xff] %v5671_v35  ;;  %4414 = vmatprep.subr.bf16.mxu1 %v4689_v38  ;;  %v4690_v41 = vld [vmem:[%s5531_s23 + $0x8] sm:$0xff]   ;;  %v4691_v42 = vld [vmem:[%s5531_s23 + $0x10] sm:$0xff]  }
  0xb4   : > { %894 = vadd.xlane.f32.xlu1 %v5580_v4  ;;  %892 = vadd.xlane.f32.xlu0 %v5582_v5  ;;  %v4692_v43 = vld [vmem:[%s5531_s23 + $0x18] sm:$0xff]   ;;  %v4693_v46 = vld [vmem:[%s5531_s23 + $0x20] sm:$0xff]   ;;  %v4694_v49 = vld [vmem:[%s5531_s23 + $0x28] sm:$0xff]  }
  0xb5   : > { %4415 = vmatpush3.bf16.msra.mxu1 %v4689_v38  ;;  %v4695_v50 = vld [vmem:[%s5531_s23 + $0x30] sm:$0xff]   ;;  %v4696_v51 = vld [vmem:[%s5531_s23 + $0x38] sm:$0xff]   ;;  %v4697_v60 = vld [vmem:[#allocation11] sm:$0xff]   ;;  %v972_v38 = vmul.f32 %v5649_v27, %v5649_v27 }
  0xb6   : > { %4416 = vmatprep.subr.bf16.mxu1 %v4690_v41  ;;  %4366 = vmatprep.subr.bf16.mxu0 %v4697_v60  ;;  %v4698_v63 = vld [vmem:[#allocation11 + $0x8] sm:$0xff]   ;;  %v4699_v29 = vld [vmem:[#allocation11 + $0x10] sm:$0xff]   ;;  %v4700_v30 = vld [vmem:[#allocation11 + $0x18] sm:$0xff]  }
  0xb7   : > { %4367 = vmatpush3.bf16.msra.mxu0 %v4697_v60 }
  0xb8   : > { %898 = vadd.xlane.f32.xlu1 %v5587_v6  ;;  %896 = vadd.xlane.f32.xlu0 %v5589_v7 }
  0xb9   : > { %4417 = vmatpush3.bf16.msra.mxu1 %v4690_v41  ;;  %4368 = vmatprep.subr.bf16.mxu0 %v4698_v63  ;;  %v974_v41 = vmul.f32 %v5660_v31, %v5660_v31 }
  0xba   : > { %4418 = vmatprep.subr.bf16.mxu1 %v4691_v42 }
  0xbb   : > { %4369 = vmatpush3.bf16.msra.mxu0 %v4698_v63 }
  0xbc   : > { %990 = vadd.xlane.f32.xlu1 %v953_v36  ;;  %988 = vadd.xlane.f32.xlu0 %v952_v37  ;;  %v4701_v36 = vld [vmem:[#allocation11 + $0x20] sm:$0xff]   ;;  %v973_v37 = vmul.f32 %v5647_v26, %v5647_v26 }
  0xbd   : > { %4419 = vmatpush3.bf16.msra.mxu1 %v4691_v42  ;;  %4370 = vmatprep.subr.bf16.mxu0 %v4699_v29  ;;  %v4703_v42 = vld [vmem:[#allocation11 + $0x30] sm:$0xff]  }
  0xbe   : > { %4420 = vmatprep.subr.bf16.mxu1 %v4692_v43 }
  0xbf   : > { %4371 = vmatpush3.bf16.msra.mxu0 %v4699_v29  ;;  %v621_v29 = vpack.c.bf16 %v5640_v24, %v5642_v25 }
  0xc0   : > { %994 = vadd.xlane.f32.xlu1 %v955_v39  ;;  %992 = vadd.xlane.f32.xlu0 %v954_v40  ;;  %v4702_v39 = vld [vmem:[#allocation11 + $0x28] sm:$0xff]   ;;  %v975_v40 = vmul.f32 %v5651_v28, %v5651_v28 }
  0xc1   : > { %4421 = vmatpush3.bf16.msra.mxu1 %v4692_v43  ;;  %4372 = vmatprep.subr.bf16.mxu0 %v4700_v30  ;;  %v4704_v43 = vld [vmem:[#allocation11 + $0x38] sm:$0xff]  }
  0xc2   : > { %4422 = vmatprep.subr.bf16.mxu1 %v4693_v46 }
  0xc3   : > { %4373 = vmatpush3.bf16.msra.mxu0 %v4700_v30 }
  0xc4   : > { %902 = vadd.xlane.f32.xlu1 %v5591_v8  ;;  %900 = vadd.xlane.f32.xlu0 %v5596_v9 }
  0xc5   : > { %4423 = vmatpush3.bf16.msra.mxu1 %v4693_v46  ;;  %4374 = vmatprep.subr.bf16.mxu0 %v4701_v36  ;;  %v977_v46 = vmul.f32 %v5662_v32, %v5662_v32 }
  0xc6   : > { %4424 = vmatprep.subr.bf16.mxu1 %v4694_v49 }
  0xc7   : > { %4375 = vmatpush3.bf16.msra.mxu0 %v4701_v36 }
  0xc8   : > { %906 = vadd.xlane.f32.xlu1 %v5598_v10  ;;  %904 = vadd.xlane.f32.xlu0 %v5600_v11 }
  0xc9   : > { %4425 = vmatpush3.bf16.msra.mxu1 %v4694_v49  ;;  %4376 = vmatprep.subr.bf16.mxu0 %v4702_v39  ;;  %v979_v49 = vmul.f32 %v5669_v34, %v5669_v34 }
  0xca   : > { %4426 = vmatprep.subr.bf16.mxu1 %v4695_v50 }
  0xcb   : > { %4377 = vmatpush3.bf16.msra.mxu0 %v4702_v39 }
  0xcc   : > { %998 = vadd.xlane.f32.xlu1 %v957_v44  ;;  %996 = vadd.xlane.f32.xlu0 %v956_v45  ;;  %v610_v44 = vpack.c.bf16 %v5578_v3, %v5569_v1  ;;  %v611_v45 = vpack.c.bf16 %v5571_v2, %v5567_v0 }
  0xcd   : > { %4427 = vmatpush3.bf16.msra.mxu1 %v4695_v50  ;;  %4378 = vmatprep.subr.bf16.mxu0 %v4703_v42  ;;  %v978_v50 = vmul.f32 %v5671_v35, %v5671_v35 }
  0xce   : > { %4428 = vmatprep.subr.bf16.mxu1 %v4696_v51  ;;  %4382 = vmatprep.mubr.bf16.mxu0 %v610_v44 }
  0xcf   : > { %4379 = vmatpush3.bf16.msra.mxu0 %v4703_v42 }
  0xd0   : > { %1002 = vadd.xlane.f32.xlu1 %v959_v47  ;;  %1000 = vadd.xlane.f32.xlu0 %v958_v48  ;;  %v976_v47 = vmul.f32 %v5664_v33, %v5664_v33  ;;  %v612_v48 = vpack.c.bf16 %v5580_v4, %v5582_v5 }
  0xd1   : > { %4429 = vmatpush3.bf16.msra.mxu1 %v4696_v51  ;;  %4380 = vmatprep.subr.bf16.mxu0 %v4704_v43  ;;  %v613_v51 = vpack.c.bf16 %v5587_v6, %v5589_v7 }
  0xd3   : > { %4381 = vmatpush3.bf16.msra.mxu0 %v4704_v43 }
  0xd4   : > { %910 = vadd.xlane.f32.xlu1 %v5605_v12  ;;  %908 = vadd.xlane.f32.xlu0 %v5607_v13 }
  0xd6   : > { %4383 = vmatmul.mubr.bf16.vlgmr.msra.gmra.mrb[0].mxu0 %v611_v45 }
  0xd7   : > { %4386 = vmatprep.mubr.bf16.mxu0 %v612_v48  ;;  %v623_v48 = vpack.c.bf16 %v5651_v28, %v5660_v31 }
  0xd8   : > { %914 = vadd.xlane.f32.xlu1 %v5609_v14  ;;  %912 = vadd.xlane.f32.xlu0 %v5620_v17 }
  0xdc   : > { %1006 = vadd.xlane.f32.xlu1 %v961_v52  ;;  %1004 = vadd.xlane.f32.xlu0 %v960_v53  ;;  %v614_v52 = vpack.c.bf16 %v5591_v8, %v5596_v9  ;;  %v615_v53 = vpack.c.bf16 %v5598_v10, %v5600_v11 }
  0xde   : > { %4387 = vmatmul.mubr.bf16.gmra.mrb[4].mxu0 %v613_v51 }
  0xdf   : > { %4390 = vmatprep.mubr.bf16.mxu0 %v614_v52 }
  0xe0   : > { %1010 = vadd.xlane.f32.xlu1 %v963_v54  ;;  %1008 = vadd.xlane.f32.xlu0 %v962_v55  ;;  %v616_v54 = vpack.c.bf16 %v5605_v12, %v5607_v13  ;;  %v617_v55 = vpack.c.bf16 %v5609_v14, %v5620_v17 }
  0xe4   : > { %918 = vadd.xlane.f32.xlu1 %v5622_v18  ;;  %916 = vadd.xlane.f32.xlu0 %v5624_v19 }
  0xe6   : > { %4391 = vmatmul.mubr.bf16.gmra.mrb[8].mxu0 %v615_v53 }
  0xe7   : > { %4394 = vmatprep.mubr.bf16.mxu0 %v616_v54 }
  0xe8   : > { %922 = vadd.xlane.f32.xlu1 %v5629_v20  ;;  %920 = vadd.xlane.f32.xlu0 %v5631_v21 }
  0xec   : > { %1014 = vadd.xlane.f32.xlu1 %v965_v56  ;;  %1012 = vadd.xlane.f32.xlu0 %v964_v57 }
  0xee   : > { %4395 = vmatmul.mubr.bf16.gmra.mrb[12].mxu0 %v617_v55 }
  0xf0   : > { %1018 = vadd.xlane.f32.xlu1 %v967_v58  ;;  %1016 = vadd.xlane.f32.xlu0 %v966_v59  ;;  %v618_v58 = vpack.c.bf16 %v5622_v18, %v5624_v19  ;;  %v620_v18 = vpack.c.bf16 %v5633_v22, %v5638_v23 }
  0xf2   : > { %4398 = vmatprep.mubr.bf16.mxu0 %v618_v58 }
  0xf4   : > { %926 = vadd.xlane.f32.xlu1 %v5633_v22  ;;  %924 = vadd.xlane.f32.xlu0 %v5638_v23 }
  0xf8   : > { %930 = vadd.xlane.f32.xlu1 %v5640_v24  ;;  %928 = vadd.xlane.f32.xlu0 %v5642_v25 }
  0xfc   : > { %1022 = vadd.xlane.f32.xlu1 %v969_v61  ;;  %1020 = vadd.xlane.f32.xlu0 %v968_v62  ;;  %v619_v61 = vpack.c.bf16 %v5629_v20, %v5631_v21 }
  0xfe   : > { %4399 = vmatmul.mubr.bf16.gmra.mrb[16].mxu0 %v619_v61 }
  0xff   : > { %4402 = vmatprep.mubr.bf16.mxu0 %v620_v18 }
 0x100   : > { %1026 = vadd.xlane.f32.xlu1 %v971_v15  ;;  %1024 = vadd.xlane.f32.xlu0 %v970_v16 }
 0x104   : > { %934 = vadd.xlane.f32.xlu1 %v5647_v26  ;;  %932 = vadd.xlane.f32.xlu0 %v5649_v27 }
 0x106   : > { %4403 = vmatmul.mubr.bf16.gmra.mrb[20].mxu0 %v621_v29 }
 0x108   : > { %938 = vadd.xlane.f32.xlu1 %v5651_v28  ;;  %936 = vadd.xlane.f32.xlu0 %v5660_v31  ;;  %v624_v28 = vpack.c.bf16 %v5662_v32, %v5664_v33 }
 0x10c   : > { %1030 = vadd.xlane.f32.xlu1 %v973_v37  ;;  %1028 = vadd.xlane.f32.xlu0 %v972_v38  ;;  %v622_v37 = vpack.c.bf16 %v5647_v26, %v5649_v27 }
 0x10e   : > { %4406 = vmatprep.mubr.bf16.mxu0 %v622_v37 }
 0x10f   : > { %4407 = vmatmul.mubr.bf16.gmra.mrb[24].mxu0 %v623_v48 }
 0x110   : > { %1034 = vadd.xlane.f32.xlu1 %v975_v40  ;;  %1032 = vadd.xlane.f32.xlu0 %v974_v41 }
 0x111   : > { %4410 = vmatprep.mubr.bf16.mxu0 %v624_v28 }
 0x114   : > { %942 = vadd.xlane.f32.xlu1 %v5662_v32  ;;  %940 = vadd.xlane.f32.xlu0 %v5664_v33  ;;  %v5830_v32 = vld [vmem:[%s5549_s22] ss:$0 sm:$0xff] }
 0x118   : > { %946 = vadd.xlane.f32.xlu1 %v5669_v34  ;;  %944 = vadd.xlane.f32.xlu0 %v5671_v35 }
 0x11c   : > { %1038 = vadd.xlane.f32.xlu1 %v977_v46  ;;  %1036 = vadd.xlane.f32.xlu0 %v976_v47 }
 0x120   : > { %1042 = vadd.xlane.f32.xlu1 %v979_v49  ;;  %1040 = vadd.xlane.f32.xlu0 %v978_v50 }
 0x131   : > { %v889_v56 = vpop.xlane.xlu1 %888  ;;  %v885_v57 = vpop.xlane.xlu0 %884 }
 0x132   : > { %v5787_v62 = vmul.f32 0.03125, %v885_v57  ;;  %v5791_v13 = vmul.f32 0.03125, %v889_v56 }
 0x134   : > { %v1108_v19 = vmul.f32 %v5787_v62, %v5787_v62  ;;  %v1110_v22 = vmul.f32 %v5791_v13, %v5791_v13 }
 0x135   : > { %v891_v59 = vpop.xlane.xlu1 %890  ;;  %v887_v60 = vpop.xlane.xlu0 %886 }
 0x136   : > { %v5789_v63 = vmul.f32 0.03125, %v887_v60  ;;  %v5793_v14 = vmul.f32 0.03125, %v891_v59 }
 0x138   : > { %v1109_v20 = vmul.f32 %v5789_v63, %v5789_v63  ;;  %v1111_v23 = vmul.f32 %v5793_v14, %v5793_v14 }
 0x139   : > { %v983_v17 = vpop.xlane.xlu1 %982  ;;  %v981_v15 = vpop.xlane.xlu0 %980 }
 0x13a   : > { %v1077_v21 = vmul.f32 0.03125, %v983_v17  ;;  %v1076_v16 = vmul.f32 0.03125, %v981_v15  ;;  %v1205_v17 = vsub.f32 %v5578_v3, %v5789_v63  ;;  %v625_v15 = vpack.c.bf16 %v5669_v34, %v5671_v35 }
 0x13c   : > { %v1141_v30 = vsub.f32 %v1077_v21, %v1109_v20  ;;  %v1140_v36 = vsub.f32 %v1076_v16, %v1108_v19  ;;  %v1204_v21 = vsub.f32 %v5569_v1, %v5787_v62  ;;  %4411 = vmatmul.mubr.bf16.gmra.mrb[28].mxu0 %v625_v15 }
 0x13d   : > { %v987_v38 = vpop.xlane.xlu1 %986  ;;  %v985_v39 = vpop.xlane.xlu0 %984 }
 0x13e   : > { %v1173_v40 = vmax.f32 %v1141_v30, 0.0  ;;  %v1172_v41 = vmax.f32 %v1140_v36, 0.0  ;;  %v1079_v42 = vmul.f32 0.03125, %v987_v38  ;;  %v1078_v43 = vmul.f32 0.03125, %v985_v39 }
 0x140   : > { %v1237_v44 = vadd.f32 1e-05, %v1173_v40  ;;  %v1236_v24 = vadd.f32 1e-05, %v1172_v41  ;;  %v1143_v25 = vsub.f32 %v1079_v42, %v1111_v23  ;;  %v1142_v45 = vsub.f32 %v1078_v43, %v1110_v22  ;;  %v5839_v22 = vld [vmem:[%s5554_s25] ss:$0 sm:$0xff] }
 0x141   : > { %v895_v46 = vpop.xlane.xlu1 %894  ;;  %v893_v26 = vpop.xlane.xlu0 %892  ;;  %v1207_v23 = vsub.f32 %v5571_v2, %v5793_v14  ;;  %v1206_v14 = vsub.f32 %v5567_v0, %v5791_v13 }
 0x142   : > { %4753 = vrsqrt.f32 %v1237_v44  ;;  %v1175_v27 = vmax.f32 %v1143_v25, 0.0  ;;  %v1174_v47 = vmax.f32 %v1142_v45, 0.0  ;;  %v5811_v53 = vmul.f32 0.03125, %v895_v46 }
 0x143   : > { %4755 = vrsqrt.f32 %v1236_v24  ;;  %v5813_v54 = vmul.f32 0.03125, %v893_v26 }
 0x144   : > { %v1239_v49 = vadd.f32 1e-05, %v1175_v27  ;;  %v1238_v50 = vadd.f32 1e-05, %v1174_v47  ;;  %v1113_v31 = vmul.f32 %v5811_v53, %v5811_v53 }
 0x145   : > { %v899_v51 = vpop.xlane.xlu1 %898  ;;  %v897_v52 = vpop.xlane.xlu0 %896  ;;  %v1112_v59 = vmul.f32 %v5813_v54, %v5813_v54 }
 0x146   : > { %4757 = vrsqrt.f32 %v1239_v49  ;;  %v5815_v55 = vmul.f32 0.03125, %v899_v51  ;;  %v5817_v56 = vmul.f32 0.03125, %v897_v52 }
 0x147   : > { %4759 = vrsqrt.f32 %v1238_v50 }
 0x148   : > { %v1115_v16 = vmul.f32 %v5815_v55, %v5815_v55  ;;  %v1114_v3 = vmul.f32 %v5817_v56, %v5817_v56 }
 0x149   : > { %v991_v57 = vpop.xlane.xlu1 %990  ;;  %v989_v58 = vpop.xlane.xlu0 %988 }
 0x14a   : > { %v1081_v60 = vmul.f32 0.03125, %v991_v57  ;;  %v1080_v61 = vmul.f32 0.03125, %v989_v58 }
 0x14c   : > { %v4754_v18 = vpop.eup %4753  ;;  %v1145_v19 = vsub.f32 %v1081_v60, %v1113_v31  ;;  %v1144_v20 = vsub.f32 %v1080_v61, %v1112_v59 }
 0x14d   : > { %v4756_v33 = vpop.eup %4755  ;;  %v995_v63 = vpop.xlane.xlu1 %994  ;;  %v1301_v30 = vmul.f32 %v4754_v18, %v1205_v17 }
 0x14e   : > { %v993_v29 = vpop.xlane.xlu0 %992  ;;  %v1177_v34 = vmax.f32 %v1145_v19, 0.0  ;;  %v1176_v35 = vmax.f32 %v1144_v20, 0.0  ;;  %v1083_v36 = vmul.f32 0.03125, %v995_v63  ;;  %v1300_v38 = vmul.f32 %v4756_v33, %v1204_v21 }
 0x14f   : > { %v1082_v37 = vmul.f32 0.03125, %v993_v29  ;;  %v1340_v1 = vmul.f32 %v5830_v32, %v1301_v30  ;;  %v1208_v30 = vsub.f32 %v5582_v5, %v5813_v54  ;;  %v1211_v5 = vsub.f32 %v5587_v6, %v5815_v55 }
 0x150   : > { %v4758_v62 = vpop.eup %4757  ;;  %v1241_v39 = vadd.f32 1e-05, %v1177_v34  ;;  %v1240_v40 = vadd.f32 1e-05, %v1176_v35  ;;  %v1147_v41 = vsub.f32 %v1083_v36, %v1115_v16  ;;  %v1339_v24 = vmul.f32 %v5830_v32, %v1300_v38 }
 0x151   : > { %v1146_v42 = vsub.f32 %v1082_v37, %v1114_v3  ;;  %v903_v43 = vpop.xlane.xlu1 %902  ;;  %v1379_v25 = vadd.f32 %v5839_v22, %v1340_v1  ;;  %v4760_v45 = vpop.eup %4759  ;;  %v1303_v2 = vmul.f32 %v4758_v62, %v1207_v23  ;;  %v1209_v16 = vsub.f32 %v5580_v4, %v5811_v53 }
 0x152   : > { %v901_v44 = vpop.xlane.xlu0 %900  ;;  %4761 = vrsqrt.f32 %v1241_v39  ;;  %v1179_v46 = vmax.f32 %v1147_v41, 0.0  ;;  %v1378_v27 = vadd.f32 %v5839_v22, %v1339_v24  ;;  %v1302_v57 = vmul.f32 %v4760_v45, %v1206_v14 }
 0x153   : > { %v1178_v26 = vmax.f32 %v1146_v42, 0.0  ;;  %4763 = vrsqrt.f32 %v1240_v40  ;;  %v1411_v47 = vmax.f32 %v1379_v25, 0.0  ;;  %v5849_v58 = vmul.f32 0.03125, %v903_v43 }
 0x154   : > { %v1243_v48 = vadd.f32 1e-05, %v1179_v46  ;;  %v1410_v52 = vmax.f32 %v1378_v27, 0.0  ;;  %v5851_v28 = vmul.f32 0.03125, %v901_v44  ;;  %v1342_v31 = vmul.f32 %v5830_v32, %v1303_v2 }
 0x155   : > { %v1242_v49 = vadd.f32 1e-05, %v1178_v26  ;;  %v907_v50 = vpop.xlane.xlu1 %906  ;;  %v1341_v0 = vmul.f32 %v5830_v32, %v1302_v57  ;;  %v1117_v19 = vmul.f32 %v5849_v58, %v5849_v58  ;;  %v1210_v55 = vsub.f32 %v5589_v7, %v5817_v56 }
 0x156   : > { %v905_v51 = vpop.xlane.xlu0 %904  ;;  %4765 = vrsqrt.f32 %v1243_v48  ;;  %v1442_v59 = vpack.c.bf16 %v1411_v47, %v1410_v52  ;;  %v5855_v13 = vmul.f32 0.03125, %v907_v50  ;;  %v1381_v18 = vadd.f32 %v5839_v22, %v1342_v31 }
 0x157   : > { %4767 = vrsqrt.f32 %v1242_v49  ;;  %v5857_v60 = vmul.f32 0.03125, %v905_v51  ;;  %v1380_v15 = vadd.f32 %v5839_v22, %v1341_v0  ;;  %v1116_v20 = vmul.f32 %v5851_v28, %v5851_v28 }
 0x158   : > { %4430 = vmatprep.mubr.bf16.mxu1 %v1442_v59  ;;  %v1413_v63 = vmax.f32 %v1381_v18, 0.0  ;;  %v1119_v37 = vmul.f32 %v5855_v13, %v5855_v13 }
 0x159   : > { %v999_v61 = vpop.xlane.xlu1 %998  ;;  %v1412_v3 = vmax.f32 %v1380_v15, 0.0  ;;  %v1118_v23 = vmul.f32 %v5857_v60, %v5857_v60 }
 0x15a   : > { %v997_v17 = vpop.xlane.xlu0 %996  ;;  %v1085_v33 = vmul.f32 0.03125, %v999_v61 }
 0x15b   : > { %v1084_v21 = vmul.f32 0.03125, %v997_v17  ;;  %v1443_v38 = vpack.c.bf16 %v1413_v63, %v1412_v3 }
 0x15c   : > { %v4762_v29 = vpop.eup %4761  ;;  %v1149_v34 = vsub.f32 %v1085_v33, %v1117_v19 }
 0x15d   : > { %v1148_v35 = vsub.f32 %v1084_v21, %v1116_v20  ;;  %v4764_v36 = vpop.eup %4763  ;;  %v1003_v1 = vpop.xlane.xlu1 %1002  ;;  %v1305_v39 = vmul.f32 %v4762_v29, %v1209_v16  ;;  %4431 = vmatmul.mubr.bf16.vlgmr.msra.gmra.mrb[0].mxu1 %v1443_v38 }
 0x15e   : > { %v1001_v62 = vpop.xlane.xlu0 %1000  ;;  %v1181_v4 = vmax.f32 %v1149_v34, 0.0  ;;  %v1087_v40 = vmul.f32 0.03125, %v1003_v1  ;;  %v1304_v54 = vmul.f32 %v4764_v36, %v1208_v30  ;;  %v1213_v34 = vsub.f32 %v5591_v8, %v5849_v58 }
 0x15f   : > { %v1180_v53 = vmax.f32 %v1148_v35, 0.0  ;;  %v1086_v41 = vmul.f32 0.03125, %v1001_v62  ;;  %v1344_v42 = vmul.f32 %v5830_v32, %v1305_v39 }
 0x160   : > { %v4766_v43 = vpop.eup %4765  ;;  %v1245_v44 = vadd.f32 1e-05, %v1181_v4  ;;  %v1151_v25 = vsub.f32 %v1087_v40, %v1119_v37  ;;  %v1343_v2 = vmul.f32 %v5830_v32, %v1304_v54 }
 0x161   : > { %v1244_v24 = vadd.f32 1e-05, %v1180_v53  ;;  %v1150_v45 = vsub.f32 %v1086_v41, %v1118_v23  ;;  %v911_v46 = vpop.xlane.xlu1 %910  ;;  %v1383_v14 = vadd.f32 %v5839_v22, %v1344_v42  ;;  %v4768_v27 = vpop.eup %4767  ;;  %v1307_v6 = vmul.f32 %v4766_v43, %v1211_v5 }
 0x162   : > { %v909_v26 = vpop.xlane.xlu0 %908  ;;  %4769 = vrsqrt.f32 %v1245_v44  ;;  %v1183_v47 = vmax.f32 %v1151_v25, 0.0  ;;  %v1382_v49 = vadd.f32 %v5839_v22, %v1343_v2  ;;  %v1306_v0 = vmul.f32 %v4768_v27, %v1210_v55 }
 0x163   : > { %v1182_v48 = vmax.f32 %v1150_v45, 0.0  ;;  %4771 = vrsqrt.f32 %v1244_v24  ;;  %v1415_v50 = vmax.f32 %v1383_v14, 0.0  ;;  %v5881_v61 = vmul.f32 0.03125, %v911_v46 }
 0x164   : > { %v1247_v51 = vadd.f32 1e-05, %v1183_v47  ;;  %v1414_v59 = vmax.f32 %v1382_v49, 0.0  ;;  %v5883_v17 = vmul.f32 0.03125, %v909_v26  ;;  %v1346_v15 = vmul.f32 %v5830_v32, %v1307_v6 }
 0x165   : > { %v1246_v52 = vadd.f32 1e-05, %v1182_v48  ;;  %v915_v57 = vpop.xlane.xlu1 %914  ;;  %v1345_v7 = vmul.f32 %v5830_v32, %v1306_v0  ;;  %v1121_v3 = vmul.f32 %v5881_v61, %v5881_v61  ;;  %v1212_v23 = vsub.f32 %v5596_v9, %v5851_v28 }
 0x166   : > { %v913_v31 = vpop.xlane.xlu0 %912  ;;  %4773 = vrsqrt.f32 %v1247_v51  ;;  %v1444_v18 = vpack.c.bf16 %v1415_v50, %v1414_v59  ;;  %v5887_v56 = vmul.f32 0.03125, %v915_v57  ;;  %v1385_v16 = vadd.f32 %v5839_v22, %v1346_v15 }
 0x167   : > { %4775 = vrsqrt.f32 %v1246_v52  ;;  %v5889_v19 = vmul.f32 0.03125, %v913_v31  ;;  %v1384_v21 = vadd.f32 %v5839_v22, %v1345_v7  ;;  %v1120_v63 = vmul.f32 %v5883_v17, %v5883_v17 }
 0x168   : > { %4434 = vmatprep.mubr.bf16.mxu1 %v1444_v18  ;;  %v1417_v36 = vmax.f32 %v1385_v16, 0.0  ;;  %v1123_v39 = vmul.f32 %v5887_v56, %v5887_v56  ;;  %v1215_v9 = vsub.f32 %v5598_v10, %v5855_v13  ;;  %v1214_v13 = vsub.f32 %v5600_v11, %v5857_v60 }
 0x169   : > { %v1007_v20 = vpop.xlane.xlu1 %1006  ;;  %v1416_v35 = vmax.f32 %v1384_v21, 0.0  ;;  %v1122_v4 = vmul.f32 %v5889_v19, %v5889_v19 }
 0x16a   : > { %v1005_v33 = vpop.xlane.xlu0 %1004  ;;  %v1089_v29 = vmul.f32 0.03125, %v1007_v20 }
 0x16b   : > { %v1088_v30 = vmul.f32 0.03125, %v1005_v33  ;;  %v1445_v53 = vpack.c.bf16 %v1417_v36, %v1416_v35  ;;  %v1217_v35 = vsub.f32 %v5605_v12, %v5881_v61 }
 0x16c   : > { %v4770_v37 = vpop.eup %4769  ;;  %v1153_v38 = vsub.f32 %v1089_v29, %v1121_v3 }
 0x16d   : > { %v1152_v1 = vsub.f32 %v1088_v30, %v1120_v63  ;;  %v4772_v62 = vpop.eup %4771  ;;  %v1011_v40 = vpop.xlane.xlu1 %1010  ;;  %v1309_v5 = vmul.f32 %v4770_v37, %v1213_v34  ;;  %4435 = vmatmul.mubr.bf16.gmra.mrb[4].mxu1 %v1445_v53 }
 0x16e   : > { %v1009_v41 = vpop.xlane.xlu0 %1008  ;;  %v1185_v8 = vmax.f32 %v1153_v38, 0.0  ;;  %v1091_v54 = vmul.f32 0.03125, %v1011_v40  ;;  %v1308_v28 = vmul.f32 %v4772_v62, %v1212_v23  ;;  %v4817_v38 = vld [vmem:[#allocation2 + $0x60] sm:$0xff] }
 0x16f   : > { %v1184_v58 = vmax.f32 %v1152_v1, 0.0  ;;  %v1090_v42 = vmul.f32 0.03125, %v1009_v41  ;;  %v1348_v43 = vmul.f32 %v5830_v32, %v1309_v5  ;;  %v1216_v1 = vsub.f32 %v4817_v38, %v5883_v17 }
 0x170   : > { %v4774_v44 = vpop.eup %4773  ;;  %v1249_v24 = vadd.f32 1e-05, %v1185_v8  ;;  %v1155_v45 = vsub.f32 %v1091_v54, %v1123_v39  ;;  %v1347_v14 = vmul.f32 %v5830_v32, %v1308_v28 }
 0x171   : > { %v1248_v25 = vadd.f32 1e-05, %v1184_v58  ;;  %v1154_v46 = vsub.f32 %v1090_v42, %v1122_v4  ;;  %v919_v26 = vpop.xlane.xlu1 %918  ;;  %v1387_v27 = vadd.f32 %v5839_v22, %v1348_v43  ;;  %v4776_v47 = vpop.eup %4775  ;;  %v1311_v10 = vmul.f32 %v4774_v44, %v1215_v9  ;;  %v4818_v9 = vld [vmem:[#allocation2 + $0x78] sm:$0xff] }
 0x172   : > { %v917_v2 = vpop.xlane.xlu0 %916  ;;  %4777 = vrsqrt.f32 %v1249_v24  ;;  %v1187_v48 = vmax.f32 %v1155_v45, 0.0  ;;  %v1386_v55 = vadd.f32 %v5839_v22, %v1347_v14  ;;  %v1310_v59 = vmul.f32 %v4776_v47, %v1214_v13 }
 0x173   : > { %v1186_v6 = vmax.f32 %v1154_v46, 0.0  ;;  %4779 = vrsqrt.f32 %v1248_v25  ;;  %v1419_v49 = vmax.f32 %v1387_v27, 0.0  ;;  %v5913_v0 = vmul.f32 0.03125, %v919_v26 }
 0x174   : > { %v1251_v50 = vadd.f32 1e-05, %v1187_v48  ;;  %v1418_v31 = vmax.f32 %v1386_v55, 0.0  ;;  %v5915_v15 = vmul.f32 0.03125, %v917_v2  ;;  %v1350_v18 = vmul.f32 %v5830_v32, %v1311_v10  ;;  %v4819_v10 = vld [vmem:[#allocation2 + $0x70] sm:$0xff] }
 0x175   : > { %v1250_v51 = vadd.f32 1e-05, %v1186_v6  ;;  %v923_v52 = vpop.xlane.xlu1 %922  ;;  %v1349_v11 = vmul.f32 %v5830_v32, %v1310_v59  ;;  %v1125_v63 = vmul.f32 %v5913_v0, %v5913_v0  ;;  %v1219_v17 = vsub.f32 %v4818_v9, %v5887_v56 }
 0x176   : > { %v921_v57 = vpop.xlane.xlu0 %920  ;;  %4781 = vrsqrt.f32 %v1251_v50  ;;  %v1446_v7 = vpack.c.bf16 %v1419_v49, %v1418_v31  ;;  %v5919_v60 = vmul.f32 0.03125, %v923_v52  ;;  %v1389_v3 = vadd.f32 %v5839_v22, %v1350_v18 }
 0x177   : > { %4783 = vrsqrt.f32 %v1250_v51  ;;  %v5921_v20 = vmul.f32 0.03125, %v921_v57  ;;  %v1388_v16 = vadd.f32 %v5839_v22, %v1349_v11  ;;  %v1124_v29 = vmul.f32 %v5915_v15, %v5915_v15 }
 0x178   : > { %4438 = vmatprep.mubr.bf16.mxu1 %v1446_v7  ;;  %v1421_v37 = vmax.f32 %v1389_v3, 0.0  ;;  %v1127_v53 = vmul.f32 %v5919_v60, %v5919_v60  ;;  %v1218_v13 = vsub.f32 %v4819_v10, %v5889_v19 }
 0x179   : > { %v1015_v33 = vpop.xlane.xlu1 %1014  ;;  %v1420_v36 = vmax.f32 %v1388_v16, 0.0  ;;  %v1126_v40 = vmul.f32 %v5921_v20, %v5921_v20 }
 0x17a   : > { %v1013_v21 = vpop.xlane.xlu0 %1012  ;;  %v1093_v30 = vmul.f32 0.03125, %v1015_v33 }
 0x17b   : > { %v1092_v34 = vmul.f32 0.03125, %v1013_v21  ;;  %v1447_v41 = vpack.c.bf16 %v1421_v37, %v1420_v36 }
 0x17c   : > { %v4778_v23 = vpop.eup %4777  ;;  %v1157_v62 = vsub.f32 %v1093_v30, %v1125_v63 }
 0x17d   : > { %v1156_v39 = vsub.f32 %v1092_v34, %v1124_v29  ;;  %v4780_v4 = vpop.eup %4779  ;;  %v1019_v5 = vpop.xlane.xlu1 %1018  ;;  %v1313_v58 = vmul.f32 %v4778_v23, %v1217_v35  ;;  %4439 = vmatmul.mubr.bf16.gmra.mrb[8].mxu1 %v1447_v41  ;;  %v4820_v23 = vld [vmem:[#allocation2 + $0x88] sm:$0xff] }
 0x17e   : > { %v1017_v8 = vpop.xlane.xlu0 %1016  ;;  %v1189_v12 = vmax.f32 %v1157_v62, 0.0  ;;  %v1095_v54 = vmul.f32 0.03125, %v1019_v5  ;;  %v1312_v28 = vmul.f32 %v4780_v4, %v1216_v1  ;;  %v1221_v38 = vsub.f32 %v4820_v23, %v5913_v0  ;;  %v4821_v4 = vld [vmem:[#allocation2 + $0x80] sm:$0xff] }
 0x17f   : > { %v1188_v61 = vmax.f32 %v1156_v39, 0.0  ;;  %v1094_v42 = vmul.f32 0.03125, %v1017_v8  ;;  %v1352_v43 = vmul.f32 %v5830_v32, %v1313_v58 }
 0x180   : > { %v4782_v44 = vpop.eup %4781  ;;  %v1253_v24 = vadd.f32 1e-05, %v1189_v12  ;;  %v1159_v45 = vsub.f32 %v1095_v54, %v1127_v53  ;;  %v1351_v14 = vmul.f32 %v5830_v32, %v1312_v28  ;;  %v1220_v53 = vsub.f32 %v4821_v4, %v5915_v15 }
 0x181   : > { %v1252_v25 = vadd.f32 1e-05, %v1188_v61  ;;  %v1158_v46 = vsub.f32 %v1094_v42, %v1126_v40  ;;  %v927_v26 = vpop.xlane.xlu1 %926  ;;  %v1391_v27 = vadd.f32 %v5839_v22, %v1352_v43  ;;  %v4784_v47 = vpop.eup %4783  ;;  %v1315_v56 = vmul.f32 %v4782_v44, %v1219_v17  ;;  %v4822_v43 = vld [vmem:[#allocation2 + $0x98] sm:$0xff] }
 0x182   : > { %v925_v2 = vpop.xlane.xlu0 %924  ;;  %4785 = vrsqrt.f32 %v1253_v24  ;;  %v1191_v48 = vmax.f32 %v1159_v45, 0.0  ;;  %v1390_v55 = vadd.f32 %v5839_v22, %v1351_v14  ;;  %v1314_v59 = vmul.f32 %v4784_v47, %v1218_v13  ;;  %v4823_v13 = vld [vmem:[#allocation2 + $0x90] sm:$0xff] }
 0x183   : > { %v1190_v6 = vmax.f32 %v1158_v46, 0.0  ;;  %4787 = vrsqrt.f32 %v1252_v25  ;;  %v1423_v49 = vmax.f32 %v1391_v27, 0.0  ;;  %v5942_v18 = vmul.f32 0.03125, %v927_v26 }
 0x184   : > { %v1255_v50 = vadd.f32 1e-05, %v1191_v48  ;;  %v1422_v31 = vmax.f32 %v1390_v55, 0.0  ;;  %v5944_v7 = vmul.f32 0.03125, %v925_v2  ;;  %v1354_v11 = vmul.f32 %v5830_v32, %v1315_v56 }
 0x185   : > { %v1254_v51 = vadd.f32 1e-05, %v1190_v6  ;;  %v931_v52 = vpop.xlane.xlu1 %930  ;;  %v1353_v19 = vmul.f32 %v5830_v32, %v1314_v59  ;;  %v1129_v34 = vmul.f32 %v5942_v18, %v5942_v18  ;;  %v1223_v15 = vsub.f32 %v4822_v43, %v5919_v60 }
 0x186   : > { %v929_v57 = vpop.xlane.xlu0 %928  ;;  %4789 = vrsqrt.f32 %v1255_v50  ;;  %v1448_v33 = vpack.c.bf16 %v1423_v49, %v1422_v31  ;;  %v5948_v21 = vmul.f32 0.03125, %v931_v52  ;;  %v1393_v30 = vadd.f32 %v5839_v22, %v1354_v11 }
 0x187   : > { %4791 = vrsqrt.f32 %v1254_v51  ;;  %v5950_v16 = vmul.f32 0.03125, %v929_v57  ;;  %v1392_v29 = vadd.f32 %v5839_v22, %v1353_v19  ;;  %v1128_v35 = vmul.f32 %v5944_v7, %v5944_v7 }
 0x188   : > { %4442 = vmatprep.mubr.bf16.mxu1 %v1448_v33  ;;  %v1425_v62 = vmax.f32 %v1393_v30, 0.0  ;;  %v1131_v8 = vmul.f32 %v5948_v21, %v5948_v21  ;;  %v1222_v55 = vsub.f32 %v4823_v13, %v5921_v20 }
 0x189   : > { %v1023_v3 = vpop.xlane.xlu1 %1022  ;;  %v1424_v1 = vmax.f32 %v1392_v29, 0.0  ;;  %v1130_v58 = vmul.f32 %v5950_v16, %v5950_v16 }
 0x18a   : > { %v1021_v63 = vpop.xlane.xlu0 %1020  ;;  %v1097_v36 = vmul.f32 0.03125, %v1023_v3 }
 0x18b   : > { %v1096_v37 = vmul.f32 0.03125, %v1021_v63  ;;  %v1449_v12 = vpack.c.bf16 %v1425_v62, %v1424_v1 }
 0x18c   : > { %v4786_v39 = vpop.eup %4785  ;;  %v1161_v40 = vsub.f32 %v1097_v36, %v1129_v34 }
 0x18d   : > { %v1160_v41 = vsub.f32 %v1096_v37, %v1128_v35  ;;  %v4788_v5 = vpop.eup %4787  ;;  %v1027_v61 = vpop.xlane.xlu1 %1026  ;;  %v1317_v42 = vmul.f32 %v4786_v39, %v1221_v38  ;;  %4443 = vmatmul.mubr.bf16.gmra.mrb[12].mxu1 %v1449_v12  ;;  %v4824_v39 = vld [vmem:[#allocation2 + $0xa8] sm:$0xff] }
 0x18e   : > { %v1025_v54 = vpop.xlane.xlu0 %1024  ;;  %v1193_v0 = vmax.f32 %v1161_v40, 0.0  ;;  %v1099_v17 = vmul.f32 0.03125, %v1027_v61  ;;  %v1316_v44 = vmul.f32 %v4788_v5, %v1220_v53  ;;  %v1225_v4 = vsub.f32 %v4824_v39, %v5942_v18  ;;  %v4825_v5 = vld [vmem:[#allocation2 + $0xa0] sm:$0xff] }
 0x18f   : > { %v1192_v9 = vmax.f32 %v1160_v41, 0.0  ;;  %v1098_v28 = vmul.f32 0.03125, %v1025_v54  ;;  %v1356_v24 = vmul.f32 %v5830_v32, %v1317_v42 }
 0x190   : > { %v4790_v25 = vpop.eup %4789  ;;  %v1257_v45 = vadd.f32 1e-05, %v1193_v0  ;;  %v1163_v26 = vsub.f32 %v1099_v17, %v1131_v8  ;;  %v1355_v47 = vmul.f32 %v5830_v32, %v1316_v44  ;;  %v1224_v8 = vsub.f32 %v4825_v5, %v5944_v7 }
 0x191   : > { %v1256_v46 = vadd.f32 1e-05, %v1192_v9  ;;  %v1162_v2 = vsub.f32 %v1098_v28, %v1130_v58  ;;  %v935_v14 = vpop.xlane.xlu1 %934  ;;  %v1395_v48 = vadd.f32 %v5839_v22, %v1356_v24  ;;  %v4792_v6 = vpop.eup %4791  ;;  %v1319_v60 = vmul.f32 %v4790_v25, %v1223_v15  ;;  %v4826_v24 = vld [vmem:[#allocation2 + $0xb8] sm:$0xff] }
 0x192   : > { %v933_v27 = vpop.xlane.xlu0 %932  ;;  %4793 = vrsqrt.f32 %v1257_v45  ;;  %v1195_v56 = vmax.f32 %v1163_v26, 0.0  ;;  %v1394_v49 = vadd.f32 %v5839_v22, %v1355_v47  ;;  %v1318_v11 = vmul.f32 %v4792_v6, %v1222_v55  ;;  %v4827_v55 = vld [vmem:[#allocation2 + $0xb0] sm:$0xff] }
 0x193   : > { %v1194_v10 = vmax.f32 %v1162_v2, 0.0  ;;  %4795 = vrsqrt.f32 %v1256_v46  ;;  %v1427_v50 = vmax.f32 %v1395_v48, 0.0  ;;  %v5970_v33 = vmul.f32 0.03125, %v935_v14 }
 0x194   : > { %v1259_v51 = vadd.f32 1e-05, %v1195_v56  ;;  %v1426_v59 = vmax.f32 %v1394_v49, 0.0  ;;  %v5972_v19 = vmul.f32 0.03125, %v933_v27  ;;  %v1358_v3 = vmul.f32 %v5830_v32, %v1319_v60 }
 0x195   : > { %v1258_v52 = vadd.f32 1e-05, %v1194_v10  ;;  %v939_v57 = vpop.xlane.xlu1 %938  ;;  %v1357_v20 = vmul.f32 %v5830_v32, %v1318_v11  ;;  %v1133_v23 = vmul.f32 %v5970_v33, %v5970_v33  ;;  %v1227_v7 = vsub.f32 %v4826_v24, %v5948_v21 }
 0x196   : > { %v937_v31 = vpop.xlane.xlu0 %936  ;;  %4797 = vrsqrt.f32 %v1259_v51  ;;  %v1450_v63 = vpack.c.bf16 %v1427_v50, %v1426_v59  ;;  %v5976_v29 = vmul.f32 0.03125, %v939_v57  ;;  %v1397_v37 = vadd.f32 %v5839_v22, %v1358_v3 }
 0x197   : > { %4799 = vrsqrt.f32 %v1258_v52  ;;  %v5978_v30 = vmul.f32 0.03125, %v937_v31  ;;  %v1396_v36 = vadd.f32 %v5839_v22, %v1357_v20  ;;  %v1132_v38 = vmul.f32 %v5972_v19, %v5972_v19 }
 0x198   : > { %4446 = vmatprep.mubr.bf16.mxu1 %v1450_v63  ;;  %v1429_v40 = vmax.f32 %v1397_v37, 0.0  ;;  %v1135_v54 = vmul.f32 %v5976_v29, %v5976_v29  ;;  %v1226_v49 = vsub.f32 %v4827_v55, %v5950_v16 }
 0x199   : > { %v1031_v34 = vpop.xlane.xlu1 %1030  ;;  %v1428_v53 = vmax.f32 %v1396_v36, 0.0  ;;  %v1134_v42 = vmul.f32 %v5978_v30, %v5978_v30 }
 0x19a   : > { %v1029_v35 = vpop.xlane.xlu0 %1028  ;;  %v1101_v1 = vmul.f32 0.03125, %v1031_v34 }
 0x19b   : > { %v1100_v62 = vmul.f32 0.03125, %v1029_v35  ;;  %v1451_v0 = vpack.c.bf16 %v1429_v40, %v1428_v53 }
 0x19c   : > { %v4794_v41 = vpop.eup %4793  ;;  %v1165_v58 = vsub.f32 %v1101_v1, %v1133_v23 }
 0x19d   : > { %v1164_v12 = vsub.f32 %v1100_v62, %v1132_v38  ;;  %v4796_v61 = vpop.eup %4795  ;;  %v1035_v9 = vpop.xlane.xlu1 %1034  ;;  %v1321_v28 = vmul.f32 %v4794_v41, %v1225_v4  ;;  %4447 = vmatmul.mubr.bf16.gmra.mrb[16].mxu1 %v1451_v0  ;;  %v4828_v41 = vld [vmem:[#allocation2 + $0xc8] sm:$0xff] }
 0x19e   : > { %v1033_v17 = vpop.xlane.xlu0 %1032  ;;  %v1197_v18 = vmax.f32 %v1165_v58, 0.0  ;;  %v1103_v15 = vmul.f32 0.03125, %v1035_v9  ;;  %v1320_v25 = vmul.f32 %v4796_v61, %v1224_v8  ;;  %v1229_v5 = vsub.f32 %v4828_v41, %v5970_v33  ;;  %v4829_v61 = vld [vmem:[#allocation2 + $0xc0] sm:$0xff] }
 0x19f   : > { %v1196_v43 = vmax.f32 %v1164_v12, 0.0  ;;  %v1102_v44 = vmul.f32 0.03125, %v1033_v17  ;;  %v1360_v45 = vmul.f32 %v5830_v32, %v1321_v28 }
 0x1a0   : > { %v4798_v46 = vpop.eup %4797  ;;  %v1261_v26 = vadd.f32 1e-05, %v1197_v18  ;;  %v1167_v14 = vsub.f32 %v1103_v15, %v1135_v54  ;;  %v1359_v6 = vmul.f32 %v5830_v32, %v1320_v25  ;;  %v1228_v54 = vsub.f32 %v4829_v61, %v5972_v19  ;;  %v4835_v61 = vld [vmem:[#allocation2 + $0xf0] sm:$0xff] }
 0x1a1   : > { %v1260_v2 = vadd.f32 1e-05, %v1196_v43  ;;  %v1166_v27 = vsub.f32 %v1102_v44, %v1134_v42  ;;  %v943_v47 = vpop.xlane.xlu1 %942  ;;  %v1399_v56 = vadd.f32 %v5839_v22, %v1360_v45  ;;  %v4800_v10 = vpop.eup %4799  ;;  %v1323_v21 = vmul.f32 %v4798_v46, %v1227_v7  ;;  %v4830_v45 = vld [vmem:[#allocation2 + $0xd8] sm:$0xff]  ;;  %v4831_v46 = vld [vmem:[#allocation2 + $0xd0] sm:$0xff] }
 0x1a2   : > { %v941_v48 = vpop.xlane.xlu0 %940  ;;  %4801 = vrsqrt.f32 %v1261_v26  ;;  %v1199_v60 = vmax.f32 %v1167_v14, 0.0  ;;  %v1398_v50 = vadd.f32 %v5839_v22, %v1359_v6  ;;  %v1322_v3 = vmul.f32 %v4800_v10, %v1226_v49 }
 0x1a3   : > { %v1198_v13 = vmax.f32 %v1166_v27, 0.0  ;;  %4803 = vrsqrt.f32 %v1260_v2  ;;  %v1431_v51 = vmax.f32 %v1399_v56, 0.0  ;;  %v5998_v63 = vmul.f32 0.03125, %v943_v47 }
 0x1a4   : > { %v1263_v52 = vadd.f32 1e-05, %v1199_v60  ;;  %v1430_v11 = vmax.f32 %v1398_v50, 0.0  ;;  %v6000_v20 = vmul.f32 0.03125, %v941_v48  ;;  %v1362_v34 = vmul.f32 %v5830_v32, %v1323_v21 }
 0x1a5   : > { %v1262_v57 = vadd.f32 1e-05, %v1198_v13  ;;  %v947_v31 = vpop.xlane.xlu1 %946  ;;  %v1361_v16 = vmul.f32 %v5830_v32, %v1322_v3  ;;  %v1137_v39 = vmul.f32 %v5998_v63, %v5998_v63  ;;  %v1231_v19 = vsub.f32 %v4830_v45, %v5976_v29 }
 0x1a6   : > { %v945_v59 = vpop.xlane.xlu0 %944  ;;  %4805 = vrsqrt.f32 %v1263_v52  ;;  %v1452_v35 = vpack.c.bf16 %v1431_v51, %v1430_v11  ;;  %v6004_v36 = vmul.f32 0.03125, %v947_v31  ;;  %v1401_v62 = vadd.f32 %v5839_v22, %v1362_v34 }
 0x1a7   : > { %4807 = vrsqrt.f32 %v1262_v57  ;;  %v6006_v37 = vmul.f32 0.03125, %v945_v59  ;;  %v1400_v1 = vadd.f32 %v5839_v22, %v1361_v16  ;;  %v1136_v4 = vmul.f32 %v6000_v20, %v6000_v20 }
 0x1a8   : > { %4450 = vmatprep.mubr.bf16.mxu1 %v1452_v35  ;;  %v1433_v58 = vmax.f32 %v1401_v62, 0.0  ;;  %v1139_v17 = vmul.f32 %v6004_v36, %v6004_v36  ;;  %v1230_v26 = vsub.f32 %v4831_v46, %v5978_v30 }
 0x1a9   : > { %v1039_v23 = vpop.xlane.xlu1 %1038  ;;  %v1432_v8 = vmax.f32 %v1400_v1, 0.0  ;;  %v1138_v28 = vmul.f32 %v6006_v37, %v6006_v37 }
 0x1aa   : > { %v1037_v38 = vpop.xlane.xlu0 %1036  ;;  %v1105_v53 = vmul.f32 0.03125, %v1039_v23 }
 0x1ab   : > { %v1104_v40 = vmul.f32 0.03125, %v1037_v38  ;;  %v1453_v18 = vpack.c.bf16 %v1433_v58, %v1432_v8  ;;  %v4832_v38 = vld [vmem:[#allocation2 + $0xe8] sm:$0xff] }
 0x1ac   : > { %v4802_v12 = vpop.eup %4801  ;;  %v1169_v42 = vsub.f32 %v1105_v53, %v1137_v39  ;;  %v1233_v1 = vsub.f32 %v4832_v38, %v5998_v63  ;;  %v4833_v39 = vld [vmem:[#allocation2 + $0xe0] sm:$0xff]  ;;  %v4708_v38 = vld [vmem:[#allocation8 + $0x10] ss:$8 sps:$4 sm:$0xff]  }
 0x1ad   : > { %v1168_v0 = vsub.f32 %v1104_v40, %v1136_v4  ;;  %v4804_v9 = vpop.eup %4803  ;;  %v1043_v43 = vpop.xlane.xlu1 %1042  ;;  %v1325_v44 = vmul.f32 %v4802_v12, %v1229_v5  ;;  %4451 = vmatmul.mubr.bf16.gmra.mrb[20].mxu1 %v1453_v18  ;;  %v1232_v4 = vsub.f32 %v4833_v39, %v6000_v20  ;;  %v4834_v5 = vld [vmem:[#allocation2 + $0xf8] sm:$0xff]  ;;  %v4713_v39 = vld [vmem:[#allocation8 + $0x24] ss:$8 sps:$4 sm:$0xff]   ;;  %1916 = vst [vmem:[#allocation4 + $0x10] sm:$0xff] %v4708_v38 }
 0x1ae   : > { %v1041_v15 = vpop.xlane.xlu0 %1040  ;;  %v1201_v33 = vmax.f32 %v1169_v42, 0.0  ;;  %v1107_v7 = vmul.f32 0.03125, %v1043_v43  ;;  %v1324_v2 = vmul.f32 %v4804_v9, %v1228_v54  ;;  %v1235_v8 = vsub.f32 %v4834_v5, %v6004_v36  ;;  %v4720_v5 = vld [vmem:[#allocation8 + $0x50] ss:$8 sps:$4 sm:$0xff]   ;;  %1919 = vst [vmem:[#allocation4 + $0x28] sm:$0xff] %v4713_v39 }
 0x1af   : > { %v1200_v24 = vmax.f32 %v1168_v0, 0.0  ;;  %v1106_v25 = vmul.f32 0.03125, %v1041_v15  ;;  %v1364_v14 = vmul.f32 %v5830_v32, %v1325_v44  ;;  %v1234_v54 = vsub.f32 %v4835_v61, %v6006_v37  ;;  %v4726_v61 = vld [vmem:[#allocation8 + $0x70] ss:$8 sps:$4 sm:$0xff]   ;;  %1924 = vst [vmem:[#allocation4 + $0x50] sm:$0xff] %v4720_v5 }
 0x1b0   : > { %v4806_v27 = vpop.eup %4805  ;;  %v1265_v47 = vadd.f32 1e-05, %v1201_v33  ;;  %v1171_v6 = vsub.f32 %v1107_v7, %v1139_v17  ;;  %v1363_v60 = vmul.f32 %v5830_v32, %v1324_v2  ;;  %1928 = vst [vmem:[#allocation4 + $0x70] sm:$0xff] %v4726_v61 }
 0x1b1   : > { %v1264_v48 = vadd.f32 1e-05, %v1200_v24  ;;  %v1170_v56 = vsub.f32 %v1106_v25, %v1138_v28  ;;  %v4808_v10 = vpop.eup %4807  ;;  %v1403_v13 = vadd.f32 %v5839_v22, %v1364_v14  ;;  %v1327_v21 = vmul.f32 %v4806_v27, %v1231_v19  ;;  %v4384_v25 = vpop.f32.mrb[0].mxu0 }
 0x1b2   : > { %4809 = vrsqrt.f32 %v1265_v47  ;;  %v1203_v29 = vmax.f32 %v1171_v6, 0.0  ;;  %v1326_v49 = vmul.f32 %v4808_v10, %v1230_v26  ;;  %v1402_v30 = vadd.f32 %v5839_v22, %v1363_v60  ;;  %854 = vst [vmem:[#allocation13 + $0x10] sm:$0xff] %v4384_v25  ;;  %v724_v45 = vpop.f32.mrb[1].mxu0 }
 0x1b3   : > { %v1202_v55 = vmax.f32 %v1170_v56, 0.0  ;;  %4811 = vrsqrt.f32 %v1264_v48  ;;  %v1435_v50 = vmax.f32 %v1403_v13, 0.0  ;;  %v1366_v51 = vmul.f32 %v5830_v32, %v1327_v21  ;;  %852 = vst [vmem:[#allocation13] sm:$0xff] %v724_v45  ;;  %v4385_v19 = vpop.f32.mrb[2].mxu0 }
 0x1b4   : > { %v1267_v52 = vadd.f32 1e-05, %v1203_v29  ;;  %v1365_v31 = vmul.f32 %v5830_v32, %v1326_v49  ;;  %v1434_v59 = vmax.f32 %v1402_v30, 0.0  ;;  %855 = vst [vmem:[#allocation13 + $0x18] sm:$0xff] %v4385_v19  ;;  %v727_v46 = vpop.f32.mrb[3].mxu0 }
 0x1b5   : > { %v1266_v57 = vadd.f32 1e-05, %v1202_v55  ;;  %v1405_v11 = vadd.f32 %v5839_v22, %v1366_v51  ;;  %853 = vst [vmem:[#allocation13 + $0x8] sm:$0xff] %v727_v46  ;;  %v4388_v26 = vpop.f32.mrb[4].mxu0 }
 0x1b6   : > { %4813 = vrsqrt.f32 %v1267_v52  ;;  %v1404_v3 = vadd.f32 %v5839_v22, %v1365_v31  ;;  %v1454_v34 = vpack.c.bf16 %v1435_v50, %v1434_v59  ;;  %858 = vst [vmem:[#allocation13 + $0x30] sm:$0xff] %v4388_v26 }
 0x1b7   : > { %4815 = vrsqrt.f32 %v1266_v57  ;;  %v1437_v35 = vmax.f32 %v1405_v11, 0.0 }
 0x1b8   : > { %v1436_v16 = vmax.f32 %v1404_v3, 0.0  ;;  %4454 = vmatprep.mubr.bf16.mxu1 %v1454_v34 }
 0x1ba   : > { %v1455_v23 = vpack.c.bf16 %v1437_v35, %v1436_v16  ;;  %v4705_v16 = vld [vmem:[#allocation8] ss:$8 sps:$4 sm:$0xff]  }
 0x1bb   : > { %1914 = vst [vmem:[#allocation4] sm:$0xff] %v4705_v16 }
 0x1bc   : > { %v4810_v62 = vpop.eup %4809  ;;  %4455 = vmatmul.mubr.bf16.gmra.mrb[24].mxu1 %v1455_v23  ;;  %v4707_v23 = vld [vmem:[#allocation8 + $0x4] ss:$8 sps:$4 sm:$0xff]  }
 0x1bd   : > { %v4812_v53 = vpop.eup %4811  ;;  %v1329_v40 = vmul.f32 %v4810_v62, %v1233_v1  ;;  %v4710_v1 = vld [vmem:[#allocation8 + $0x14] ss:$8 sps:$4 sm:$0xff]   ;;  %v4711_v62 = vld [vmem:[#allocation8 + $0x20] ss:$8 sps:$4 sm:$0xff]   ;;  %1915 = vst [vmem:[#allocation4 + $0x8] sm:$0xff] %v4707_v23 }
 0x1be   : > { %v1328_v41 = vmul.f32 %v4812_v53, %v1232_v4  ;;  %v4714_v4 = vld [vmem:[#allocation8 + $0x30] ss:$8 sps:$4 sm:$0xff]   ;;  %v4716_v53 = vld [vmem:[#allocation8 + $0x34] ss:$8 sps:$4 sm:$0xff]   ;;  %1917 = vst [vmem:[#allocation4 + $0x18] sm:$0xff] %v4710_v1  ;;  %1918 = vst [vmem:[#allocation4 + $0x20] sm:$0xff] %v4711_v62 }
 0x1bf   : > { %v1368_v58 = vmul.f32 %v5830_v32, %v1329_v40  ;;  %v4717_v40 = vld [vmem:[#allocation8 + $0x40] ss:$8 sps:$4 sm:$0xff]   ;;  %1920 = vst [vmem:[#allocation4 + $0x30] sm:$0xff] %v4714_v4  ;;  %1921 = vst [vmem:[#allocation4 + $0x38] sm:$0xff] %v4716_v53 }
 0x1c0   : > { %v4814_v12 = vpop.eup %4813  ;;  %v1367_v42 = vmul.f32 %v5830_v32, %v1328_v41  ;;  %v4719_v41 = vld [vmem:[#allocation8 + $0x44] ss:$8 sps:$4 sm:$0xff]   ;;  %1922 = vst [vmem:[#allocation4 + $0x40] sm:$0xff] %v4717_v40 }
 0x1c1   : > { %v4816_v63 = vpop.eup %4815  ;;  %v1407_v0 = vadd.f32 %v5839_v22, %v1368_v58  ;;  %v1331_v9 = vmul.f32 %v4814_v12, %v1235_v8  ;;  %v4722_v8 = vld [vmem:[#allocation8 + $0x54] ss:$8 sps:$4 sm:$0xff]   ;;  %v4723_v58 = vld [vmem:[#allocation8 + $0x60] ss:$8 sps:$4 sm:$0xff]   ;;  %v4725_v12 = vld [vmem:[#allocation8 + $0x64] ss:$8 sps:$4 sm:$0xff]  }
 0x1c2   : > { %v1406_v20 = vadd.f32 %v5839_v22, %v1367_v42  ;;  %v1330_v17 = vmul.f32 %v4816_v63, %v1234_v54  ;;  %v4728_v54 = vld [vmem:[#allocation8 + $0x74] ss:$8 sps:$4 sm:$0xff]   ;;  %v4729_v42 = vld [vmem:[#allocation8 + $0x80] ss:$8 sps:$4 sm:$0xff]   ;;  %1923 = vst [vmem:[#allocation4 + $0x48] sm:$0xff] %v4719_v41  ;;  %1925 = vst [vmem:[#allocation4 + $0x58] sm:$0xff] %v4722_v8 }
 0x1c3   : > { %v1439_v28 = vmax.f32 %v1407_v0, 0.0  ;;  %v1370_v18 = vmul.f32 %v5830_v32, %v1331_v9  ;;  %v4731_v63 = vld [vmem:[#allocation8 + $0x84] ss:$8 sps:$4 sm:$0xff]   ;;  %v4732_v0 = vld [vmem:[#allocation8 + $0x90] ss:$8 sps:$4 sm:$0xff]   ;;  %1926 = vst [vmem:[#allocation4 + $0x60] sm:$0xff] %v4723_v58 }
 0x1c4   : > { %v1438_v43 = vmax.f32 %v1406_v20, 0.0  ;;  %v1369_v36 = vmul.f32 %v5830_v32, %v1330_v17  ;;  %v740_v32 = vpop.f32.mrb[5].mxu0  ;;  %v4734_v9 = vld [vmem:[#allocation8 + $0x94] ss:$8 sps:$4 sm:$0xff]   ;;  %1927 = vst [vmem:[#allocation4 + $0x68] sm:$0xff] %v4725_v12  ;;  %1929 = vst [vmem:[#allocation4 + $0x78] sm:$0xff] %v4728_v54 }
 0x1c5   : > { %v1409_v15 = vadd.f32 %v5839_v22, %v1370_v18  ;;  %856 = vst [vmem:[#allocation13 + $0x20] sm:$0xff] %v740_v32  ;;  %v4389_v2 = vpop.f32.mrb[6].mxu0  ;;  %v4735_v20 = vld [vmem:[#allocation8 + $0xa0] ss:$8 sps:$4 sm:$0xff]   ;;  %v4737_v17 = vld [vmem:[#allocation8 + $0xa4] ss:$8 sps:$4 sm:$0xff]  }
 0x1c6   : > { %v1456_v44 = vpack.c.bf16 %v1439_v28, %v1438_v43  ;;  %v1408_v37 = vadd.f32 %v5839_v22, %v1369_v36  ;;  %859 = vst [vmem:[#allocation13 + $0x38] sm:$0xff] %v4389_v2  ;;  %v743_v22 = vpop.f32.mrb[7].mxu0  ;;  %v4738_v28 = vld [vmem:[#allocation8 + $0xb0] ss:$8 sps:$4 sm:$0xff]   ;;  %1930 = vst [vmem:[#allocation4 + $0x80] sm:$0xff] %v4729_v42 }
 0x1c7   : > { %v1441_v33 = vmax.f32 %v1409_v15, 0.0  ;;  %857 = vst [vmem:[#allocation13 + $0x28] sm:$0xff] %v743_v22  ;;  %v4392_v14 = vpop.f32.mrb[8].mxu0  ;;  %v4740_v18 = vld [vmem:[#allocation8 + $0xb4] ss:$8 sps:$4 sm:$0xff]   ;;  %1931 = vst [vmem:[#allocation4 + $0x88] sm:$0xff] %v4731_v63 }
 0x1c8   : > { %4458 = vmatprep.mubr.bf16.mxu1 %v1456_v44  ;;  %v1440_v24 = vmax.f32 %v1408_v37, 0.0  ;;  %862 = vst [vmem:[#allocation13 + $0x50] sm:$0xff] %v4392_v14  ;;  %v756_v27 = vpop.f32.mrb[9].mxu0  ;;  %v4741_v43 = vld [vmem:[#allocation8 + $0xc0] ss:$8 sps:$4 sm:$0xff]   ;;  %1932 = vst [vmem:[#allocation4 + $0x90] sm:$0xff] %v4732_v0 }
 0x1c9   : > { %860 = vst [vmem:[#allocation13 + $0x40] sm:$0xff] %v756_v27  ;;  %v4393_v47 = vpop.f32.mrb[10].mxu0  ;;  %v4743_v36 = vld [vmem:[#allocation8 + $0xc4] ss:$8 sps:$4 sm:$0xff]   ;;  %1933 = vst [vmem:[#allocation4 + $0x98] sm:$0xff] %v4734_v9 }
 0x1ca   : > { %v1457_v7 = vpack.c.bf16 %v1441_v33, %v1440_v24  ;;  %863 = vst [vmem:[#allocation13 + $0x58] sm:$0xff] %v4393_v47  ;;  %v759_v48 = vpop.f32.mrb[11].mxu0  ;;  %v4744_v15 = vld [vmem:[#allocation8 + $0xd0] ss:$8 sps:$4 sm:$0xff]   ;;  %v4746_v44 = vld [vmem:[#allocation8 + $0xd4] ss:$8 sps:$4 sm:$0xff]  }
 0x1cb   : > { %861 = vst [vmem:[#allocation13 + $0x48] sm:$0xff] %v759_v48  ;;  %v4396_v6 = vpop.f32.mrb[12].mxu0  ;;  %v4747_v37 = vld [vmem:[#allocation8 + $0xe0] ss:$8 sps:$4 sm:$0xff]   ;;  %1934 = vst [vmem:[#allocation4 + $0xa0] sm:$0xff] %v4735_v20 }
 0x1cc   : > { %4459 = vmatmul.mubr.bf16.gmra.mrb[28].mxu1 %v1457_v7  ;;  %866 = vst [vmem:[#allocation13 + $0x70] sm:$0xff] %v4396_v6  ;;  %v772_v56 = vpop.f32.mrb[13].mxu0  ;;  %1935 = vst [vmem:[#allocation4 + $0xa8] sm:$0xff] %v4737_v17  ;;  %v4749_v33 = vld [vmem:[#allocation8 + $0xe4] ss:$8 sps:$4 sm:$0xff]  }
 0x1cd   : > { %864 = vst [vmem:[#allocation13 + $0x60] sm:$0xff] %v772_v56  ;;  %v4397_v10 = vpop.f32.mrb[14].mxu0  ;;  %1936 = vst [vmem:[#allocation4 + $0xb0] sm:$0xff] %v4738_v28  ;;  %v4750_v24 = vld [vmem:[#allocation8 + $0xf0] ss:$8 sps:$4 sm:$0xff]  }
 0x1ce   : > { %867 = vst [vmem:[#allocation13 + $0x78] sm:$0xff] %v4397_v10  ;;  %v775_v60 = vpop.f32.mrb[15].mxu0  ;;  %v4752_v7 = vld [vmem:[#allocation8 + $0xf4] ss:$8 sps:$4 sm:$0xff]   ;;  %1937 = vst [vmem:[#allocation4 + $0xb8] sm:$0xff] %v4740_v18 }
 0x1cf   : > { %865 = vst [vmem:[#allocation13 + $0x68] sm:$0xff] %v775_v60  ;;  %1938 = vst [vmem:[#allocation4 + $0xc0] sm:$0xff] %v4741_v43 }
 0x1d0   : > { %1939 = vst [vmem:[#allocation4 + $0xc8] sm:$0xff] %v4743_v36  ;;  %1940 = vst [vmem:[#allocation4 + $0xd0] sm:$0xff] %v4744_v15 }
 0x1d1   : > { %v4400_v13 = vpop.f32.mrb[16].mxu0  ;;  %1941 = vst [vmem:[#allocation4 + $0xd8] sm:$0xff] %v4746_v44  ;;  %1942 = vst [vmem:[#allocation4 + $0xe0] sm:$0xff] %v4747_v37 }
 0x1d2   : > { %870 = vst [vmem:[#allocation13 + $0x90] sm:$0xff] %v4400_v13  ;;  %v788_v21 = vpop.f32.mrb[17].mxu0  ;;  %1943 = vst [vmem:[#allocation4 + $0xe8] sm:$0xff] %v4749_v33 }
 0x1d3   : > { %868 = vst [vmem:[#allocation13 + $0x80] sm:$0xff] %v788_v21  ;;  %v4401_v29 = vpop.f32.mrb[18].mxu0  ;;  %1944 = vst [vmem:[#allocation4 + $0xf0] sm:$0xff] %v4750_v24 }
 0x1d4   : > { %871 = vst [vmem:[#allocation13 + $0x98] sm:$0xff] %v4401_v29  ;;  %v791_v55 = vpop.f32.mrb[19].mxu0  ;;  %1945 = vst [vmem:[#allocation4 + $0xf8] sm:$0xff] %v4752_v7 }
 0x1d5   : > { %869 = vst [vmem:[#allocation13 + $0x88] sm:$0xff] %v791_v55 }
 0x1d9   : > { %v4404_v49 = vpop.f32.mrb[20].mxu0 }
 0x1da   : > { %874 = vst [vmem:[#allocation13 + $0xb0] sm:$0xff] %v4404_v49  ;;  %v804_v30 = vpop.f32.mrb[21].mxu0 }
 0x1db   : > { %872 = vst [vmem:[#allocation13 + $0xa0] sm:$0xff] %v804_v30  ;;  %v4405_v50 = vpop.f32.mrb[22].mxu0 }
 0x1dc   : > { %875 = vst [vmem:[#allocation13 + $0xb8] sm:$0xff] %v4405_v50  ;;  %v807_v51 = vpop.f32.mrb[23].mxu0 }
 0x1dd   : > { %873 = vst [vmem:[#allocation13 + $0xa8] sm:$0xff] %v807_v51 }
 0x1e2   : > { %v4408_v52 = vpop.f32.mrb[24].mxu0 }
 0x1e3   : > { %878 = vst [vmem:[#allocation13 + $0xd0] sm:$0xff] %v4408_v52  ;;  %v820_v57 = vpop.f32.mrb[25].mxu0 }
 0x1e4   : > { %876 = vst [vmem:[#allocation13 + $0xc0] sm:$0xff] %v820_v57  ;;  %v4409_v31 = vpop.f32.mrb[26].mxu0 }
 0x1e5   : > { %879 = vst [vmem:[#allocation13 + $0xd8] sm:$0xff] %v4409_v31  ;;  %v823_v59 = vpop.f32.mrb[27].mxu0 }
 0x1e6   : > { %877 = vst [vmem:[#allocation13 + $0xc8] sm:$0xff] %v823_v59 }
 0x20f   : > { %v4412_v11 = vpop.f32.mrb[28].mxu0 }
 0x210   : > { %882 = vst [vmem:[#allocation13 + $0xf0] sm:$0xff] %v4412_v11  ;;  %v836_v3 = vpop.f32.mrb[29].mxu0 }
 0x211   : > { %880 = vst [vmem:[#allocation13 + $0xe0] sm:$0xff] %v836_v3  ;;  %v4413_v34 = vpop.f32.mrb[30].mxu0 }
 0x212   : > { %883 = vst [vmem:[#allocation13 + $0xf8] sm:$0xff] %v4413_v34  ;;  %v839_v35 = vpop.f32.mrb[31].mxu0 }
 0x213   : > { %881 = vst [vmem:[#allocation13 + $0xe8] sm:$0xff] %v839_v35 }
 0x230   : > { %v4432_v25 = vpop.f32.mrb[0].mxu1 }
 0x231   : > { %v1556_v45 = vpop.f32.mrb[1].mxu1 }
 0x232   : > { %v4433_v19 = vpop.f32.mrb[2].mxu1 }
 0x233   : > { %v1684_v46 = vpack.c.bf16 %v4433_v19, %v4432_v25  ;;  %v1559_v26 = vpop.f32.mrb[3].mxu1 }
 0x234   : > { %v1683_v32 = vpack.c.bf16 %v1559_v26, %v1556_v45 }
 0x235   : > { %1704 = vst [vmem:[#allocation3 + $0x8] sm:$0xff] %v1684_v46 }
 0x236   : > { %1703 = vst [vmem:[#allocation3] sm:$0xff] %v1683_v32 }
 0x240   : > { %v4436_v2 = vpop.f32.mrb[4].mxu1 }
 0x241   : > { %v1572_v22 = vpop.f32.mrb[5].mxu1 }
 0x242   : > { %v4437_v14 = vpop.f32.mrb[6].mxu1 }
 0x243   : > { %v1686_v27 = vpack.c.bf16 %v4437_v14, %v4436_v2  ;;  %v1575_v47 = vpop.f32.mrb[7].mxu1 }
 0x244   : > { %v1685_v48 = vpack.c.bf16 %v1575_v47, %v1572_v22 }
 0x245   : > { %1706 = vst [vmem:[#allocation3 + $0x18] sm:$0xff] %v1686_v27 }
 0x246   : > { %1705 = vst [vmem:[#allocation3 + $0x10] sm:$0xff] %v1685_v48 }
 0x250   : > { %v4440_v6 = vpop.f32.mrb[8].mxu1 }
 0x251   : > { %v1588_v56 = vpop.f32.mrb[9].mxu1 }
 0x252   : > { %v4441_v10 = vpop.f32.mrb[10].mxu1 }
 0x253   : > { %v1688_v60 = vpack.c.bf16 %v4441_v10, %v4440_v6  ;;  %v1591_v13 = vpop.f32.mrb[11].mxu1 }
 0x254   : > { %v1687_v21 = vpack.c.bf16 %v1591_v13, %v1588_v56 }
 0x255   : > { %1708 = vst [vmem:[#allocation3 + $0x28] sm:$0xff] %v1688_v60 }
 0x256   : > { %1707 = vst [vmem:[#allocation3 + $0x20] sm:$0xff] %v1687_v21 }
 0x260   : > { %v4444_v29 = vpop.f32.mrb[12].mxu1 }
 0x261   : > { %v1604_v55 = vpop.f32.mrb[13].mxu1 }
 0x262   : > { %v4445_v49 = vpop.f32.mrb[14].mxu1 }
 0x263   : > { %v1690_v30 = vpack.c.bf16 %v4445_v49, %v4444_v29  ;;  %v1607_v50 = vpop.f32.mrb[15].mxu1 }
 0x264   : > { %v1689_v51 = vpack.c.bf16 %v1607_v50, %v1604_v55 }
 0x265   : > { %1710 = vst [vmem:[#allocation3 + $0x38] sm:$0xff] %v1690_v30 }
 0x266   : > { %1709 = vst [vmem:[#allocation3 + $0x30] sm:$0xff] %v1689_v51 }
 0x270   : > { %v4448_v52 = vpop.f32.mrb[16].mxu1 }
 0x271   : > { %v1620_v57 = vpop.f32.mrb[17].mxu1 }
 0x272   : > { %v4449_v31 = vpop.f32.mrb[18].mxu1 }
 0x273   : > { %v1692_v59 = vpack.c.bf16 %v4449_v31, %v4448_v52  ;;  %v1623_v11 = vpop.f32.mrb[19].mxu1 }
 0x274   : > { %v1691_v3 = vpack.c.bf16 %v1623_v11, %v1620_v57 }
 0x275   : > { %1712 = vst [vmem:[#allocation3 + $0x48] sm:$0xff] %v1692_v59 }
 0x276   : > { %1711 = vst [vmem:[#allocation3 + $0x40] sm:$0xff] %v1691_v3 }
 0x280   : > { %v4452_v34 = vpop.f32.mrb[20].mxu1 }
 0x281   : > { %v1636_v35 = vpop.f32.mrb[21].mxu1 }
 0x282   : > { %v4453_v16 = vpop.f32.mrb[22].mxu1 }
 0x283   : > { %v1694_v23 = vpack.c.bf16 %v4453_v16, %v4452_v34  ;;  %v1639_v38 = vpop.f32.mrb[23].mxu1 }
 0x284   : > { %v1693_v1 = vpack.c.bf16 %v1639_v38, %v1636_v35 }
 0x285   : > { %1714 = vst [vmem:[#allocation3 + $0x58] sm:$0xff] %v1694_v23 }
 0x286   : > { %1713 = vst [vmem:[#allocation3 + $0x50] sm:$0xff] %v1693_v1 }
 0x28f   : > { %v4456_v62 = vpop.f32.mrb[24].mxu1 }
 0x290   : > { %v1652_v39 = vpop.f32.mrb[25].mxu1 }
 0x291   : > { %v4457_v4 = vpop.f32.mrb[26].mxu1 }
 0x292   : > { %v1696_v53 = vpack.c.bf16 %v4457_v4, %v4456_v62  ;;  %v1655_v40 = vpop.f32.mrb[27].mxu1 }
 0x293   : > { %v1695_v41 = vpack.c.bf16 %v1655_v40, %v1652_v39 }
 0x294   : > { %1716 = vst [vmem:[#allocation3 + $0x68] sm:$0xff] %v1696_v53 }
 0x295   : > { %1715 = vst [vmem:[#allocation3 + $0x60] sm:$0xff] %v1695_v41 }
 0x29f   : > { %v4460_v5 = vpop.f32.mrb[28].mxu1 }
 0x2a0   : > { %v1668_v8 = vpop.f32.mrb[29].mxu1 }
 0x2a1   : > { %v4461_v58 = vpop.f32.mrb[30].mxu1 }
 0x2a2   : > { %v1698_v12 = vpack.c.bf16 %v4461_v58, %v4460_v5  ;;  %v1671_v61 = vpop.f32.mrb[31].mxu1 }
 0x2a3   : > { %v1697_v54 = vpack.c.bf16 %v1671_v61, %v1668_v8 }
 0x2a4   : > { %1718 = vst [vmem:[#allocation3 + $0x78] sm:$0xff] %v1698_v12 }
 0x2a5   : > { %1717 = vst [vmem:[#allocation3 + $0x70] sm:$0xff] %v1697_v54 }
 0x2a6 PF: > { %p4126_p8 = scmp.le.s32.totalorder %s5242_s30, 0 }
 0x2a7   : > { %s1987_s10 = sshra.s32 (!%p4126_p8), %s4074_s18, 4  ;;  %v1956_v42 = vld [vmem:[#allocation4 + $0x8] sm:$0xff] (!%p4126_p8)  ;;  %v4836_v19 = vld [vmem:[#allocation11] sm:$0xff] (!%p4126_p8)   ;;  %v1958_v32 = vld [vmem:[#allocation4 + $0x18] sm:$0xff] (!%p4126_p8)  ;;  %p4137_p11 = scmp.ge.s32.totalorder (!%p4126_p8), %s5242_s30, 3 }
 0x2a8   : > { %1949 = sbr.rel (%p4126_p8) target bundleno = 1742 (0x6ce), region = 76  ;;  %s4127_s17 = sshll.u32 (!%p4126_p8), %s1987_s10, 3  ;;  %2046 = vmatprep.mubr.bf16.mxu0 (!%p4126_p8), %v1956_v42  ;;  %v1980_v43 = vld [vmem:[#allocation4 + $0xc8] sm:$0xff] (!%p4126_p8)  ;;  %v1955_v46 = vld [vmem:[#allocation4] sm:$0xff] (!%p4126_p8)  ;;  %v1982_v2 = vld [vmem:[#allocation4 + $0xd8] sm:$0xff] (!%p4126_p8) }
 0x2a9   : > { %s6045_s13 = scalar_lea.vmem (!%p4126_p8), [#allocation3], %s4127_s17  ;;  %2142 = vmatprep.mubr.bf16.mxu1 (!%p4126_p8), %v1980_v43  ;;  %v1979_v26 = vld [vmem:[#allocation4 + $0xc0] sm:$0xff] (!%p4126_p8)  ;;  %v4837_v22 = vld [vmem:[#allocation11 + $0x8] sm:$0xff] (!%p4126_p8)   ;;  %v4838_v14 = vld [vmem:[#allocation11 + $0x10] sm:$0xff] (!%p4126_p8)  }
 0x2aa   : > { %v1957_v27 = vld [vmem:[#allocation4 + $0x10] sm:$0xff] (!%p4126_p8)  ;;  %v1960_v48 = vld [vmem:[#allocation4 + $0x28] sm:$0xff] (!%p4126_p8)  ;;  %v1959_v56 = vld [vmem:[#allocation4 + $0x20] sm:$0xff] (!%p4126_p8) }
 0x2ab   : > { %v1981_v47 = vld [vmem:[#allocation4 + $0xd0] sm:$0xff] (!%p4126_p8)  ;;  %v1984_v6 = vld [vmem:[#allocation4 + $0xe8] sm:$0xff] (!%p4126_p8)  ;;  %v1983_v10 = vld [vmem:[#allocation4 + $0xe0] sm:$0xff] (!%p4126_p8) }
 0x2ac   : > { %v1999_v63 = vld [vmem:[%s6045_s13 + $0x40] sm:$0xff] (!%p4126_p8)  ;;  %v2000_v9 = vld [vmem:[%s6045_s13 + $0x48] sm:$0xff] (!%p4126_p8)  ;;  %v2001_v17 = vld [vmem:[%s6045_s13 + $0x50] sm:$0xff] (!%p4126_p8) }
 0x2ad   : > { %v1991_v0 = vld [vmem:[%s6045_s13] sm:$0xff] (!%p4126_p8)  ;;  %4206 = vmatprep.subr.bf16.mxu0 (!%p4126_p8), %v1999_v63  ;;  %4558 = vmatprep.subr.bf16.mxu1 (!%p4126_p8), %v1999_v63  ;;  %v1992_v20 = vld [vmem:[%s6045_s13 + $0x8] sm:$0xff] (!%p4126_p8)  ;;  %v1993_v28 = vld [vmem:[%s6045_s13 + $0x10] sm:$0xff] (!%p4126_p8) }
 0x2ae   : > { %4207 = vmatpush3.bf16.msra.mxu0 (!%p4126_p8), %v1991_v0  ;;  %4566 = vmatpush3.bf16.msra.mxu1 (!%p4126_p8), %v1991_v0  ;;  %v2002_v18 = vld [vmem:[%s6045_s13 + $0x58] sm:$0xff] (!%p4126_p8)  ;;  %v2003_v15 = vld [vmem:[%s6045_s13 + $0x60] sm:$0xff] (!%p4126_p8)  ;;  %v2004_v37 = vld [vmem:[%s6045_s13 + $0x68] sm:$0xff] (!%p4126_p8) }
 0x2af   : > { %4208 = vmatprep.subr.bf16.mxu0 %v2000_v9  ;;  %4559 = vmatprep.subr.bf16.mxu1 %v2000_v9  ;;  %v1994_v36 = vld [vmem:[%s6045_s13 + $0x18] sm:$0xff]  ;;  %v1995_v44 = vld [vmem:[%s6045_s13 + $0x20] sm:$0xff]  ;;  %v1996_v33 = vld [vmem:[%s6045_s13 + $0x28] sm:$0xff] }
 0x2b0   : > { %v2005_v24 = vld [vmem:[%s6045_s13 + $0x70] sm:$0xff]  ;;  %v2006_v25 = vld [vmem:[%s6045_s13 + $0x78] sm:$0xff]  ;;  %v1964_v55 = vld [vmem:[#allocation4 + $0x48] sm:$0xff] }
 0x2b1   : > { %v1997_v7 = vld [vmem:[%s6045_s13 + $0x30] sm:$0xff]  ;;  %v1998_v45 = vld [vmem:[%s6045_s13 + $0x38] sm:$0xff]  ;;  %v1963_v49 = vld [vmem:[#allocation4 + $0x40] sm:$0xff] }
 0x2b2   : > { %4209 = vmatpush3.bf16.msra.mxu0 %v1992_v20  ;;  %4567 = vmatpush3.bf16.msra.mxu1 %v1992_v20  ;;  %v1962_v60 = vld [vmem:[#allocation4 + $0x38] sm:$0xff]  ;;  %v1961_v21 = vld [vmem:[#allocation4 + $0x30] sm:$0xff]  ;;  %v1968_v51 = vld [vmem:[#allocation4 + $0x68] sm:$0xff] }
 0x2b3   : > { %4210 = vmatprep.subr.bf16.mxu0 %v2001_v17  ;;  %4560 = vmatprep.subr.bf16.mxu1 %v2001_v17  ;;  %v1986_v13 = vld [vmem:[#allocation4 + $0xf8] sm:$0xff]  ;;  %v1985_v29 = vld [vmem:[#allocation4 + $0xf0] sm:$0xff]  ;;  %v1967_v52 = vld [vmem:[#allocation4 + $0x60] sm:$0xff] }
 0x2b4   : > { %v1966_v30 = vld [vmem:[#allocation4 + $0x58] sm:$0xff]  ;;  %v1965_v50 = vld [vmem:[#allocation4 + $0x50] sm:$0xff]  ;;  %v1972_v59 = vld [vmem:[#allocation4 + $0x88] sm:$0xff] }
 0x2b5   : > { %v1970_v57 = vld [vmem:[#allocation4 + $0x78] sm:$0xff]  ;;  %v1969_v31 = vld [vmem:[#allocation4 + $0x70] sm:$0xff]  ;;  %v1971_v11 = vld [vmem:[#allocation4 + $0x80] sm:$0xff] }
 0x2b6   : > { %4211 = vmatpush3.bf16.msra.mxu0 %v1993_v28  ;;  %4568 = vmatpush3.bf16.msra.mxu1 %v1993_v28  ;;  %v1974_v3 = vld [vmem:[#allocation4 + $0x98] sm:$0xff]  ;;  %v1973_v34 = vld [vmem:[#allocation4 + $0x90] sm:$0xff]  ;;  %v1976_v35 = vld [vmem:[#allocation4 + $0xa8] sm:$0xff] }
 0x2b7   : > { %4212 = vmatprep.subr.bf16.mxu0 %v2002_v18  ;;  %4561 = vmatprep.subr.bf16.mxu1 %v2002_v18  ;;  %v1975_v16 = vld [vmem:[#allocation4 + $0xa0] sm:$0xff]  ;;  %v1978_v23 = vld [vmem:[#allocation4 + $0xb8] sm:$0xff]  ;;  %v1977_v1 = vld [vmem:[#allocation4 + $0xb0] sm:$0xff] }
 0x2b8   : > { %v4839_v38 = vld [vmem:[#allocation11 + $0x18] sm:$0xff]   ;;  %v4840_v62 = vld [vmem:[#allocation11 + $0x20] sm:$0xff]   ;;  %v4841_v39 = vld [vmem:[#allocation11 + $0x28] sm:$0xff]  }
 0x2b9   : > { %v4842_v4 = vld [vmem:[#allocation11 + $0x30] sm:$0xff]   ;;  %v4843_v53 = vld [vmem:[#allocation11 + $0x38] sm:$0xff]   ;;  %v6068_v5 = vld [vmem:[%s530_s20] ss:$0 sm:$0xff] }
 0x2ba   : > { %4213 = vmatpush3.bf16.msra.mxu0 %v1994_v36  ;;  %4569 = vmatpush3.bf16.msra.mxu1 %v1994_v36  ;;  %v2176_v63 = vld [vmem:[#allocation2] sm:$0xff]  ;;  %v2177_v36 = vld [vmem:[#allocation2 + $0x8] sm:$0xff] }
 0x2bb   : > { %4214 = vmatprep.subr.bf16.mxu0 %v2003_v15  ;;  %4562 = vmatprep.subr.bf16.mxu1 %v2003_v15  ;;  %v2200_v9 = vld [vmem:[#allocation2 + $0xc0] sm:$0xff]  ;;  %v2201_v15 = vld [vmem:[#allocation2 + $0xc8] sm:$0xff] }
 0x2be   : > { %4215 = vmatpush3.bf16.msra.mxu0 %v1995_v44  ;;  %4570 = vmatpush3.bf16.msra.mxu1 %v1995_v44 }
 0x2bf   : > { %4216 = vmatprep.subr.bf16.mxu0 %v2004_v37  ;;  %4563 = vmatprep.subr.bf16.mxu1 %v2004_v37 }
 0x2c2   : > { %4217 = vmatpush3.bf16.msra.mxu0 %v1996_v33  ;;  %4571 = vmatpush3.bf16.msra.mxu1 %v1996_v33 }
 0x2c3   : > { %4218 = vmatprep.subr.bf16.mxu0 %v2005_v24  ;;  %4564 = vmatprep.subr.bf16.mxu1 %v2005_v24 }
 0x2c6   : > { %4219 = vmatpush3.bf16.msra.mxu0 %v1997_v7  ;;  %4572 = vmatpush3.bf16.msra.mxu1 %v1997_v7 }
 0x2c7   : > { %4220 = vmatprep.subr.bf16.mxu0 %v2006_v25  ;;  %4565 = vmatprep.subr.bf16.mxu1 %v2006_v25 }
 0x2ca   : > { %4221 = vmatpush3.bf16.msra.mxu0 %v1998_v45  ;;  %4573 = vmatpush3.bf16.msra.mxu1 %v1998_v45 }
 0x2cb   : > { %4462 = vmatprep.subr.bf16.mxu1 %v4836_v19 }
 0x2cd   : > { %2047 = vmatmul.mubr.bf16.vlgmr.msra.gmra.mrb[0].mxu0 %v1955_v46  ;;  %2143 = vmatmul.mubr.bf16.vlgmr.msra.gmra.mrb[0].mxu1 %v1979_v26 }
 0x2ce   : > { %2054 = vmatprep.mubr.bf16.mxu0 %v1958_v32  ;;  %2150 = vmatprep.mubr.bf16.mxu1 %v1982_v2 }
 0x2cf   : > { %4463 = vmatpush3.bf16.msra.mxu1 %v4836_v19 }
 0x2d0   : > { %4464 = vmatprep.subr.bf16.mxu1 %v4837_v22 }
 0x2d3   : > { %4465 = vmatpush3.bf16.msra.mxu1 %v4837_v22 }
 0x2d4   : > { %4466 = vmatprep.subr.bf16.mxu1 %v4838_v14 }
 0x2d5   : > { %2055 = vmatmul.mubr.bf16.gmra.mrb[4].mxu0 %v1957_v27  ;;  %2151 = vmatmul.mubr.bf16.gmra.mrb[4].mxu1 %v1981_v47 }
 0x2d6   : > { %2062 = vmatprep.mubr.bf16.mxu0 %v1960_v48  ;;  %2158 = vmatprep.mubr.bf16.mxu1 %v1984_v6  ;;  %v2178_v48 = vld [vmem:[#allocation2 + $0x10] sm:$0xff] }
 0x2d7   : > { %4467 = vmatpush3.bf16.msra.mxu1 %v4838_v14 }
 0x2d8   : > { %4468 = vmatprep.subr.bf16.mxu1 %v4839_v38 }
 0x2db   : > { %4469 = vmatpush3.bf16.msra.mxu1 %v4839_v38 }
 0x2dc   : > { %4470 = vmatprep.subr.bf16.mxu1 %v4840_v62 }
 0x2dd   : > { %2063 = vmatmul.mubr.bf16.gmra.mrb[8].mxu0 %v1959_v56  ;;  %2159 = vmatmul.mubr.bf16.gmra.mrb[8].mxu1 %v1983_v10  ;;  %v2202_v56 = vld [vmem:[#allocation2 + $0xd0] sm:$0xff] }
 0x2de   : > { %2070 = vmatprep.mubr.bf16.mxu0 %v1962_v60  ;;  %2166 = vmatprep.mubr.bf16.mxu1 %v1986_v13 }
 0x2df   : > { %4471 = vmatpush3.bf16.msra.mxu1 %v4840_v62 }
 0x2e0   : > { %4472 = vmatprep.subr.bf16.mxu1 %v4841_v39 }
 0x2e3   : > { %4473 = vmatpush3.bf16.msra.mxu1 %v4841_v39  ;;  %v2180_v39 = vld [vmem:[#allocation2 + $0x20] sm:$0xff] }
 0x2e4   : > { %4474 = vmatprep.subr.bf16.mxu1 %v4842_v4 }
 0x2e5   : > { %2071 = vmatmul.mubr.bf16.gmra.mrb[12].mxu0 %v1961_v21  ;;  %2167 = vmatmul.mubr.bf16.gmra.mrb[12].mxu1 %v1985_v29 }
 0x2e6   : > { %2078 = vmatprep.mubr.bf16.mxu0 %v1964_v55  ;;  %v2179_v55 = vld [vmem:[#allocation2 + $0x18] sm:$0xff] }
 0x2e7   : > { %4475 = vmatpush3.bf16.msra.mxu1 %v4842_v4 }
 0x2e8   : > { %4476 = vmatprep.subr.bf16.mxu1 %v4843_v53 }
 0x2eb   : > { %4477 = vmatpush3.bf16.msra.mxu1 %v4843_v53  ;;  %v2204_v53 = vld [vmem:[#allocation2 + $0xe0] sm:$0xff] }
 0x2ed   : > { %2079 = vmatmul.mubr.bf16.gmra.mrb[16].mxu0 %v1963_v49  ;;  %v2203_v49 = vld [vmem:[#allocation2 + $0xd8] sm:$0xff] }
 0x2ee   : > { %2086 = vmatprep.mubr.bf16.mxu0 %v1966_v30 }
 0x2f5   : > { %2087 = vmatmul.mubr.bf16.gmra.mrb[20].mxu0 %v1965_v50 }
 0x2f6   : > { %2094 = vmatprep.mubr.bf16.mxu0 %v1968_v51 }
 0x2fd   : > { %2095 = vmatmul.mubr.bf16.gmra.mrb[24].mxu0 %v1967_v52 }
 0x2fe   : > { %2102 = vmatprep.mubr.bf16.mxu0 %v1970_v57 }
 0x305   : > { %2103 = vmatmul.mubr.bf16.gmra.mrb[28].mxu0 %v1969_v31 }
 0x306   : > { %2110 = vmatprep.mubr.bf16.mxu0 %v1972_v59 }
 0x30d   : > { %2111 = vmatmul.mubr.bf16.gmra.mrb[32].mxu0 %v1971_v11 }
 0x30e   : > { %2118 = vmatprep.mubr.bf16.mxu0 %v1974_v3 }
 0x315   : > { %2119 = vmatmul.mubr.bf16.gmra.mrb[36].mxu0 %v1973_v34 }
 0x316   : > { %2126 = vmatprep.mubr.bf16.mxu0 %v1976_v35 }
 0x31d   : > { %2127 = vmatmul.mubr.bf16.gmra.mrb[40].mxu0 %v1975_v16 }
 0x31e   : > { %2134 = vmatprep.mubr.bf16.mxu0 %v1978_v23 }
 0x325   : > { %2135 = vmatmul.mubr.bf16.gmra.mrb[44].mxu0 %v1977_v1 }
 0x3a0   : > { %v4222_v40 = vpop.f32.mrb[0].mxu0  ;;  %v4294_v41 = vpop.f32.mrb[0].mxu1 }
 0x3a1   : > { %v4223_v8 = vpop.f32.mrb[1].mxu0  ;;  %v4295_v58 = vpop.f32.mrb[1].mxu1 }
 0x3a2   : > { %v4224_v12 = vadd.f32 %v4223_v8, %v4222_v40  ;;  %v4225_v61 = vpop.f32.mrb[2].mxu0  ;;  %v4296_v54 = vadd.f32 %v4295_v58, %v4294_v41  ;;  %v4297_v42 = vpop.f32.mrb[2].mxu1 }
 0x3a3   : > { %v4226_v0 = vpop.f32.mrb[3].mxu0  ;;  %v4298_v20 = vpop.f32.mrb[3].mxu1 }
 0x3a4   : > { %v2049_v17 = vadd.f32 %v4224_v12, %v6068_v5  ;;  %v4227_v28 = vadd.f32 %v4226_v0, %v4225_v61  ;;  %v2145_v18 = vadd.f32 %v4296_v54, %v6068_v5  ;;  %v4299_v43 = vadd.f32 %v4298_v20, %v4297_v42  ;;  %v2181_v61 = vld [vmem:[#allocation2 + $0x28] sm:$0xff] }
 0x3a5   : > { %v2205_v54 = vld [vmem:[#allocation2 + $0xe8] sm:$0xff] }
 0x3a6   : > { %v6072_v44 = vadd.f32 %v2176_v63, %v2049_v17  ;;  %v2052_v37 = vadd.f32 %v4227_v28, %v6068_v5  ;;  %v6075_v33 = vadd.f32 %v2200_v9, %v2145_v18  ;;  %v2148_v24 = vadd.f32 %v4299_v43, %v6068_v5 }
 0x3a8   : > { %2240 = vst [vmem:[#allocation2] sm:$0xff] %v6072_v44  ;;  %v6079_v7 = vadd.f32 %v2177_v36, %v2052_v37  ;;  %v4228_v25 = vpop.f32.mrb[4].mxu0  ;;  %2264 = vst [vmem:[#allocation2 + $0xc0] sm:$0xff] %v6075_v33  ;;  %v6082_v45 = vadd.f32 %v2201_v15, %v2148_v24  ;;  %v4300_v19 = vpop.f32.mrb[4].mxu1  ;;  %2614 = vadd.xlane.f32.xlu0 (!%p4137_p11), %v6072_v44 }
 0x3a9   : > { %v4229_v46 = vpop.f32.mrb[5].mxu0  ;;  %v4301_v26 = vpop.f32.mrb[5].mxu1 }
 0x3aa   : > { %2241 = vst [vmem:[#allocation2 + $0x8] sm:$0xff] %v6079_v7  ;;  %v4230_v32 = vadd.f32 %v4229_v46, %v4228_v25  ;;  %v4231_v2 = vpop.f32.mrb[6].mxu0  ;;  %v2305_v22 = vpack.c.bf16 %v6079_v7, %v6072_v44  ;;  %2265 = vst [vmem:[#allocation2 + $0xc8] sm:$0xff] %v6082_v45  ;;  %v4302_v14 = vadd.f32 %v4301_v26, %v4300_v19  ;;  %v4303_v27 = vpop.f32.mrb[6].mxu1  ;;  %v2182_v26 = vld [vmem:[#allocation2 + $0x30] sm:$0xff] }
 0x3ab   : > { %v2317_v47 = vpack.c.bf16 %v6082_v45, %v6075_v33  ;;  %v4232_v6 = vpop.f32.mrb[7].mxu0  ;;  %v4304_v10 = vpop.f32.mrb[7].mxu1 }
 0x3ac   : > { %v2057_v60 = vadd.f32 %v4230_v32, %v6068_v5  ;;  %v4233_v13 = vadd.f32 %v4232_v6, %v4231_v2  ;;  %4478 = vmatprep.mubr.bf16.mxu1 %v2305_v22  ;;  %v2153_v21 = vadd.f32 %v4302_v14, %v6068_v5  ;;  %v4305_v29 = vadd.f32 %v4304_v10, %v4303_v27  ;;  %v2206_v2 = vld [vmem:[#allocation2 + $0xf0] sm:$0xff]  ;;  %v2207_v10 = vld [vmem:[#allocation2 + $0xf8] sm:$0xff] }
 0x3ad   : > { %2616 = vadd.xlane.f32.xlu0 (!%p4137_p11), %v6079_v7 }
 0x3ae   : > { %v6092_v30 = vadd.f32 %v2178_v48, %v2057_v60  ;;  %v2060_v50 = vadd.f32 %v4233_v13, %v6068_v5  ;;  %v6095_v51 = vadd.f32 %v2202_v56, %v2153_v21  ;;  %v2156_v52 = vadd.f32 %v4305_v29, %v6068_v5  ;;  %v2183_v56 = vld [vmem:[#allocation2 + $0x38] sm:$0xff] }
 0x3b0   : > { %2242 = vst [vmem:[#allocation2 + $0x10] sm:$0xff] %v6092_v30  ;;  %v6099_v57 = vadd.f32 %v2179_v55, %v2060_v50  ;;  %v4234_v31 = vpop.f32.mrb[8].mxu0  ;;  %2266 = vst [vmem:[#allocation2 + $0xd0] sm:$0xff] %v6095_v51  ;;  %v6102_v59 = vadd.f32 %v2203_v49, %v2156_v52  ;;  %v4306_v11 = vpop.f32.mrb[8].mxu1 }
 0x3b1   : > { %v4235_v3 = vpop.f32.mrb[9].mxu0  ;;  %v4307_v34 = vpop.f32.mrb[9].mxu1  ;;  %2618 = vadd.xlane.f32.xlu0 (!%p4137_p11), %v6092_v30 }
 0x3b2   : > { %2243 = vst [vmem:[#allocation2 + $0x18] sm:$0xff] %v6099_v57  ;;  %v2306_v35 = vpack.c.bf16 %v6099_v57, %v6092_v30  ;;  %v4236_v16 = vadd.f32 %v4235_v3, %v4234_v31  ;;  %v4237_v23 = vpop.f32.mrb[10].mxu0  ;;  %2267 = vst [vmem:[#allocation2 + $0xd8] sm:$0xff] %v6102_v59  ;;  %v4308_v38 = vadd.f32 %v4307_v34, %v4306_v11  ;;  %v4309_v1 = vpop.f32.mrb[10].mxu1 }
 0x3b3   : > { %v2318_v62 = vpack.c.bf16 %v6102_v59, %v6095_v51  ;;  %v4238_v4 = vpop.f32.mrb[11].mxu0  ;;  %v4310_v40 = vpop.f32.mrb[11].mxu1 }
 0x3b4   : > { %v2065_v41 = vadd.f32 %v4236_v16, %v6068_v5  ;;  %v4239_v8 = vadd.f32 %v4238_v4, %v4237_v23  ;;  %4479 = vmatmul.mubr.bf16.vlgmr.msra.gmra.mrb[16].mxu1 %v2306_v35  ;;  %v2161_v58 = vadd.f32 %v4308_v38, %v6068_v5  ;;  %v4311_v12 = vadd.f32 %v4310_v40, %v4309_v1  ;;  %v2184_v35 = vld [vmem:[#allocation2 + $0x40] sm:$0xff]  ;;  %v2185_v1 = vld [vmem:[#allocation2 + $0x48] sm:$0xff] }
 0x3b6   : > { %v6112_v42 = vadd.f32 %v2180_v39, %v2065_v41  ;;  %v2068_v63 = vadd.f32 %v4239_v8, %v6068_v5  ;;  %v6115_v0 = vadd.f32 %v2204_v53, %v2161_v58  ;;  %v2164_v9 = vadd.f32 %v4311_v12, %v6068_v5 }
 0x3b8   : > { %2244 = vst [vmem:[#allocation2 + $0x20] sm:$0xff] %v6112_v42  ;;  %v6119_v20 = vadd.f32 %v2181_v61, %v2068_v63  ;;  %v4240_v17 = vpop.f32.mrb[12].mxu0  ;;  %2268 = vst [vmem:[#allocation2 + $0xe0] sm:$0xff] %v6115_v0  ;;  %v6122_v28 = vadd.f32 %v2205_v54, %v2164_v9  ;;  %v4312_v18 = vpop.f32.mrb[12].mxu1  ;;  %v2186_v61 = vld [vmem:[#allocation2 + $0x50] sm:$0xff] }
 0x3b9   : > { %v4241_v43 = vpop.f32.mrb[13].mxu0  ;;  %v4313_v36 = vpop.f32.mrb[13].mxu1 }
 0x3ba   : > { %2245 = vst [vmem:[#allocation2 + $0x28] sm:$0xff] %v6119_v20  ;;  %v4242_v15 = vadd.f32 %v4241_v43, %v4240_v17  ;;  %v4243_v37 = vpop.f32.mrb[14].mxu0  ;;  %v2307_v24 = vpack.c.bf16 %v6119_v20, %v6112_v42  ;;  %2269 = vst [vmem:[#allocation2 + $0xe8] sm:$0xff] %v6122_v28  ;;  %v4314_v25 = vadd.f32 %v4313_v36, %v4312_v18  ;;  %v4315_v19 = vpop.f32.mrb[14].mxu1  ;;  %v2187_v17 = vld [vmem:[#allocation2 + $0x58] sm:$0xff] }
 0x3bb   : > { %v2319_v46 = vpack.c.bf16 %v6122_v28, %v6115_v0  ;;  %v4244_v32 = vpop.f32.mrb[15].mxu0  ;;  %v4316_v22 = vpop.f32.mrb[15].mxu1 }
 0x3bc   : > { %v2073_v14 = vadd.f32 %v4242_v15, %v6068_v5  ;;  %v4245_v27 = vadd.f32 %v4244_v32, %v4243_v37  ;;  %4482 = vmatprep.mubr.bf16.mxu1 %v2307_v24  ;;  %v2169_v48 = vadd.f32 %v4314_v25, %v6068_v5  ;;  %v4317_v6 = vadd.f32 %v4316_v22, %v4315_v19 }
 0x3be   : > { %v6132_v60 = vadd.f32 %v2182_v26, %v2073_v14  ;;  %v2076_v13 = vadd.f32 %v4245_v27, %v6068_v5  ;;  %v6135_v21 = vadd.f32 %v2206_v2, %v2169_v48  ;;  %v2172_v29 = vadd.f32 %v4317_v6, %v6068_v5  ;;  %v2188_v26 = vld [vmem:[#allocation2 + $0x60] sm:$0xff]  ;;  %v2189_v14 = vld [vmem:[#allocation2 + $0x68] sm:$0xff] }
 0x3c0   : > { %2246 = vst [vmem:[#allocation2 + $0x30] sm:$0xff] %v6132_v60  ;;  %v6139_v55 = vadd.f32 %v2183_v56, %v2076_v13  ;;  %v4246_v49 = vpop.f32.mrb[16].mxu0  ;;  %2270 = vst [vmem:[#allocation2 + $0xf0] sm:$0xff] %v6135_v21  ;;  %v6142_v50 = vadd.f32 %v2207_v10, %v2172_v29 }
 0x3c1   : > { %v4247_v52 = vpop.f32.mrb[17].mxu0 }
 0x3c2   : > { %2247 = vst [vmem:[#allocation2 + $0x38] sm:$0xff] %v6139_v55  ;;  %v4248_v31 = vadd.f32 %v4247_v52, %v4246_v49  ;;  %v4249_v11 = vpop.f32.mrb[18].mxu0  ;;  %v2308_v3 = vpack.c.bf16 %v6139_v55, %v6132_v60  ;;  %2271 = vst [vmem:[#allocation2 + $0xf8] sm:$0xff] %v6142_v50  ;;  %v2320_v34 = vpack.c.bf16 %v6142_v50, %v6135_v21  ;;  %v2190_v52 = vld [vmem:[#allocation2 + $0x70] sm:$0xff] }
 0x3c3   : > { %v4250_v16 = vpop.f32.mrb[19].mxu0 }
 0x3c4   : > { %v2081_v23 = vadd.f32 %v4248_v31, %v6068_v5  ;;  %v4251_v38 = vadd.f32 %v4250_v16, %v4249_v11  ;;  %4483 = vmatmul.mubr.bf16.gmra.mrb[20].mxu1 %v2308_v3 }
 0x3c6   : > { %v6151_v39 = vadd.f32 %v2184_v35, %v2081_v23  ;;  %v2084_v4 = vadd.f32 %v4251_v38, %v6068_v5  ;;  %v2191_v35 = vld [vmem:[#allocation2 + $0x78] sm:$0xff] }
 0x3c8   : > { %2248 = vst [vmem:[#allocation2 + $0x40] sm:$0xff] %v6151_v39  ;;  %v6155_v53 = vadd.f32 %v2185_v1, %v2084_v4  ;;  %v4252_v40 = vpop.f32.mrb[20].mxu0 }
 0x3c9   : > { %v4253_v41 = vpop.f32.mrb[21].mxu0 }
 0x3ca   : > { %2249 = vst [vmem:[#allocation2 + $0x48] sm:$0xff] %v6155_v53  ;;  %v4254_v8 = vadd.f32 %v4253_v41, %v4252_v40  ;;  %v4255_v58 = vpop.f32.mrb[22].mxu0  ;;  %v2309_v12 = vpack.c.bf16 %v6155_v53, %v6151_v39 }
 0x3cb   : > { %v4256_v54 = vpop.f32.mrb[23].mxu0 }
 0x3cc   : > { %v2089_v63 = vadd.f32 %v4254_v8, %v6068_v5  ;;  %v4257_v9 = vadd.f32 %v4256_v54, %v4255_v58  ;;  %4486 = vmatprep.mubr.bf16.mxu1 %v2309_v12  ;;  %v2192_v58 = vld [vmem:[#allocation2 + $0x80] sm:$0xff] }
 0x3ce   : > { %v6161_v18 = vadd.f32 %v2186_v61, %v2089_v63  ;;  %v2092_v43 = vadd.f32 %v4257_v9, %v6068_v5  ;;  %v2193_v63 = vld [vmem:[#allocation2 + $0x88] sm:$0xff] }
 0x3d0   : > { %2250 = vst [vmem:[#allocation2 + $0x50] sm:$0xff] %v6161_v18  ;;  %v6165_v36 = vadd.f32 %v2187_v17, %v2092_v43  ;;  %v4258_v15 = vpop.f32.mrb[24].mxu0 }
 0x3d1   : > { %v4259_v37 = vpop.f32.mrb[25].mxu0 }
 0x3d2   : > { %2251 = vst [vmem:[#allocation2 + $0x58] sm:$0xff] %v6165_v36  ;;  %v4260_v24 = vadd.f32 %v4259_v37, %v4258_v15  ;;  %v4261_v25 = vpop.f32.mrb[26].mxu0  ;;  %v2310_v19 = vpack.c.bf16 %v6165_v36, %v6161_v18 }
 0x3d3   : > { %v4262_v32 = vpop.f32.mrb[27].mxu0 }
 0x3d4   : > { %v2097_v2 = vadd.f32 %v4260_v24, %v6068_v5  ;;  %v4263_v22 = vadd.f32 %v4262_v32, %v4261_v25  ;;  %4487 = vmatmul.mubr.bf16.gmra.mrb[24].mxu1 %v2310_v19 }
 0x3d6   : > { %v6171_v27 = vadd.f32 %v2188_v26, %v2097_v2  ;;  %v2100_v48 = vadd.f32 %v4263_v22, %v6068_v5  ;;  %v2194_v26 = vld [vmem:[#allocation2 + $0x90] sm:$0xff] }
 0x3d8   : > { %2252 = vst [vmem:[#allocation2 + $0x60] sm:$0xff] %v6171_v27  ;;  %v6175_v6 = vadd.f32 %v2189_v14, %v2100_v48  ;;  %v4264_v56 = vpop.f32.mrb[28].mxu0  ;;  %v2195_v14 = vld [vmem:[#allocation2 + $0x98] sm:$0xff] }
 0x3d9   : > { %v4265_v10 = vpop.f32.mrb[29].mxu0 }
 0x3da   : > { %2253 = vst [vmem:[#allocation2 + $0x68] sm:$0xff] %v6175_v6  ;;  %v4266_v13 = vadd.f32 %v4265_v10, %v4264_v56  ;;  %v4267_v29 = vpop.f32.mrb[30].mxu0  ;;  %v2311_v49 = vpack.c.bf16 %v6175_v6, %v6171_v27 }
 0x3db   : > { %v4268_v31 = vpop.f32.mrb[31].mxu0 }
 0x3dc   : > { %v2105_v11 = vadd.f32 %v4266_v13, %v6068_v5  ;;  %v4269_v3 = vadd.f32 %v4268_v31, %v4267_v29  ;;  %4490 = vmatprep.mubr.bf16.mxu1 %v2311_v49 }
 0x3de   : > { %v6181_v16 = vadd.f32 %v2190_v52, %v2105_v11  ;;  %v2108_v23 = vadd.f32 %v4269_v3, %v6068_v5  ;;  %v2196_v11 = vld [vmem:[#allocation2 + $0xa0] sm:$0xff] }
 0x3e0   : > { %2254 = vst [vmem:[#allocation2 + $0x70] sm:$0xff] %v6181_v16  ;;  %v6185_v38 = vadd.f32 %v2191_v35, %v2108_v23  ;;  %v4270_v1 = vpop.f32.mrb[32].mxu0 }
 0x3e1   : > { %v4271_v4 = vpop.f32.mrb[33].mxu0 }
 0x3e2   : > { %2255 = vst [vmem:[#allocation2 + $0x78] sm:$0xff] %v6185_v38  ;;  %v4272_v40 = vadd.f32 %v4271_v4, %v4270_v1  ;;  %v4273_v41 = vpop.f32.mrb[34].mxu0  ;;  %v2312_v8 = vpack.c.bf16 %v6185_v38, %v6181_v16  ;;  %v2197_v1 = vld [vmem:[#allocation2 + $0xa8] sm:$0xff] }
 0x3e3   : > { %v4274_v12 = vpop.f32.mrb[35].mxu0 }
 0x3e4   : > { %v2113_v61 = vadd.f32 %v4272_v40, %v6068_v5  ;;  %v4275_v54 = vadd.f32 %v4274_v12, %v4273_v41  ;;  %4491 = vmatmul.mubr.bf16.gmra.mrb[28].mxu1 %v2312_v8 }
 0x3e6   : > { %v6191_v9 = vadd.f32 %v2192_v58, %v2113_v61  ;;  %v2116_v17 = vadd.f32 %v4275_v54, %v6068_v5 }
 0x3e8   : > { %2256 = vst [vmem:[#allocation2 + $0x80] sm:$0xff] %v6191_v9  ;;  %v6195_v43 = vadd.f32 %v2193_v63, %v2116_v17  ;;  %v4276_v15 = vpop.f32.mrb[36].mxu0  ;;  %v2198_v63 = vld [vmem:[#allocation2 + $0xb0] sm:$0xff]  ;;  %2646 = vadd.xlane.f32.xlu1 (!%p4137_p11), %v6191_v9 }
 0x3e9   : > { %v4277_v37 = vpop.f32.mrb[37].mxu0 }
 0x3ea   : > { %2257 = vst [vmem:[#allocation2 + $0x88] sm:$0xff] %v6195_v43  ;;  %v4278_v24 = vadd.f32 %v4277_v37, %v4276_v15  ;;  %v4279_v25 = vpop.f32.mrb[38].mxu0  ;;  %v2313_v19 = vpack.c.bf16 %v6195_v43, %v6191_v9 }
 0x3eb   : > { %v4280_v32 = vpop.f32.mrb[39].mxu0 }
 0x3ec   : > { %v2121_v2 = vadd.f32 %v4278_v24, %v6068_v5  ;;  %v4281_v22 = vadd.f32 %v4280_v32, %v4279_v25  ;;  %4494 = vmatprep.mubr.bf16.mxu1 %v2313_v19  ;;  %v2199_v24 = vld [vmem:[#allocation2 + $0xb8] sm:$0xff]  ;;  %2648 = vadd.xlane.f32.xlu1 (!%p4137_p11), %v6195_v43 }
 0x3ee   : > { %v6201_v48 = vadd.f32 %v2194_v26, %v2121_v2  ;;  %v2124_v56 = vadd.f32 %v4281_v22, %v6068_v5  ;;  %v2273_v2 = vld [vmem:[#allocation13] sm:$0xff] }
 0x3f0   : > { %2258 = vst [vmem:[#allocation2 + $0x90] sm:$0xff] %v6201_v48  ;;  %v6205_v10 = vadd.f32 %v2195_v14, %v2124_v56  ;;  %v4282_v13 = vpop.f32.mrb[40].mxu0  ;;  %v2276_v14 = vld [vmem:[#allocation13 + $0x18] sm:$0xff]  ;;  %2620 = vadd.xlane.f32.xlu1 (!%p4137_p11), %v6099_v57  ;;  %2650 = vadd.xlane.f32.xlu0 (!%p4137_p11), %v6201_v48 }
 0x3f1   : > { %v4283_v29 = vpop.f32.mrb[41].mxu0 }
 0x3f2   : > { %2259 = vst [vmem:[#allocation2 + $0x98] sm:$0xff] %v6205_v10  ;;  %v4284_v49 = vadd.f32 %v4283_v29, %v4282_v13  ;;  %v4285_v52 = vpop.f32.mrb[42].mxu0  ;;  %v2314_v31 = vpack.c.bf16 %v6205_v10, %v6201_v48  ;;  %v2274_v29 = vld [vmem:[#allocation13 + $0x8] sm:$0xff] }
 0x3f3   : > { %v4286_v3 = vpop.f32.mrb[43].mxu0 }
 0x3f4   : > { %v2129_v35 = vadd.f32 %v4284_v49, %v6068_v5  ;;  %v4287_v23 = vadd.f32 %v4286_v3, %v4285_v52  ;;  %4495 = vmatmul.mubr.bf16.gmra.mrb[32].mxu1 %v2314_v31  ;;  %2652 = vadd.xlane.f32.xlu1 (!%p4137_p11), %v6205_v10 }
 0x3f6   : > { %v6211_v4 = vadd.f32 %v2196_v11, %v2129_v35  ;;  %v2132_v40 = vadd.f32 %v4287_v23, %v6068_v5  ;;  %v2277_v11 = vld [vmem:[#allocation13 + $0x20] sm:$0xff] }
 0x3f8   : > { %2260 = vst [vmem:[#allocation2 + $0xa0] sm:$0xff] %v6211_v4  ;;  %v6215_v41 = vadd.f32 %v2197_v1, %v2132_v40  ;;  %v4288_v8 = vpop.f32.mrb[44].mxu0  ;;  %v2278_v1 = vld [vmem:[#allocation13 + $0x28] sm:$0xff] }
 0x3f9   : > { %v4289_v58 = vpop.f32.mrb[45].mxu0 }
 0x3fa   : > { %2261 = vst [vmem:[#allocation2 + $0xa8] sm:$0xff] %v6215_v41  ;;  %v4290_v12 = vadd.f32 %v4289_v58, %v4288_v8  ;;  %v4291_v61 = vpop.f32.mrb[46].mxu0  ;;  %v2315_v54 = vpack.c.bf16 %v6215_v41, %v6211_v4 }
 0x3fb   : > { %v4292_v17 = vpop.f32.mrb[47].mxu0 }
 0x3fc   : > { %v2137_v15 = vadd.f32 %v4290_v12, %v6068_v5  ;;  %v4293_v37 = vadd.f32 %v4292_v17, %v4291_v61  ;;  %4498 = vmatprep.mubr.bf16.mxu1 %v2315_v54  ;;  %v2283_v54 = vld [vmem:[#allocation13 + $0x50] sm:$0xff] }
 0x3fe   : > { %v6221_v25 = vadd.f32 %v2198_v63, %v2137_v15  ;;  %v2140_v19 = vadd.f32 %v4293_v37, %v6068_v5  ;;  %v2275_v5 = vld [vmem:[#allocation13 + $0x10] sm:$0xff]  ;;  %v2281_v63 = vld [vmem:[#allocation13 + $0x40] sm:$0xff]  ;;  %v2284_v15 = vld [vmem:[#allocation13 + $0x58] sm:$0xff] }
 0x400   : > { %2262 = vst [vmem:[#allocation2 + $0xb0] sm:$0xff] %v6221_v25  ;;  %v6225_v26 = vadd.f32 %v2199_v24, %v2140_v19  ;;  %v2282_v19 = vld [vmem:[#allocation13 + $0x48] sm:$0xff] }
 0x402   : > { %2263 = vst [vmem:[#allocation2 + $0xb8] sm:$0xff] %v6225_v26  ;;  %v2316_v32 = vpack.c.bf16 %v6225_v26, %v6221_v25 }
 0x404   : > { %4499 = vmatmul.mubr.bf16.gmra.mrb[36].mxu1 %v2316_v32 }
 0x405   : > { %4502 = vmatprep.mubr.bf16.mxu1 %v2317_v47 }
 0x40c   : > { %4503 = vmatmul.mubr.bf16.gmra.mrb[40].mxu1 %v2318_v62 }
 0x40d   : > { %4506 = vmatprep.mubr.bf16.mxu1 %v2319_v46  ;;  %v2279_v46 = vld [vmem:[#allocation13 + $0x30] sm:$0xff] }
 0x414   : > { %4507 = vmatmul.mubr.bf16.gmra.mrb[44].mxu1 %v2320_v34  ;;  %v2280_v34 = vld [vmem:[#allocation13 + $0x38] sm:$0xff] }
 0x487   : > { %v4480_v22 = vpop.f32.mrb[16].mxu1 }
 0x488   : > { %v2548_v56 = vadd.f32 %v4480_v22, %v2275_v5  ;;  %v2419_v13 = vpop.f32.mrb[17].mxu1 }
 0x489   : > { %v2546_v47 = vadd.f32 %v2419_v13, %v2273_v2  ;;  %v4481_v49 = vpop.f32.mrb[18].mxu1  ;;  %v2285_v13 = vld [vmem:[#allocation13 + $0x60] sm:$0xff] }
 0x48a   : > { %2580 = vst [vmem:[#allocation13 + $0x10] sm:$0xff] %v2548_v56  ;;  %v2549_v52 = vadd.f32 %v4481_v49, %v2276_v14  ;;  %v2422_v62 = vpop.f32.mrb[19].mxu1  ;;  %v2287_v56 = vld [vmem:[#allocation13 + $0x70] sm:$0xff] }
 0x48b   : > { %2578 = vst [vmem:[#allocation13] sm:$0xff] %v2546_v47  ;;  %v2547_v31 = vadd.f32 %v2422_v62, %v2274_v29  ;;  %v2288_v47 = vld [vmem:[#allocation13 + $0x78] sm:$0xff]  ;;  %v2286_v62 = vld [vmem:[#allocation13 + $0x68] sm:$0xff] }
 0x48c   : > { %2581 = vst [vmem:[#allocation13 + $0x18] sm:$0xff] %v2549_v52 }
 0x48d   : > { %2579 = vst [vmem:[#allocation13 + $0x8] sm:$0xff] %v2547_v31 }
 0x497   : > { %v4484_v3 = vpop.f32.mrb[20].mxu1 }
 0x498   : > { %v2552_v35 = vadd.f32 %v4484_v3, %v2279_v46  ;;  %v2435_v23 = vpop.f32.mrb[21].mxu1 }
 0x499   : > { %v2550_v40 = vadd.f32 %v2435_v23, %v2277_v11  ;;  %v4485_v8 = vpop.f32.mrb[22].mxu1  ;;  %v2289_v23 = vld [vmem:[#allocation13 + $0x80] sm:$0xff] }
 0x49a   : > { %2584 = vst [vmem:[#allocation13 + $0x30] sm:$0xff] %v2552_v35  ;;  %v2553_v58 = vadd.f32 %v4485_v8, %v2280_v34  ;;  %v2438_v12 = vpop.f32.mrb[23].mxu1  ;;  %v2291_v35 = vld [vmem:[#allocation13 + $0x90] sm:$0xff] }
 0x49b   : > { %2582 = vst [vmem:[#allocation13 + $0x20] sm:$0xff] %v2550_v40  ;;  %v2551_v61 = vadd.f32 %v2438_v12, %v2278_v1  ;;  %v2292_v40 = vld [vmem:[#allocation13 + $0x98] sm:$0xff]  ;;  %v2290_v12 = vld [vmem:[#allocation13 + $0x88] sm:$0xff] }
 0x49c   : > { %2585 = vst [vmem:[#allocation13 + $0x38] sm:$0xff] %v2553_v58 }
 0x49d   : > { %2583 = vst [vmem:[#allocation13 + $0x28] sm:$0xff] %v2551_v61 }
 0x4a7   : > { %v4488_v17 = vpop.f32.mrb[24].mxu1 }
 0x4a8   : > { %v2556_v37 = vadd.f32 %v4488_v17, %v2283_v54  ;;  %v2451_v24 = vpop.f32.mrb[25].mxu1 }
 0x4a9   : > { %v2554_v32 = vadd.f32 %v2451_v24, %v2281_v63  ;;  %v4489_v5 = vpop.f32.mrb[26].mxu1  ;;  %v2293_v24 = vld [vmem:[#allocation13 + $0xa0] sm:$0xff] }
 0x4aa   : > { %2588 = vst [vmem:[#allocation13 + $0x50] sm:$0xff] %v2556_v37  ;;  %v2557_v2 = vadd.f32 %v4489_v5, %v2284_v15  ;;  %v2454_v22 = vpop.f32.mrb[27].mxu1  ;;  %v2295_v37 = vld [vmem:[#allocation13 + $0xb0] sm:$0xff] }
 0x4ab   : > { %2586 = vst [vmem:[#allocation13 + $0x40] sm:$0xff] %v2554_v32  ;;  %v2555_v14 = vadd.f32 %v2454_v22, %v2282_v19  ;;  %v2296_v32 = vld [vmem:[#allocation13 + $0xb8] sm:$0xff]  ;;  %v2294_v22 = vld [vmem:[#allocation13 + $0xa8] sm:$0xff] }
 0x4ac   : > { %2589 = vst [vmem:[#allocation13 + $0x58] sm:$0xff] %v2557_v2 }
 0x4ad   : > { %2587 = vst [vmem:[#allocation13 + $0x48] sm:$0xff] %v2555_v14 }
 0x4b7   : > { %v4492_v29 = vpop.f32.mrb[28].mxu1 }
 0x4b8   : > { %v2560_v49 = vadd.f32 %v4492_v29, %v2287_v56  ;;  %v2467_v52 = vpop.f32.mrb[29].mxu1 }
 0x4b9   : > { %v2558_v31 = vadd.f32 %v2467_v52, %v2285_v13  ;;  %v4493_v46 = vpop.f32.mrb[30].mxu1  ;;  %v2297_v52 = vld [vmem:[#allocation13 + $0xc0] sm:$0xff] }
 0x4ba   : > { %2592 = vst [vmem:[#allocation13 + $0x70] sm:$0xff] %v2560_v49  ;;  %v2561_v11 = vadd.f32 %v4493_v46, %v2288_v47  ;;  %v2470_v3 = vpop.f32.mrb[31].mxu1  ;;  %v2299_v49 = vld [vmem:[#allocation13 + $0xd0] sm:$0xff] }
 0x4bb   : > { %2590 = vst [vmem:[#allocation13 + $0x60] sm:$0xff] %v2558_v31  ;;  %v2559_v34 = vadd.f32 %v2470_v3, %v2286_v62  ;;  %v2300_v31 = vld [vmem:[#allocation13 + $0xd8] sm:$0xff]  ;;  %v2298_v3 = vld [vmem:[#allocation13 + $0xc8] sm:$0xff] }
 0x4bc   : > { %2593 = vst [vmem:[#allocation13 + $0x78] sm:$0xff] %v2561_v11 }
 0x4bd   : > { %2591 = vst [vmem:[#allocation13 + $0x68] sm:$0xff] %v2559_v34 }
 0x4c7   : > { %v4496_v1 = vpop.f32.mrb[32].mxu1 }
 0x4c8   : > { %v2564_v8 = vadd.f32 %v4496_v1, %v2291_v35  ;;  %v2483_v58 = vpop.f32.mrb[33].mxu1 }
 0x4c9   : > { %v2562_v61 = vadd.f32 %v2483_v58, %v2289_v23  ;;  %v4497_v54 = vpop.f32.mrb[34].mxu1  ;;  %v2301_v58 = vld [vmem:[#allocation13 + $0xe0] sm:$0xff] }
 0x4ca   : > { %2596 = vst [vmem:[#allocation13 + $0x90] sm:$0xff] %v2564_v8  ;;  %v2565_v63 = vadd.f32 %v4497_v54, %v2292_v40  ;;  %v2486_v17 = vpop.f32.mrb[35].mxu1  ;;  %v2303_v8 = vld [vmem:[#allocation13 + $0xf0] sm:$0xff] }
 0x4cb   : > { %2594 = vst [vmem:[#allocation13 + $0x80] sm:$0xff] %v2562_v61  ;;  %v2563_v15 = vadd.f32 %v2486_v17, %v2290_v12  ;;  %v2304_v61 = vld [vmem:[#allocation13 + $0xf8] sm:$0xff]  ;;  %v2302_v17 = vld [vmem:[#allocation13 + $0xe8] sm:$0xff] }
 0x4cc   : > { %2597 = vst [vmem:[#allocation13 + $0x98] sm:$0xff] %v2565_v63 }
 0x4cd   : > { %2595 = vst [vmem:[#allocation13 + $0x88] sm:$0xff] %v2563_v15 }
 0x4d7   : > { %v4500_v19 = vpop.f32.mrb[36].mxu1 }
 0x4d8   : > { %v2568_v5 = vadd.f32 %v4500_v19, %v2295_v37  ;;  %v2499_v2 = vpop.f32.mrb[37].mxu1 }
 0x4d9   : > { %v2566_v14 = vadd.f32 %v2499_v2, %v2293_v24  ;;  %v4501_v56 = vpop.f32.mrb[38].mxu1  ;;  %v2678_v2 = vmul.f32 (!%p4137_p11), %v6072_v44, %v6072_v44 }
 0x4da   : > { %2600 = vst [vmem:[#allocation13 + $0xb0] sm:$0xff] %v2568_v5  ;;  %v2569_v13 = vadd.f32 %v4501_v56, %v2296_v32  ;;  %v2502_v29 = vpop.f32.mrb[39].mxu1  ;;  %v2679_v5 = vmul.f32 (!%p4137_p11), %v6079_v7, %v6079_v7  ;;  %v2681_v56 = vmul.f32 (!%p4137_p11), %v6099_v57, %v6099_v57 }
 0x4db   : > { %2598 = vst [vmem:[#allocation13 + $0xa0] sm:$0xff] %v2566_v14  ;;  %v2567_v47 = vadd.f32 %v2502_v29, %v2294_v22  ;;  %2710 = vadd.xlane.f32.xlu0 (!%p4137_p11), %v2678_v2  ;;  %v2695_v22 = vmul.f32 (!%p4137_p11), %v6195_v43, %v6195_v43  ;;  %v2694_v14 = vmul.f32 (!%p4137_p11), %v6191_v9, %v6191_v9 }
 0x4dc   : > { %2601 = vst [vmem:[#allocation13 + $0xb8] sm:$0xff] %v2569_v13  ;;  %2712 = vadd.xlane.f32.xlu1 (!%p4137_p11), %v2679_v5  ;;  %v2680_v13 = vmul.f32 (!%p4137_p11), %v6092_v30, %v6092_v30  ;;  %v2697_v29 = vmul.f32 (!%p4137_p11), %v6205_v10, %v6205_v10  ;;  %v2691_v5 = vmul.f32 (!%p4137_p11), %v6175_v6, %v6175_v6 }
 0x4dd   : > { %2599 = vst [vmem:[#allocation13 + $0xa8] sm:$0xff] %v2567_v47  ;;  %v2696_v47 = vmul.f32 (!%p4137_p11), %v6201_v48, %v6201_v48  ;;  %v2690_v2 = vmul.f32 (!%p4137_p11), %v6171_v27, %v6171_v27 }
 0x4df   : > { %v4504_v62 = vpop.f32.mrb[40].mxu1  ;;  %2742 = vadd.xlane.f32.xlu0 (!%p4137_p11), %v2694_v14  ;;  %v2706_v14 = vmul.f32 (!%p4137_p11), %v6115_v0, %v6115_v0 }
 0x4e0   : > { %v2572_v46 = vadd.f32 %v4504_v62, %v2299_v49  ;;  %v2515_v11 = vpop.f32.mrb[41].mxu1  ;;  %2744 = vadd.xlane.f32.xlu1 (!%p4137_p11), %v2695_v22  ;;  %v4844_v49 = vld [vmem:[%s5531_s23] sm:$0xff] (!%p4137_p11)   ;;  %v4846_v62 = vld [vmem:[%s5531_s23 + $0x10] sm:$0xff] (!%p4137_p11)   ;;  %v2707_v22 = vmul.f32 (!%p4137_p11), %v6122_v28, %v6122_v28 }
 0x4e1   : > { %v2570_v34 = vadd.f32 %v2515_v11, %v2297_v52  ;;  %v4505_v35 = vpop.f32.mrb[42].mxu1  ;;  %4510 = vmatprep.subr.bf16.mxu0 (!%p4137_p11), %v4844_v49  ;;  %4574 = vmatprep.subr.bf16.mxu1 (!%p4137_p11), %v4844_v49  ;;  %v4845_v52 = vld [vmem:[%s5531_s23 + $0x8] sm:$0xff] (!%p4137_p11)   ;;  %v4847_v11 = vld [vmem:[%s5531_s23 + $0x18] sm:$0xff] (!%p4137_p11)  }
 0x4e2   : > { %2604 = vst [vmem:[#allocation13 + $0xd0] sm:$0xff] %v2572_v46  ;;  %v2573_v23 = vadd.f32 %v4505_v35, %v2300_v31  ;;  %v2518_v1 = vpop.f32.mrb[43].mxu1  ;;  %4511 = vmatpush3.bf16.msra.mxu0 (!%p4137_p11), %v4844_v49  ;;  %4582 = vmatpush3.bf16.msra.mxu1 (!%p4137_p11), %v4844_v49  ;;  %v2683_v31 = vmul.f32 (!%p4137_p11), %v6119_v20, %v6119_v20  ;;  %v4848_v35 = vld [vmem:[%s5531_s23 + $0x20] sm:$0xff] (!%p4137_p11)   ;;  %v2647_v49 = vpop.xlane.xlu1 (!%p4137_p11), %2646 }
 0x4e3   : > { %2602 = vst [vmem:[#allocation13 + $0xc0] sm:$0xff] %v2570_v34  ;;  %v2571_v40 = vadd.f32 %v2518_v1, %v2298_v3  ;;  %2714 = vadd.xlane.f32.xlu0 (!%p4137_p11), %v2680_v13  ;;  %4512 = vmatprep.subr.bf16.mxu0 (!%p4137_p11), %v4845_v52  ;;  %v2682_v46 = vmul.f32 (!%p4137_p11), %v6112_v42, %v6112_v42 }
 0x4e4   : > { %2605 = vst [vmem:[#allocation13 + $0xd8] sm:$0xff] %v2573_v23  ;;  %2716 = vadd.xlane.f32.xlu1 (!%p4137_p11), %v2681_v56  ;;  %4575 = vmatprep.subr.bf16.mxu1 (!%p4137_p11), %v4845_v52  ;;  %v2699_v3 = vmul.f32 (!%p4137_p11), %v6215_v41, %v6215_v41  ;;  %v2698_v34 = vmul.f32 (!%p4137_p11), %v6211_v4, %v6211_v4 }
 0x4e5   : > { %2603 = vst [vmem:[#allocation13 + $0xc8] sm:$0xff] %v2571_v40  ;;  %v2685_v23 = vmul.f32 (!%p4137_p11), %v6139_v55, %v6139_v55  ;;  %v2684_v1 = vmul.f32 (!%p4137_p11), %v6132_v60, %v6132_v60  ;;  %v4849_v40 = vld [vmem:[%s5531_s23 + $0x28] sm:$0xff] (!%p4137_p11)   ;;  %v2693_v56 = vmul.f32 (!%p4137_p11), %v6185_v38, %v6185_v38  ;;  %v2692_v13 = vmul.f32 (!%p4137_p11), %v6181_v16, %v6181_v16 }
 0x4e6   : > { %4513 = vmatpush3.bf16.msra.mxu0 (!%p4137_p11), %v4845_v52  ;;  %4583 = vmatpush3.bf16.msra.mxu1 (!%p4137_p11), %v4845_v52  ;;  %v2615_v52 = vpop.xlane.xlu0 (!%p4137_p11), %2614 }
 0x4e7   : > { %v4508_v12 = vpop.f32.mrb[44].mxu1  ;;  %2613 = sbr.rel (%p4137_p11) target bundleno = 1742 (0x6ce), region = 80  ;;  %2746 = vadd.xlane.f32.xlu0 (!%p4137_p11), %v2696_v47  ;;  %4514 = vmatprep.subr.bf16.mxu0 (!%p4137_p11), %v4846_v62  ;;  %v2708_v47 = vmul.f32 (!%p4137_p11), %v6135_v21, %v6135_v21 }
 0x4e8   : > { %v2576_v54 = vadd.f32 %v4508_v12, %v2303_v8  ;;  %v2531_v63 = vpop.f32.mrb[45].mxu1  ;;  %2748 = vadd.xlane.f32.xlu1 (!%p4137_p11), %v2697_v29  ;;  %4576 = vmatprep.subr.bf16.mxu1 (!%p4137_p11), %v4846_v62  ;;  %v2701_v8 = vmul.f32 (!%p4137_p11), %v6225_v26, %v6225_v26  ;;  %v4850_v12 = vld [vmem:[%s5531_s23 + $0x30] sm:$0xff] (!%p4137_p11)   ;;  %v2709_v29 = vmul.f32 (!%p4137_p11), %v6142_v50, %v6142_v50 }
 0x4e9   : > { %v2574_v15 = vadd.f32 %v2531_v63, %v2301_v58  ;;  %v4509_v37 = vpop.f32.mrb[46].mxu1  ;;  %v2700_v58 = vmul.f32 (!%p4137_p11), %v6221_v25, %v6221_v25  ;;  %v2686_v63 = vmul.f32 (!%p4137_p11), %v6151_v39, %v6151_v39 }
 0x4ea   : > { %2608 = vst [vmem:[#allocation13 + $0xf0] sm:$0xff] %v2576_v54  ;;  %v2577_v24 = vadd.f32 %v4509_v37, %v2304_v61  ;;  %v2534_v19 = vpop.f32.mrb[47].mxu1  ;;  %4515 = vmatpush3.bf16.msra.mxu0 (!%p4137_p11), %v4846_v62  ;;  %4584 = vmatpush3.bf16.msra.mxu1 (!%p4137_p11), %v4846_v62  ;;  %v4851_v61 = vld [vmem:[%s5531_s23 + $0x38] sm:$0xff] (!%p4137_p11)   ;;  %v2687_v54 = vmul.f32 (!%p4137_p11), %v6155_v53, %v6155_v53  ;;  %v2649_v62 = vpop.xlane.xlu1 (!%p4137_p11), %2648  ;;  %s3429_s23 = sshra.s32 (!%p4137_p11), %s5563_s15, 4 }
 0x4eb   : > { %2606 = vst [vmem:[#allocation13 + $0xe0] sm:$0xff] %v2574_v15  ;;  %v2575_v32 = vadd.f32 %v2534_v19, %v2302_v17  ;;  %2622 = vadd.xlane.f32.xlu0 (!%p4137_p11), %v6112_v42  ;;  %4516 = vmatprep.subr.bf16.mxu0 (!%p4137_p11), %v4847_v11  ;;  %v2703_v17 = vmul.f32 (!%p4137_p11), %v6082_v45, %v6082_v45  ;;  %s4148_s1 = sshll.u32 (!%p4137_p11), %s3429_s23, 3 }
 0x4ec   : > { %2609 = vst [vmem:[#allocation13 + $0xf8] sm:$0xff] %v2577_v24  ;;  %2624 = vadd.xlane.f32.xlu1 (!%p4137_p11), %v6119_v20  ;;  %4577 = vmatprep.subr.bf16.mxu1 (!%p4137_p11), %v4847_v11  ;;  %v2702_v15 = vmul.f32 (!%p4137_p11), %v6075_v33, %v6075_v33  ;;  %v2689_v37 = vmul.f32 (!%p4137_p11), %v6165_v36, %v6165_v36 }
 0x4ed   : > { %2607 = vst [vmem:[#allocation13 + $0xe8] sm:$0xff] %v2575_v32  ;;  %v2688_v24 = vmul.f32 (!%p4137_p11), %v6161_v18, %v6161_v18  ;;  %v2705_v19 = vmul.f32 (!%p4137_p11), %v6102_v59, %v6102_v59  ;;  %v2704_v32 = vmul.f32 (!%p4137_p11), %v6095_v51, %v6095_v51 }
 0x4ee   : > { %4517 = vmatpush3.bf16.msra.mxu0 %v4847_v11  ;;  %4585 = vmatpush3.bf16.msra.mxu1 %v4847_v11 }
 0x4ef   : > { %2654 = vadd.xlane.f32.xlu0 %v6211_v4  ;;  %4518 = vmatprep.subr.bf16.mxu0 %v4848_v35 }
 0x4f0   : > { %2656 = vadd.xlane.f32.xlu1 %v6215_v41  ;;  %4578 = vmatprep.subr.bf16.mxu1 %v4848_v35 }
 0x4f2   : > { %4519 = vmatpush3.bf16.msra.mxu0 %v4848_v35  ;;  %4586 = vmatpush3.bf16.msra.mxu1 %v4848_v35  ;;  %v6347_v35 = vmul.f32 0.03125, %v2615_v52 }
 0x4f3   : > { %2626 = vadd.xlane.f32.xlu0 %v6132_v60  ;;  %4520 = vmatprep.subr.bf16.mxu0 %v4849_v40 }
 0x4f4   : > { %2628 = vadd.xlane.f32.xlu1 %v6139_v55  ;;  %4579 = vmatprep.subr.bf16.mxu1 %v4849_v40 }
 0x4f6   : > { %4521 = vmatpush3.bf16.msra.mxu0 %v4849_v40  ;;  %4587 = vmatpush3.bf16.msra.mxu1 %v4849_v40  ;;  %v6353_v40 = vmul.f32 0.03125, %v2649_v62 }
 0x4f7   : > { %2658 = vadd.xlane.f32.xlu0 %v6221_v25  ;;  %4522 = vmatprep.subr.bf16.mxu0 %v4850_v12 }
 0x4f8   : > { %2660 = vadd.xlane.f32.xlu1 %v6225_v26  ;;  %4580 = vmatprep.subr.bf16.mxu1 %v4850_v12 }
 0x4fa   : > { %4523 = vmatpush3.bf16.msra.mxu0 %v4850_v12  ;;  %4588 = vmatpush3.bf16.msra.mxu1 %v4850_v12  ;;  %v2838_v12 = vmul.f32 %v6347_v35, %v6347_v35 }
 0x4fb   : > { %2718 = vadd.xlane.f32.xlu0 %v2682_v46  ;;  %4524 = vmatprep.subr.bf16.mxu0 %v4851_v61  ;;  %v2621_v46 = vpop.xlane.xlu1 %2620 }
 0x4fc   : > { %2720 = vadd.xlane.f32.xlu1 %v2683_v31  ;;  %4581 = vmatprep.subr.bf16.mxu1 %v4851_v61  ;;  %v2617_v31 = vpop.xlane.xlu0 %2616 }
 0x4fe   : > { %4525 = vmatpush3.bf16.msra.mxu0 %v4851_v61  ;;  %4589 = vmatpush3.bf16.msra.mxu1 %v4851_v61 }
 0x4ff   : > { %2750 = vadd.xlane.f32.xlu0 %v2698_v34 }
 0x500   : > { %2752 = vadd.xlane.f32.xlu1 %v2699_v3  ;;  %v2619_v11 = vpop.xlane.xlu0 %2618  ;;  %v2653_v3 = vpop.xlane.xlu1 %2652 }
 0x503   : > { %2722 = vadd.xlane.f32.xlu0 %v2684_v1  ;;  %v6351_v1 = vmul.f32 0.03125, %v2647_v49 }
 0x504   : > { %2724 = vadd.xlane.f32.xlu1 %v2685_v23  ;;  %v2651_v34 = vpop.xlane.xlu0 %2650  ;;  %v6349_v23 = vmul.f32 0.03125, %v2617_v31  ;;  %v6369_v31 = vmul.f32 0.03125, %v2653_v3 }
 0x506   : > { %v2839_v61 = vmul.f32 %v6349_v23, %v6349_v23  ;;  %v2857_v3 = vmul.f32 %v6369_v31, %v6369_v31 }
 0x507   : > { %2754 = vadd.xlane.f32.xlu0 %v2700_v58 }
 0x508   : > { %2756 = vadd.xlane.f32.xlu1 %v2701_v8 }
 0x50b   : > { %2630 = vadd.xlane.f32.xlu0 %v6151_v39 }
 0x50c   : > { %2632 = vadd.xlane.f32.xlu1 %v6155_v53 }
 0x50f   : > { %2662 = vadd.xlane.f32.xlu0 %v6075_v33 }
 0x510   : > { %2664 = vadd.xlane.f32.xlu1 %v6082_v45 }
 0x513   : > { %2634 = vadd.xlane.f32.xlu0 %v6161_v18 }
 0x514   : > { %2636 = vadd.xlane.f32.xlu1 %v6165_v36 }
 0x517   : > { %2666 = vadd.xlane.f32.xlu0 %v6095_v51 }
 0x518   : > { %2668 = vadd.xlane.f32.xlu1 %v6102_v59 }
 0x51b   : > { %2726 = vadd.xlane.f32.xlu0 %v2686_v63 }
 0x51c   : > { %2728 = vadd.xlane.f32.xlu1 %v2687_v54 }
 0x51f   : > { %2758 = vadd.xlane.f32.xlu0 %v2702_v15 }
 0x520   : > { %2760 = vadd.xlane.f32.xlu1 %v2703_v17 }
 0x523   : > { %2730 = vadd.xlane.f32.xlu0 %v2688_v24  ;;  %v2855_v24 = vmul.f32 %v6353_v40, %v6353_v40 }
 0x524   : > { %2732 = vadd.xlane.f32.xlu1 %v2689_v37  ;;  %v2854_v37 = vmul.f32 %v6351_v1, %v6351_v1 }
 0x527   : > { %2762 = vadd.xlane.f32.xlu0 %v2704_v32 }
 0x528   : > { %2764 = vadd.xlane.f32.xlu1 %v2705_v19  ;;  %v6363_v19 = vmul.f32 0.03125, %v2621_v46 }
 0x52a   : > { %v2841_v62 = vmul.f32 %v6363_v19, %v6363_v19 }
 0x52b   : > { %2638 = vadd.xlane.f32.xlu0 %v6171_v27 }
 0x52c   : > { %2640 = vadd.xlane.f32.xlu1 %v6175_v6 }
 0x52f   : > { %2670 = vadd.xlane.f32.xlu0 %v6115_v0 }
 0x530   : > { %2672 = vadd.xlane.f32.xlu1 %v6122_v28 }
 0x533   : > { %2642 = vadd.xlane.f32.xlu0 %v6181_v16 }
 0x534   : > { %2644 = vadd.xlane.f32.xlu1 %v6185_v38 }
 0x537   : > { %2674 = vadd.xlane.f32.xlu0 %v6135_v21 }
 0x538   : > { %2676 = vadd.xlane.f32.xlu1 %v6142_v50 }
 0x53b   : > { %2734 = vadd.xlane.f32.xlu0 %v2690_v2 }
 0x53c   : > { %2736 = vadd.xlane.f32.xlu1 %v2691_v5 }
 0x53f   : > { %2766 = vadd.xlane.f32.xlu0 %v2706_v14 }
 0x540   : > { %2768 = vadd.xlane.f32.xlu1 %v2707_v22 }
 0x543   : > { %2738 = vadd.xlane.f32.xlu0 %v2692_v13  ;;  %v6365_v13 = vmul.f32 0.03125, %v2619_v11 }
 0x544   : > { %2740 = vadd.xlane.f32.xlu1 %v2693_v56 }
 0x545   : > { %v2840_v11 = vmul.f32 %v6365_v13, %v6365_v13 }
 0x547   : > { %2770 = vadd.xlane.f32.xlu0 %v2708_v47 }
 0x548   : > { %2772 = vadd.xlane.f32.xlu1 %v2709_v29 }
 0x568   : > { %v2711_v58 = vpop.xlane.xlu0 %2710 }
 0x569   : > { %v2713_v8 = vpop.xlane.xlu1 %2712  ;;  %v2806_v63 = vmul.f32 0.03125, %v2711_v58 }
 0x56a   : > { %v2807_v54 = vmul.f32 0.03125, %v2713_v8  ;;  %v6371_v8 = vmul.f32 0.03125, %v2651_v34 }
 0x56b   : > { %v2870_v15 = vsub.f32 %v2806_v63, %v2838_v12 }
 0x56c   : > { %v2871_v17 = vsub.f32 %v2807_v54, %v2839_v61  ;;  %v2743_v5 = vpop.xlane.xlu0 %2742  ;;  %v2856_v34 = vmul.f32 %v6371_v8, %v6371_v8 }
 0x56d   : > { %v2745_v32 = vpop.xlane.xlu1 %2744  ;;  %v2902_v22 = vmax.f32 %v2870_v15, 0.0  ;;  %v2822_v56 = vmul.f32 0.03125, %v2743_v5 }
 0x56e   : > { %v2903_v2 = vmax.f32 %v2871_v17, 0.0  ;;  %v2823_v14 = vmul.f32 0.03125, %v2745_v32 }
 0x56f   : > { %v2966_v47 = vadd.f32 1e-05, %v2902_v22  ;;  %v2886_v52 = vsub.f32 %v2822_v56, %v2854_v37 }
 0x570   : > { %v2967_v29 = vadd.f32 1e-05, %v2903_v2  ;;  %v2887_v49 = vsub.f32 %v2823_v14, %v2855_v24  ;;  %v2715_v58 = vpop.xlane.xlu0 %2714 }
 0x571   : > { %v2717_v46 = vpop.xlane.xlu1 %2716  ;;  %v2918_v61 = vmax.f32 %v2886_v52, 0.0  ;;  %v2808_v63 = vmul.f32 0.03125, %v2715_v58 }
 0x572   : > { %4852 = vrsqrt.f32 %v2967_v29  ;;  %v2919_v12 = vmax.f32 %v2887_v49, 0.0  ;;  %v2809_v54 = vmul.f32 0.03125, %v2717_v46 }
 0x573   : > { %4854 = vrsqrt.f32 %v2966_v47  ;;  %v2982_v15 = vadd.f32 1e-05, %v2918_v61  ;;  %v2872_v24 = vsub.f32 %v2808_v63, %v2840_v11  ;;  %v2935_v61 = vsub.f32 %v6079_v7, %v6349_v23 }
 0x574   : > { %v2983_v17 = vadd.f32 1e-05, %v2919_v12  ;;  %v2873_v37 = vsub.f32 %v2809_v54, %v2841_v62  ;;  %v2747_v5 = vpop.xlane.xlu0 %2746  ;;  %v2934_v11 = vsub.f32 %v6072_v44, %v6347_v35  ;;  %v2951_v7 = vsub.f32 %v6195_v43, %v6353_v40 }
 0x575   : > { %v2749_v32 = vpop.xlane.xlu1 %2748  ;;  %v2824_v14 = vmul.f32 0.03125, %v2747_v5  ;;  %v2904_v56 = vmax.f32 %v2872_v24, 0.0  ;;  %v6387_v5 = vld [vmem:[%s5554_s25] ss:$0 sm:$0xff]  ;;  %v2950_v44 = vsub.f32 %v6191_v9, %v6351_v1  ;;  %v2936_v9 = vsub.f32 %v6092_v30, %v6365_v13 }
 0x576   : > { %4856 = vrsqrt.f32 %v2983_v17  ;;  %v2905_v2 = vmax.f32 %v2873_v37, 0.0  ;;  %v2825_v22 = vmul.f32 0.03125, %v2749_v32 }
 0x577   : > { %4858 = vrsqrt.f32 %v2982_v15  ;;  %v2888_v49 = vsub.f32 %v2824_v14, %v2856_v34  ;;  %v2968_v52 = vadd.f32 1e-05, %v2904_v56  ;;  %v6384_v15 = vld [vmem:[%s5549_s22] ss:$0 sm:$0xff]  ;;  %s6610_s22 = scalar_lea.vmem [#allocation3], %s4148_s1 }
 0x578   : > { %v2969_v29 = vadd.f32 1e-05, %v2905_v2  ;;  %v2889_v47 = vsub.f32 %v2825_v22, %v2857_v3  ;;  %v2623_v46 = vpop.xlane.xlu0 %2622 }
 0x579   : > { %v2625_v62 = vpop.xlane.xlu1 %2624  ;;  %v2920_v12 = vmax.f32 %v2888_v49, 0.0 }
 0x57a   : > { %4860 = vrsqrt.f32 %v2969_v29  ;;  %v2921_v58 = vmax.f32 %v2889_v47, 0.0  ;;  %v6402_v1 = vmul.f32 0.03125, %v2625_v62 }
 0x57b   : > { %4862 = vrsqrt.f32 %v2968_v52  ;;  %v2984_v17 = vadd.f32 1e-05, %v2920_v12  ;;  %v2937_v52 = vsub.f32 %v6099_v57, %v6363_v19  ;;  %v2953_v19 = vsub.f32 %v6205_v10, %v6369_v31 }
 0x57c   : > { %v4853_v54 = vpop.eup %4852  ;;  %v2985_v63 = vadd.f32 1e-05, %v2921_v58  ;;  %v2655_v34 = vpop.xlane.xlu0 %2654 }
 0x57d   : > { %v4855_v37 = vpop.eup %4854  ;;  %v2657_v3 = vpop.xlane.xlu1 %2656  ;;  %v3031_v24 = vmul.f32 %v4853_v54, %v2935_v61 }
 0x57e   : > { %4864 = vrsqrt.f32 %v2985_v63  ;;  %v3030_v32 = vmul.f32 %v4855_v37, %v2934_v11 }
 0x57f   : > { %4866 = vrsqrt.f32 %v2984_v17  ;;  %v3070_v23 = vmul.f32 %v6384_v15, %v3031_v24  ;;  %v6408_v24 = vmul.f32 0.03125, %v2623_v46 }
 0x580   : > { %v4857_v2 = vpop.eup %4856  ;;  %v2627_v14 = vpop.xlane.xlu0 %2626  ;;  %v3069_v56 = vmul.f32 %v6384_v15, %v3030_v32 }
 0x581   : > { %v4859_v35 = vpop.eup %4858  ;;  %v2629_v22 = vpop.xlane.xlu1 %2628  ;;  %v3109_v29 = vadd.f32 %v6387_v5, %v3070_v23  ;;  %v3047_v47 = vmul.f32 %v4857_v2, %v2951_v7  ;;  %v2952_v2 = vsub.f32 %v6201_v48, %v6371_v8  ;;  %v2842_v48 = vmul.f32 %v6408_v24, %v6408_v24 }
 0x582   : > { %v3046_v49 = vmul.f32 %v4859_v35, %v2950_v44  ;;  %v3108_v43 = vadd.f32 %v6387_v5, %v3069_v56  ;;  %v2843_v44 = vmul.f32 %v6402_v1, %v6402_v1  ;;  %v6416_v35 = vmul.f32 0.03125, %v2657_v3 }
 0x583   : > { %v3141_v40 = vmax.f32 %v3109_v29, 0.0  ;;  %v3086_v58 = vmul.f32 %v6384_v15, %v3047_v47  ;;  %v6418_v56 = vmul.f32 0.03125, %v2655_v34 }
 0x584   : > { %v4861_v12 = vpop.eup %4860  ;;  %v2659_v11 = vpop.xlane.xlu0 %2658  ;;  %v3140_v63 = vmax.f32 %v3108_v43, 0.0  ;;  %v3085_v17 = vmul.f32 %v6384_v15, %v3046_v49 }
 0x585   : > { %v4863_v61 = vpop.eup %4862  ;;  %v2661_v54 = vpop.xlane.xlu1 %2660  ;;  %v3125_v37 = vadd.f32 %v6387_v5, %v3086_v58  ;;  %v3033_v57 = vmul.f32 %v4861_v12, %v2937_v52 }
 0x586   : > { %v3032_v32 = vmul.f32 %v4863_v61, %v2936_v9  ;;  %v3172_v7 = vpack.c.bf16 %v3141_v40, %v3140_v63  ;;  %v3124_v30 = vadd.f32 %v6387_v5, %v3085_v17  ;;  %v2859_v9 = vmul.f32 %v6416_v35, %v6416_v35 }
 0x587   : > { %v3157_v13 = vmax.f32 %v3125_v37, 0.0  ;;  %v3072_v62 = vmul.f32 %v6384_v15, %v3033_v57  ;;  %v2858_v37 = vmul.f32 %v6418_v56, %v6418_v56  ;;  %v6431_v57 = vmul.f32 0.03125, %v2629_v22 }
 0x588   : > { %v4865_v23 = vpop.eup %4864  ;;  %4526 = vmatprep.mubr.bf16.mxu0 %v3172_v7  ;;  %v2719_v46 = vpop.xlane.xlu0 %2718  ;;  %v3156_v29 = vmax.f32 %v3124_v30, 0.0  ;;  %v3071_v47 = vmul.f32 %v6384_v15, %v3032_v32 }
 0x589   : > { %v4867_v10 = vpop.eup %4866  ;;  %v2721_v31 = vpop.xlane.xlu1 %2720  ;;  %v3111_v49 = vadd.f32 %v6387_v5, %v3072_v62  ;;  %v3049_v52 = vmul.f32 %v4865_v23, %v2953_v19  ;;  %v2810_v43 = vmul.f32 0.03125, %v2719_v46 }
 0x58a   : > { %v2811_v8 = vmul.f32 0.03125, %v2721_v31  ;;  %v3048_v40 = vmul.f32 %v4867_v10, %v2952_v2  ;;  %v3180_v3 = vpack.c.bf16 %v3157_v13, %v3156_v29  ;;  %v3110_v34 = vadd.f32 %v6387_v5, %v3071_v47 }
 0x58b   : > { %v3143_v58 = vmax.f32 %v3111_v49, 0.0  ;;  %v3088_v12 = vmul.f32 %v6384_v15, %v3049_v52  ;;  %v2874_v63 = vsub.f32 %v2810_v43, %v2842_v48  ;;  %v6434_v10 = vmul.f32 0.03125, %v2627_v14 }
 0x58c   : > { %v2875_v61 = vsub.f32 %v2811_v8, %v2843_v44  ;;  %v3087_v17 = vmul.f32 %v6384_v15, %v3048_v40  ;;  %4542 = vmatprep.mubr.bf16.mxu1 %v3180_v3  ;;  %v2751_v32 = vpop.xlane.xlu0 %2750  ;;  %v3142_v7 = vmax.f32 %v3110_v34, 0.0  ;;  %v2845_v52 = vmul.f32 %v6431_v57, %v6431_v57 }
 0x58d   : > { %v2753_v19 = vpop.xlane.xlu1 %2752  ;;  %v3127_v30 = vadd.f32 %v6387_v5, %v3088_v12  ;;  %v2906_v62 = vmax.f32 %v2874_v63, 0.0  ;;  %v2826_v2 = vmul.f32 0.03125, %v2751_v32  ;;  %v6439_v48 = vmul.f32 0.03125, %v2661_v54 }
 0x58e   : > { %v2907_v13 = vmax.f32 %v2875_v61, 0.0  ;;  %v2827_v23 = vmul.f32 0.03125, %v2753_v19  ;;  %v3173_v44 = vpack.c.bf16 %v3143_v58, %v3142_v7  ;;  %v3126_v31 = vadd.f32 %v6387_v5, %v3087_v17 }
 0x58f   : > { %v3159_v46 = vmax.f32 %v3127_v30, 0.0  ;;  %v2970_v47 = vadd.f32 1e-05, %v2906_v62  ;;  %v2890_v49 = vsub.f32 %v2826_v2, %v2858_v37  ;;  %v6441_v8 = vmul.f32 0.03125, %v2659_v11 }
 0x590   : > { %v2971_v29 = vadd.f32 1e-05, %v2907_v13  ;;  %v2891_v22 = vsub.f32 %v2827_v23, %v2859_v9  ;;  %4527 = vmatmul.mubr.bf16.vlgmr.msra.gmra.mrb[0].mxu0 %v3173_v44  ;;  %v2723_v40 = vpop.xlane.xlu0 %2722  ;;  %v3158_v14 = vmax.f32 %v3126_v31, 0.0  ;;  %v2844_v12 = vmul.f32 %v6434_v10, %v6434_v10 }
 0x591   : > { %v2725_v43 = vpop.xlane.xlu1 %2724  ;;  %v2922_v34 = vmax.f32 %v2890_v49, 0.0  ;;  %v2812_v9 = vmul.f32 0.03125, %v2723_v40  ;;  %v2861_v11 = vmul.f32 %v6439_v48, %v6439_v48  ;;  %v2860_v37 = vmul.f32 %v6441_v8, %v6441_v8 }
 0x592   : > { %4868 = vrsqrt.f32 %v2971_v29  ;;  %v2923_v3 = vmax.f32 %v2891_v22, 0.0  ;;  %v2813_v58 = vmul.f32 0.03125, %v2725_v43  ;;  %v3181_v61 = vpack.c.bf16 %v3159_v46, %v3158_v14 }
 0x593   : > { %4870 = vrsqrt.f32 %v2970_v47  ;;  %v2986_v17 = vadd.f32 1e-05, %v2922_v34  ;;  %v2876_v19 = vsub.f32 %v2812_v9, %v2844_v12  ;;  %v2938_v40 = vsub.f32 %v6112_v42, %v6408_v24 }
 0x594   : > { %v2987_v63 = vadd.f32 1e-05, %v2923_v3  ;;  %v2877_v54 = vsub.f32 %v2813_v58, %v2845_v52  ;;  %4543 = vmatmul.mubr.bf16.vlgmr.msra.gmra.mrb[0].mxu1 %v3181_v61  ;;  %v2755_v7 = vpop.xlane.xlu0 %2754  ;;  %v2939_v52 = vsub.f32 %v6119_v20, %v6402_v1  ;;  %v2954_v1 = vsub.f32 %v6211_v4, %v6418_v56 }
 0x595   : > { %v2757_v32 = vpop.xlane.xlu1 %2756  ;;  %v2828_v62 = vmul.f32 0.03125, %v2755_v7  ;;  %v2908_v23 = vmax.f32 %v2876_v19, 0.0  ;;  %v2941_v7 = vsub.f32 %v6139_v55, %v6431_v57  ;;  %v2940_v4 = vsub.f32 %v6132_v60, %v6434_v10 }
 0x596   : > { %4872 = vrsqrt.f32 %v2987_v63  ;;  %v2909_v30 = vmax.f32 %v2877_v54, 0.0  ;;  %v2829_v13 = vmul.f32 0.03125, %v2757_v32  ;;  %v2955_v63 = vsub.f32 %v6215_v41, %v6416_v35 }
 0x597   : > { %4874 = vrsqrt.f32 %v2986_v17  ;;  %v2892_v31 = vsub.f32 %v2828_v62, %v2860_v37  ;;  %v2972_v46 = vadd.f32 1e-05, %v2908_v23  ;;  %v2957_v57 = vsub.f32 %v6225_v26, %v6439_v48 }
 0x598   : > { %v2973_v2 = vadd.f32 1e-05, %v2909_v30  ;;  %v2893_v44 = vsub.f32 %v2829_v13, %v2861_v11  ;;  %v2631_v47 = vpop.xlane.xlu0 %2630 }
 0x599   : > { %v2633_v29 = vpop.xlane.xlu1 %2632  ;;  %v2924_v49 = vmax.f32 %v2892_v31, 0.0 }
 0x59a   : > { %4876 = vrsqrt.f32 %v2973_v2  ;;  %v2925_v22 = vmax.f32 %v2893_v44, 0.0  ;;  %v6466_v56 = vmul.f32 0.03125, %v2633_v29 }
 0x59b   : > { %4878 = vrsqrt.f32 %v2972_v46  ;;  %v2988_v3 = vadd.f32 1e-05, %v2924_v49 }
 0x59c   : > { %v4869_v43 = vpop.eup %4868  ;;  %v2989_v14 = vadd.f32 1e-05, %v2925_v22  ;;  %v2663_v12 = vpop.xlane.xlu0 %2662  ;;  %v6472_v22 = vmul.f32 0.03125, %v2631_v47 }
 0x59d   : > { %v4871_v34 = vpop.eup %4870  ;;  %v2665_v58 = vpop.xlane.xlu1 %2664  ;;  %v3035_v9 = vmul.f32 %v4869_v43, %v2939_v52 }
 0x59e   : > { %4880 = vrsqrt.f32 %v2989_v14  ;;  %v3034_v61 = vmul.f32 %v4871_v34, %v2938_v40  ;;  %v2956_v40 = vsub.f32 %v6221_v25, %v6441_v8  ;;  %v2847_v14 = vmul.f32 %v6466_v56, %v6466_v56 }
 0x59f   : > { %4882 = vrsqrt.f32 %v2988_v3  ;;  %v3074_v17 = vmul.f32 %v6384_v15, %v3035_v9  ;;  %v6480_v3 = vmul.f32 0.03125, %v2665_v58  ;;  %v6482_v34 = vmul.f32 0.03125, %v2663_v12 }
 0x5a0   : > { %v4873_v20 = vpop.eup %4872  ;;  %v2635_v24 = vpop.xlane.xlu0 %2634  ;;  %v3073_v11 = vmul.f32 %v6384_v15, %v3034_v61  ;;  %v2846_v25 = vmul.f32 %v6472_v22, %v6472_v22 }
 0x5a1   : > { %v4875_v54 = vpop.eup %4874  ;;  %v2637_v42 = vpop.xlane.xlu1 %2636  ;;  %v3113_v37 = vadd.f32 %v6387_v5, %v3074_v17  ;;  %v3051_v19 = vmul.f32 %v4873_v20, %v2955_v63 }
 0x5a2   : > { %v3050_v32 = vmul.f32 %v4875_v54, %v2954_v1  ;;  %v3112_v41 = vadd.f32 %v6387_v5, %v3073_v11 }
 0x5a3   : > { %v3145_v35 = vmax.f32 %v3113_v37, 0.0  ;;  %v3090_v30 = vmul.f32 %v6384_v15, %v3051_v19  ;;  %v2863_v37 = vmul.f32 %v6480_v3, %v6480_v3 }
 0x5a4   : > { %v4877_v13 = vpop.eup %4876  ;;  %v2667_v2 = vpop.xlane.xlu0 %2666  ;;  %v3144_v44 = vmax.f32 %v3112_v41, 0.0  ;;  %v3089_v31 = vmul.f32 %v6384_v15, %v3050_v32  ;;  %v2862_v41 = vmul.f32 %v6482_v34, %v6482_v34 }
 0x5a5   : > { %v4879_v62 = vpop.eup %4878  ;;  %v2669_v23 = vpop.xlane.xlu1 %2668  ;;  %v3129_v46 = vadd.f32 %v6387_v5, %v3090_v30  ;;  %v3037_v55 = vmul.f32 %v4877_v13, %v2941_v7 }
 0x5a6   : > { %v3036_v49 = vmul.f32 %v4879_v62, %v2940_v4  ;;  %v3174_v52 = vpack.c.bf16 %v3145_v35, %v3144_v44  ;;  %v3128_v60 = vadd.f32 %v6387_v5, %v3089_v31  ;;  %v6495_v35 = vmul.f32 0.03125, %v2637_v42 }
 0x5a7   : > { %v3161_v10 = vmax.f32 %v3129_v46, 0.0  ;;  %v3076_v29 = vmul.f32 %v6384_v15, %v3037_v55 }
 0x5a8   : > { %v4881_v43 = vpop.eup %4880  ;;  %4530 = vmatprep.mubr.bf16.mxu0 %v3174_v52  ;;  %v2727_v47 = vpop.xlane.xlu0 %2726  ;;  %v3160_v9 = vmax.f32 %v3128_v60, 0.0  ;;  %v3075_v61 = vmul.f32 %v6384_v15, %v3036_v49 }
 0x5a9   : > { %v4883_v26 = vpop.eup %4882  ;;  %v2729_v48 = vpop.xlane.xlu1 %2728  ;;  %v3115_v63 = vadd.f32 %v6387_v5, %v3076_v29  ;;  %v3053_v17 = vmul.f32 %v4881_v43, %v2957_v57  ;;  %v2814_v20 = vmul.f32 0.03125, %v2727_v47  ;;  %v6498_v57 = vmul.f32 0.03125, %v2635_v24 }
 0x5aa   : > { %v2815_v8 = vmul.f32 0.03125, %v2729_v48  ;;  %v3052_v1 = vmul.f32 %v4883_v26, %v2956_v40  ;;  %v3182_v58 = vpack.c.bf16 %v3161_v10, %v3160_v9  ;;  %v3114_v12 = vadd.f32 %v6387_v5, %v3075_v61 }
 0x5ab   : > { %v3147_v54 = vmax.f32 %v3115_v63, 0.0  ;;  %v3092_v11 = vmul.f32 %v6384_v15, %v3053_v17  ;;  %v2878_v32 = vsub.f32 %v2814_v20, %v2846_v25  ;;  %v2849_v40 = vmul.f32 %v6495_v35, %v6495_v35 }
 0x5ac   : > { %v2879_v19 = vsub.f32 %v2815_v8, %v2847_v14  ;;  %v3091_v7 = vmul.f32 %v6384_v15, %v3052_v1  ;;  %4546 = vmatprep.mubr.bf16.mxu1 %v3182_v58  ;;  %v2759_v13 = vpop.xlane.xlu0 %2758  ;;  %v3146_v4 = vmax.f32 %v3114_v12, 0.0  ;;  %v6503_v14 = vmul.f32 0.03125, %v2669_v23 }
 0x5ad   : > { %v2761_v30 = vpop.xlane.xlu1 %2760  ;;  %v3131_v62 = vadd.f32 %v6387_v5, %v3092_v11  ;;  %v2910_v31 = vmax.f32 %v2878_v32, 0.0  ;;  %v2830_v55 = vmul.f32 0.03125, %v2759_v13  ;;  %v6505_v26 = vmul.f32 0.03125, %v2667_v2 }
 0x5ae   : > { %v2911_v44 = vmax.f32 %v2879_v19, 0.0  ;;  %v2831_v46 = vmul.f32 0.03125, %v2761_v30  ;;  %v3175_v49 = vpack.c.bf16 %v3147_v54, %v3146_v4  ;;  %v3130_v52 = vadd.f32 %v6387_v5, %v3091_v7 }
 0x5af   : > { %v3163_v60 = vmax.f32 %v3131_v62, 0.0  ;;  %v2974_v29 = vadd.f32 1e-05, %v2910_v31  ;;  %v2894_v43 = vsub.f32 %v2830_v55, %v2862_v41  ;;  %v2848_v17 = vmul.f32 %v6498_v57, %v6498_v57 }
 0x5b0   : > { %v2975_v10 = vadd.f32 1e-05, %v2911_v44  ;;  %v2895_v42 = vsub.f32 %v2831_v46, %v2863_v37  ;;  %4531 = vmatmul.mubr.bf16.gmra.mrb[4].mxu0 %v3175_v49  ;;  %v2731_v47 = vpop.xlane.xlu0 %2730  ;;  %v3162_v24 = vmax.f32 %v3130_v52, 0.0  ;;  %v2865_v2 = vmul.f32 %v6503_v14, %v6503_v14 }
 0x5b1   : > { %v2733_v48 = vpop.xlane.xlu1 %2732  ;;  %v2926_v61 = vmax.f32 %v2894_v43, 0.0  ;;  %v2816_v25 = vmul.f32 0.03125, %v2731_v47  ;;  %v2864_v58 = vmul.f32 %v6505_v26, %v6505_v26  ;;  %v2943_v55 = vsub.f32 %v6155_v53, %v6466_v56 }
 0x5b2   : > { %4884 = vrsqrt.f32 %v2975_v10  ;;  %v2927_v9 = vmax.f32 %v2895_v42, 0.0  ;;  %v2817_v63 = vmul.f32 0.03125, %v2733_v48  ;;  %v3183_v8 = vpack.c.bf16 %v3163_v60, %v3162_v24 }
 0x5b3   : > { %4886 = vrsqrt.f32 %v2974_v29  ;;  %v2990_v1 = vadd.f32 1e-05, %v2926_v61  ;;  %v2880_v12 = vsub.f32 %v2816_v25, %v2848_v17  ;;  %v2942_v52 = vsub.f32 %v6151_v39, %v6472_v22 }
 0x5b4   : > { %v2991_v20 = vadd.f32 1e-05, %v2927_v9  ;;  %v2881_v23 = vsub.f32 %v2817_v63, %v2849_v40  ;;  %4547 = vmatmul.mubr.bf16.gmra.mrb[4].mxu1 %v3183_v8  ;;  %v2763_v11 = vpop.xlane.xlu0 %2762  ;;  %v2959_v47 = vsub.f32 %v6082_v45, %v6480_v3  ;;  %v2958_v56 = vsub.f32 %v6075_v33, %v6482_v34 }
 0x5b5   : > { %v2765_v54 = vpop.xlane.xlu1 %2764  ;;  %v2832_v32 = vmul.f32 0.03125, %v2763_v11  ;;  %v2912_v7 = vmax.f32 %v2880_v12, 0.0  ;;  %v2945_v8 = vsub.f32 %v6165_v36, %v6495_v35  ;;  %v2944_v33 = vsub.f32 %v6161_v18, %v6498_v57 }
 0x5b6   : > { %4888 = vrsqrt.f32 %v2991_v20  ;;  %v2913_v37 = vmax.f32 %v2881_v23, 0.0  ;;  %v2833_v19 = vmul.f32 0.03125, %v2765_v54  ;;  %v2961_v35 = vsub.f32 %v6102_v59, %v6503_v14 }
 0x5b7   : > { %4890 = vrsqrt.f32 %v2990_v1  ;;  %v2896_v13 = vsub.f32 %v2832_v32, %v2864_v58  ;;  %v2976_v4 = vadd.f32 1e-05, %v2912_v7 }
 0x5b8   : > { %v2977_v41 = vadd.f32 1e-05, %v2913_v37  ;;  %v2897_v30 = vsub.f32 %v2833_v19, %v2865_v2  ;;  %v2639_v44 = vpop.xlane.xlu0 %2638 }
 0x5b9   : > { %v2641_v62 = vpop.xlane.xlu1 %2640  ;;  %v2928_v46 = vmax.f32 %v2896_v13, 0.0  ;;  %v6536_v37 = vmul.f32 0.03125, %v2639_v44 }
 0x5ba   : > { %4892 = vrsqrt.f32 %v2977_v41  ;;  %v2929_v31 = vmax.f32 %v2897_v30, 0.0  ;;  %v6530_v34 = vmul.f32 0.03125, %v2641_v62  ;;  %v2960_v30 = vsub.f32 %v6095_v51, %v6505_v26 }
 0x5bb   : > { %4894 = vrsqrt.f32 %v2976_v4  ;;  %v2992_v10 = vadd.f32 1e-05, %v2928_v46  ;;  %v2850_v51 = vmul.f32 %v6536_v37, %v6536_v37 }
 0x5bc   : > { %v4885_v49 = vpop.eup %4884  ;;  %v2993_v60 = vadd.f32 1e-05, %v2929_v31  ;;  %v2671_v43 = vpop.xlane.xlu0 %2670  ;;  %v2851_v13 = vmul.f32 %v6530_v34, %v6530_v34 }
 0x5bd   : > { %v4887_v29 = vpop.eup %4886  ;;  %v2673_v42 = vpop.xlane.xlu1 %2672  ;;  %v3039_v40 = vmul.f32 %v4885_v49, %v2943_v55  ;;  %v6546_v62 = vmul.f32 0.03125, %v2671_v43 }
 0x5be   : > { %4896 = vrsqrt.f32 %v2993_v60  ;;  %v3038_v48 = vmul.f32 %v4887_v29, %v2942_v52  ;;  %v6544_v4 = vmul.f32 0.03125, %v2673_v42 }
 0x5bf   : > { %4898 = vrsqrt.f32 %v2992_v10  ;;  %v3078_v24 = vmul.f32 %v6384_v15, %v3039_v40 }
 0x5c0   : > { %v4889_v53 = vpop.eup %4888  ;;  %v2643_v22 = vpop.xlane.xlu0 %2642  ;;  %v3077_v61 = vmul.f32 %v6384_v15, %v3038_v48  ;;  %v2867_v40 = vmul.f32 %v6544_v4, %v6544_v4 }
 0x5c1   : > { %v4891_v9 = vpop.eup %4890  ;;  %v2645_v39 = vpop.xlane.xlu1 %2644  ;;  %v3117_v63 = vadd.f32 %v6387_v5, %v3078_v24  ;;  %v3055_v17 = vmul.f32 %v4889_v53, %v2959_v47  ;;  %v2866_v53 = vmul.f32 %v6546_v62, %v6546_v62 }
 0x5c2   : > { %v3054_v25 = vmul.f32 %v4891_v9, %v2958_v56  ;;  %v3116_v45 = vadd.f32 %v6387_v5, %v3077_v61  ;;  %v6559_v56 = vmul.f32 0.03125, %v2645_v39 }
 0x5c3   : > { %v3149_v3 = vmax.f32 %v3117_v63, 0.0  ;;  %v3094_v20 = vmul.f32 %v6384_v15, %v3055_v17 }
 0x5c4   : > { %v4893_v1 = vpop.eup %4892  ;;  %v2675_v58 = vpop.xlane.xlu0 %2674  ;;  %v3148_v12 = vmax.f32 %v3116_v45, 0.0  ;;  %v3093_v54 = vmul.f32 %v6384_v15, %v3054_v25 }
 0x5c5   : > { %v4895_v23 = vpop.eup %4894  ;;  %v2677_v2 = vpop.xlane.xlu1 %2676  ;;  %v3133_v11 = vadd.f32 %v6387_v5, %v3094_v20  ;;  %v3041_v36 = vmul.f32 %v4893_v1, %v2945_v8  ;;  %v6562_v20 = vmul.f32 0.03125, %v2643_v22 }
 0x5c6   : > { %v3040_v19 = vmul.f32 %v4895_v23, %v2944_v33  ;;  %v3176_v32 = vpack.c.bf16 %v3149_v3, %v3148_v12  ;;  %v3132_v18 = vadd.f32 %v6387_v5, %v3093_v54 }
 0x5c7   : > { %v3165_v57 = vmax.f32 %v3133_v11, 0.0  ;;  %v3080_v7 = vmul.f32 %v6384_v15, %v3041_v36  ;;  %v2853_v36 = vmul.f32 %v6559_v56, %v6559_v56 }
 0x5c8   : > { %v4897_v41 = vpop.eup %4896  ;;  %4534 = vmatprep.mubr.bf16.mxu0 %v3176_v32  ;;  %v2735_v44 = vpop.xlane.xlu0 %2734  ;;  %v3164_v31 = vmax.f32 %v3132_v18, 0.0  ;;  %v3079_v46 = vmul.f32 %v6384_v15, %v3040_v19  ;;  %v6569_v19 = vmul.f32 0.03125, %v2675_v58 }
 0x5c9   : > { %v4899_v59 = vpop.eup %4898  ;;  %v2737_v14 = vpop.xlane.xlu1 %2736  ;;  %v3119_v55 = vadd.f32 %v6387_v5, %v3080_v7  ;;  %v3057_v49 = vmul.f32 %v4897_v41, %v2961_v35  ;;  %v2818_v52 = vmul.f32 0.03125, %v2735_v44  ;;  %v6567_v35 = vmul.f32 0.03125, %v2677_v2 }
 0x5ca   : > { %v2819_v26 = vmul.f32 0.03125, %v2737_v14  ;;  %v3056_v60 = vmul.f32 %v4899_v59, %v2960_v30  ;;  %v3184_v10 = vpack.c.bf16 %v3165_v57, %v3164_v31  ;;  %v3118_v29 = vadd.f32 %v6387_v5, %v3079_v46 }
 0x5cb   : > { %v3151_v42 = vmax.f32 %v3119_v55, 0.0  ;;  %v3096_v43 = vmul.f32 %v6384_v15, %v3057_v49  ;;  %v2882_v47 = vsub.f32 %v2818_v52, %v2850_v51  ;;  %v2852_v30 = vmul.f32 %v6562_v20, %v6562_v20 }
 0x5cc   : > { %v2883_v48 = vsub.f32 %v2819_v26, %v2851_v13  ;;  %v3095_v24 = vmul.f32 %v6384_v15, %v3056_v60  ;;  %4550 = vmatprep.mubr.bf16.mxu1 %v3184_v10  ;;  %v2767_v61 = vpop.xlane.xlu0 %2766  ;;  %v3150_v63 = vmax.f32 %v3118_v29, 0.0  ;;  %v2869_v58 = vmul.f32 %v6567_v35, %v6567_v35 }
 0x5cd   : > { %v2769_v9 = vpop.xlane.xlu1 %2768  ;;  %v3135_v17 = vadd.f32 %v6387_v5, %v3096_v43  ;;  %v2914_v8 = vmax.f32 %v2882_v47, 0.0  ;;  %v2834_v3 = vmul.f32 0.03125, %v2767_v61  ;;  %v2868_v31 = vmul.f32 %v6569_v19, %v6569_v19 }
 0x5ce   : > { %v2915_v25 = vmax.f32 %v2883_v48, 0.0  ;;  %v2835_v45 = vmul.f32 0.03125, %v2769_v9  ;;  %v3177_v1 = vpack.c.bf16 %v3151_v42, %v3150_v63  ;;  %v3134_v33 = vadd.f32 %v6387_v5, %v3095_v24 }
 0x5cf   : > { %v3167_v23 = vmax.f32 %v3135_v17, 0.0  ;;  %v2978_v54 = vadd.f32 1e-05, %v2914_v8  ;;  %v2898_v11 = vsub.f32 %v2834_v3, %v2866_v53  ;;  %v2947_v47 = vsub.f32 %v6175_v6, %v6530_v34 }
 0x5d0   : > { %v2979_v12 = vadd.f32 1e-05, %v2915_v25  ;;  %v2899_v39 = vsub.f32 %v2835_v45, %v2867_v40  ;;  %4535 = vmatmul.mubr.bf16.gmra.mrb[8].mxu0 %v3177_v1  ;;  %v2739_v18 = vpop.xlane.xlu0 %2738  ;;  %v3166_v22 = vmax.f32 %v3134_v33, 0.0  ;;  %v2946_v53 = vsub.f32 %v6171_v27, %v6536_v37 }
 0x5d1   : > { %v2741_v32 = vpop.xlane.xlu1 %2740  ;;  %v2930_v7 = vmax.f32 %v2898_v11, 0.0  ;;  %v2820_v13 = vmul.f32 0.03125, %v2739_v18  ;;  %v2963_v8 = vsub.f32 %v6122_v28, %v6544_v4  ;;  %v2962_v6 = vsub.f32 %v6115_v0, %v6546_v62 }
 0x5d2   : > { %4900 = vrsqrt.f32 %v2979_v12  ;;  %v2931_v57 = vmax.f32 %v2899_v39, 0.0  ;;  %v2821_v41 = vmul.f32 0.03125, %v2741_v32  ;;  %v3185_v59 = vpack.c.bf16 %v3167_v23, %v3166_v22 }
 0x5d3   : > { %4902 = vrsqrt.f32 %v2978_v54  ;;  %v2994_v44 = vadd.f32 1e-05, %v2930_v7  ;;  %v2884_v46 = vsub.f32 %v2820_v13, %v2852_v30  ;;  %v2949_v12 = vsub.f32 %v6185_v38, %v6559_v56 }
 0x5d4   : > { %v2995_v14 = vadd.f32 1e-05, %v2931_v57  ;;  %v2885_v2 = vsub.f32 %v2821_v41, %v2853_v36  ;;  %4551 = vmatmul.mubr.bf16.gmra.mrb[8].mxu1 %v3185_v59  ;;  %v2771_v49 = vpop.xlane.xlu0 %2770  ;;  %v2948_v39 = vsub.f32 %v6181_v16, %v6562_v20  ;;  %v2965_v38 = vsub.f32 %v6142_v50, %v6567_v35 }
 0x5d5   : > { %v2773_v55 = vpop.xlane.xlu1 %2772  ;;  %v2836_v52 = vmul.f32 0.03125, %v2771_v49  ;;  %v2916_v60 = vmax.f32 %v2884_v46, 0.0  ;;  %v2964_v16 = vsub.f32 %v6135_v21, %v6569_v19 }
 0x5d6   : > { %4904 = vrsqrt.f32 %v2995_v14  ;;  %v2917_v51 = vmax.f32 %v2885_v2, 0.0  ;;  %v2837_v26 = vmul.f32 0.03125, %v2773_v55 }
 0x5d7   : > { %4906 = vrsqrt.f32 %v2994_v44  ;;  %v2900_v42 = vsub.f32 %v2836_v52, %v2868_v31  ;;  %v2980_v43 = vadd.f32 1e-05, %v2916_v60 }
 0x5d8   : > { %v2981_v10 = vadd.f32 1e-05, %v2917_v51  ;;  %v2901_v29 = vsub.f32 %v2837_v26, %v2869_v58 }
 0x5d9   : > { %v2932_v48 = vmax.f32 %v2900_v42, 0.0 }
 0x5da   : > { %4908 = vrsqrt.f32 %v2981_v10  ;;  %v2933_v40 = vmax.f32 %v2901_v29, 0.0 }
 0x5db   : > { %4910 = vrsqrt.f32 %v2980_v43  ;;  %v2996_v61 = vadd.f32 1e-05, %v2932_v48 }
 0x5dc   : > { %v4901_v24 = vpop.eup %4900  ;;  %v2997_v9 = vadd.f32 1e-05, %v2933_v40 }
 0x5dd   : > { %v4903_v63 = vpop.eup %4902  ;;  %v3043_v17 = vmul.f32 %v4901_v24, %v2947_v47 }
 0x5de   : > { %4912 = vrsqrt.f32 %v2997_v9  ;;  %v3042_v25 = vmul.f32 %v4903_v63, %v2946_v53 }
 0x5df   : > { %4914 = vrsqrt.f32 %v2996_v61  ;;  %v3082_v45 = vmul.f32 %v6384_v15, %v3043_v17 }
 0x5e0   : > { %v4905_v3 = vpop.eup %4904  ;;  %v3081_v34 = vmul.f32 %v6384_v15, %v3042_v25 }
 0x5e1   : > { %v4907_v1 = vpop.eup %4906  ;;  %v3121_v27 = vadd.f32 %v6387_v5, %v3082_v45  ;;  %v3059_v37 = vmul.f32 %v4905_v3, %v2963_v8 }
 0x5e2   : > { %v3120_v33 = vadd.f32 %v6387_v5, %v3081_v34  ;;  %v3058_v23 = vmul.f32 %v4907_v1, %v2962_v6 }
 0x5e3   : > { %v3153_v28 = vmax.f32 %v3121_v27, 0.0  ;;  %v3098_v4 = vmul.f32 %v6384_v15, %v3059_v37 }
 0x5e4   : > { %v4909_v54 = vpop.eup %4908  ;;  %v3152_v0 = vmax.f32 %v3120_v33, 0.0  ;;  %v3097_v62 = vmul.f32 %v6384_v15, %v3058_v23 }
 0x5e5   : > { %v4911_v11 = vpop.eup %4910  ;;  %v3137_v36 = vadd.f32 %v6387_v5, %v3098_v4  ;;  %v3045_v32 = vmul.f32 %v4909_v54, %v2949_v12 }
 0x5e6   : > { %v3178_v18 = vpack.c.bf16 %v3153_v28, %v3152_v0  ;;  %v3136_v22 = vadd.f32 %v6387_v5, %v3097_v62  ;;  %v3044_v57 = vmul.f32 %v4911_v11, %v2948_v39 }
 0x5e7   : > { %v3169_v56 = vmax.f32 %v3137_v36, 0.0  ;;  %v3084_v7 = vmul.f32 %v6384_v15, %v3045_v32 }
 0x5e8   : > { %v4913_v41 = vpop.eup %4912  ;;  %4538 = vmatprep.mubr.bf16.mxu0 %v3178_v18  ;;  %v3168_v20 = vmax.f32 %v3136_v22, 0.0  ;;  %v3083_v30 = vmul.f32 %v6384_v15, %v3044_v57 }
 0x5e9   : > { %v4915_v13 = vpop.eup %4914  ;;  %v3123_v59 = vadd.f32 %v6387_v5, %v3084_v7  ;;  %v3061_v14 = vmul.f32 %v4913_v41, %v2965_v38 }
 0x5ea   : > { %v3186_v44 = vpack.c.bf16 %v3169_v56, %v3168_v20  ;;  %v3122_v2 = vadd.f32 %v6387_v5, %v3083_v30  ;;  %v3060_v50 = vmul.f32 %v4915_v13, %v2964_v16 }
 0x5eb   : > { %v3155_v35 = vmax.f32 %v3123_v59, 0.0  ;;  %v3100_v58 = vmul.f32 %v6384_v15, %v3061_v14 }
 0x5ec   : > { %4554 = vmatprep.mubr.bf16.mxu1 %v3186_v44  ;;  %v3154_v31 = vmax.f32 %v3122_v2, 0.0  ;;  %v3099_v21 = vmul.f32 %v6384_v15, %v3060_v50 }
 0x5ed   : > { %v3139_v19 = vadd.f32 %v6387_v5, %v3100_v58 }
 0x5ee   : > { %v3179_v46 = vpack.c.bf16 %v3155_v35, %v3154_v31  ;;  %v3138_v55 = vadd.f32 %v6387_v5, %v3099_v21 }
 0x5ef   : > { %v3171_v49 = vmax.f32 %v3139_v19, 0.0 }
 0x5f0   : > { %4539 = vmatmul.mubr.bf16.gmra.mrb[12].mxu0 %v3179_v46  ;;  %v3170_v51 = vmax.f32 %v3138_v55, 0.0 }
 0x5f2   : > { %v3187_v26 = vpack.c.bf16 %v3171_v49, %v3170_v51 }
 0x5f4   : > { %4555 = vmatmul.mubr.bf16.gmra.mrb[12].mxu1 %v3187_v26 }
 0x663   : > { %v4528_v52 = vpop.f32.mrb[0].mxu0 }
 0x664   : > { %v3286_v60 = vpop.f32.mrb[1].mxu0 }
 0x665   : > { %v4529_v10 = vpop.f32.mrb[2].mxu0 }
 0x666   : > { %v3414_v29 = vpack.c.bf16 %v4529_v10, %v4528_v52  ;;  %v3289_v42 = vpop.f32.mrb[3].mxu0 }
 0x667   : > { %v3413_v43 = vpack.c.bf16 %v3289_v42, %v3286_v60  ;;  %v4544_v40 = vpop.f32.mrb[0].mxu1 }
 0x668   : > { %3434 = vst [vmem:[%s6610_s22 + $0x8] sm:$0xff] %v3414_v29  ;;  %v3350_v15 = vpop.f32.mrb[1].mxu1 }
 0x669   : > { %3433 = vst [vmem:[%s6610_s22] sm:$0xff] %v3413_v43  ;;  %v4545_v5 = vpop.f32.mrb[2].mxu1 }
 0x66a   : > { %v3422_v48 = vpack.c.bf16 %v4545_v5, %v4544_v40  ;;  %v3353_v47 = vpop.f32.mrb[3].mxu1 }
 0x66b   : > { %v3421_v24 = vpack.c.bf16 %v3353_v47, %v3350_v15 }
 0x66c   : > { %3442 = vst [vmem:[%s6610_s22 + $0x48] sm:$0xff] %v3422_v48 }
 0x66d   : > { %3441 = vst [vmem:[%s6610_s22 + $0x40] sm:$0xff] %v3421_v24 }
 0x683   : > { %v4532_v53 = vpop.f32.mrb[4].mxu0 }
 0x684   : > { %v3302_v9 = vpop.f32.mrb[5].mxu0 }
 0x685   : > { %v4533_v61 = vpop.f32.mrb[6].mxu0 }
 0x686   : > { %v3416_v63 = vpack.c.bf16 %v4533_v61, %v4532_v53  ;;  %v3305_v17 = vpop.f32.mrb[7].mxu0 }
 0x687   : > { %v3415_v25 = vpack.c.bf16 %v3305_v17, %v3302_v9  ;;  %v4548_v8 = vpop.f32.mrb[4].mxu1 }
 0x688   : > { %3436 = vst [vmem:[%s6610_s22 + $0x18] sm:$0xff] %v3416_v63  ;;  %v3366_v45 = vpop.f32.mrb[5].mxu1 }
 0x689   : > { %3435 = vst [vmem:[%s6610_s22 + $0x10] sm:$0xff] %v3415_v25  ;;  %v4549_v3 = vpop.f32.mrb[6].mxu1 }
 0x68a   : > { %v3424_v6 = vpack.c.bf16 %v4549_v3, %v4548_v8  ;;  %v3369_v34 = vpop.f32.mrb[7].mxu1 }
 0x68b   : > { %v3423_v1 = vpack.c.bf16 %v3369_v34, %v3366_v45 }
 0x68c   : > { %3444 = vst [vmem:[%s6610_s22 + $0x58] sm:$0xff] %v3424_v6 }
 0x68d   : > { %3443 = vst [vmem:[%s6610_s22 + $0x50] sm:$0xff] %v3423_v1 }
 0x6a3   : > { %v4536_v27 = vpop.f32.mrb[8].mxu0 }
 0x6a4   : > { %v3318_v37 = vpop.f32.mrb[9].mxu0 }
 0x6a5   : > { %v4537_v33 = vpop.f32.mrb[10].mxu0 }
 0x6a6   : > { %v3418_v23 = vpack.c.bf16 %v4537_v33, %v4536_v27  ;;  %v3321_v12 = vpop.f32.mrb[11].mxu0 }
 0x6a7   : > { %v3417_v28 = vpack.c.bf16 %v3321_v12, %v3318_v37  ;;  %v4552_v4 = vpop.f32.mrb[8].mxu1 }
 0x6a8   : > { %3438 = vst [vmem:[%s6610_s22 + $0x28] sm:$0xff] %v3418_v23  ;;  %v3382_v54 = vpop.f32.mrb[9].mxu1 }
 0x6a9   : > { %3437 = vst [vmem:[%s6610_s22 + $0x20] sm:$0xff] %v3417_v28  ;;  %v4553_v39 = vpop.f32.mrb[10].mxu1 }
 0x6aa   : > { %v3426_v0 = vpack.c.bf16 %v4553_v39, %v4552_v4  ;;  %v3385_v62 = vpop.f32.mrb[11].mxu1 }
 0x6ab   : > { %v3425_v11 = vpack.c.bf16 %v3385_v62, %v3382_v54 }
 0x6ac   : > { %3446 = vst [vmem:[%s6610_s22 + $0x68] sm:$0xff] %v3426_v0 }
 0x6ad   : > { %3445 = vst [vmem:[%s6610_s22 + $0x60] sm:$0xff] %v3425_v11 }
 0x6c3   : > { %v4540_v36 = vpop.f32.mrb[12].mxu0 }
 0x6c4   : > { %v3334_v32 = vpop.f32.mrb[13].mxu0 }
 0x6c5   : > { %v4541_v18 = vpop.f32.mrb[14].mxu0 }
 0x6c6   : > { %v3420_v22 = vpack.c.bf16 %v4541_v18, %v4540_v36  ;;  %v3337_v57 = vpop.f32.mrb[15].mxu0 }
 0x6c7   : > { %v3419_v38 = vpack.c.bf16 %v3337_v57, %v3334_v32  ;;  %v4556_v56 = vpop.f32.mrb[12].mxu1 }
 0x6c8   : > { %3440 = vst [vmem:[%s6610_s22 + $0x38] sm:$0xff] %v3420_v22  ;;  %v3398_v7 = vpop.f32.mrb[13].mxu1 }
 0x6c9   : > { %3439 = vst [vmem:[%s6610_s22 + $0x30] sm:$0xff] %v3419_v38  ;;  %v4557_v41 = vpop.f32.mrb[14].mxu1 }
 0x6ca   : > { %v3428_v16 = vpack.c.bf16 %v4557_v41, %v4556_v56  ;;  %v3401_v20 = vpop.f32.mrb[15].mxu1 }
 0x6cb   : > { %v3427_v30 = vpack.c.bf16 %v3401_v20, %v3398_v7 }
 0x6cc   : > { %3448 = vst [vmem:[%s6610_s22 + $0x78] sm:$0xff] %v3428_v16 }
 0x6cd   : > { %3447 = vst [vmem:[%s6610_s22 + $0x70] sm:$0xff] %v3427_v30 }
 0x6ce PF: > { %p4149_p0 = scmp.ne.s32.totalorder %s5242_s30, 3 }
 0x6cf   : > { %v3454_v13 = vld [vmem:[#allocation13] sm:$0xff] (!%p4149_p0)  ;;  %v3456_v14 = vld [vmem:[#allocation13 + $0x10] sm:$0xff] (!%p4149_p0)  ;;  %v3455_v50 = vld [vmem:[#allocation13 + $0x8] sm:$0xff] (!%p4149_p0) }
 0x6d0   : > { %3452 = sbr.rel (%p4149_p0) target bundleno = 2126 (0x84e), region = 84  ;;  %v6632_v59 = vld [vmem:[%s6970_s7] ss:$0 sm:$0xff] (!%p4149_p0)  ;;  %v3457_v35 = vld [vmem:[#allocation13 + $0x18] sm:$0xff] (!%p4149_p0)  ;;  %v3459_v19 = vld [vmem:[#allocation13 + $0x28] sm:$0xff] (!%p4149_p0) }
 0x6d1   : > { %v6635_v44 = vadd.f32 (!%p4149_p0), %v6632_v59, %v3454_v13  ;;  %v6638_v2 = vadd.f32 (!%p4149_p0), %v6632_v59, %v3456_v14  ;;  %v6643_v58 = vadd.f32 (!%p4149_p0), %v6632_v59, %v3455_v50  ;;  %v6646_v31 = vadd.f32 (!%p4149_p0), %v6632_v59, %v3457_v35  ;;  %v3458_v21 = vld [vmem:[#allocation13 + $0x20] sm:$0xff] (!%p4149_p0)  ;;  %v3460_v49 = vld [vmem:[#allocation13 + $0x30] sm:$0xff] (!%p4149_p0)  ;;  %v3461_v51 = vld [vmem:[#allocation13 + $0x38] sm:$0xff] (!%p4149_p0) }
 0x6d2   : > { %v6651_v46 = vadd.f32 (!%p4149_p0), %v6632_v59, %v3458_v21  ;;  %v6654_v55 = vadd.f32 (!%p4149_p0), %v6632_v59, %v3459_v19  ;;  %v6659_v26 = vadd.f32 (!%p4149_p0), %v6632_v59, %v3460_v49  ;;  %v6662_v52 = vadd.f32 (!%p4149_p0), %v6632_v59, %v3461_v51  ;;  %v3462_v60 = vld [vmem:[#allocation13 + $0x40] sm:$0xff] (!%p4149_p0)  ;;  %v3463_v10 = vld [vmem:[#allocation13 + $0x48] sm:$0xff] (!%p4149_p0)  ;;  %v3464_v43 = vld [vmem:[#allocation13 + $0x50] sm:$0xff] (!%p4149_p0) }
 0x6d3   : > { %3525 = vmax.xlane.f32.xlu0 (!%p4149_p0), %v6635_v44  ;;  %3529 = vmax.xlane.f32.xlu1 (!%p4149_p0), %v6638_v2  ;;  %v6667_v29 = vadd.f32 (!%p4149_p0), %v6632_v59, %v3462_v60  ;;  %v6670_v42 = vadd.f32 (!%p4149_p0), %v6632_v59, %v3463_v10  ;;  %v3465_v40 = vld [vmem:[#allocation13 + $0x58] sm:$0xff] (!%p4149_p0)  ;;  %v6675_v15 = vadd.f32 (!%p4149_p0), %v6632_v59, %v3464_v43  ;;  %v3466_v48 = vld [vmem:[#allocation13 + $0x60] sm:$0xff] (!%p4149_p0)  ;;  %v3467_v47 = vld [vmem:[#allocation13 + $0x68] sm:$0xff] (!%p4149_p0) }
 0x6d4   : > { %v6678_v5 = vadd.f32 (!%p4149_p0), %v6632_v59, %v3465_v40  ;;  %v6683_v24 = vadd.f32 (!%p4149_p0), %v6632_v59, %v3466_v48  ;;  %v6686_v53 = vadd.f32 (!%p4149_p0), %v6632_v59, %v3467_v47  ;;  %v3468_v9 = vld [vmem:[#allocation13 + $0x70] sm:$0xff] (!%p4149_p0)  ;;  %v3469_v61 = vld [vmem:[#allocation13 + $0x78] sm:$0xff] (!%p4149_p0)  ;;  %v3470_v25 = vld [vmem:[#allocation13 + $0x80] sm:$0xff] (!%p4149_p0) }
 0x6d5   : > { %v6691_v63 = vadd.f32 (!%p4149_p0), %v6632_v59, %v3468_v9  ;;  %v6694_v17 = vadd.f32 (!%p4149_p0), %v6632_v59, %v3469_v61  ;;  %v3471_v8 = vld [vmem:[#allocation13 + $0x88] sm:$0xff] (!%p4149_p0)  ;;  %v6699_v45 = vadd.f32 (!%p4149_p0), %v6632_v59, %v3470_v25  ;;  %v3472_v6 = vld [vmem:[#allocation13 + $0x90] sm:$0xff] (!%p4149_p0)  ;;  %v3473_v34 = vld [vmem:[#allocation13 + $0x98] sm:$0xff] (!%p4149_p0) }
 0x6d6   : > { %v6702_v3 = vadd.f32 (!%p4149_p0), %v6632_v59, %v3471_v8  ;;  %v6707_v1 = vadd.f32 (!%p4149_p0), %v6632_v59, %v3472_v6  ;;  %v6710_v27 = vadd.f32 (!%p4149_p0), %v6632_v59, %v3473_v34  ;;  %v3474_v37 = vld [vmem:[#allocation13 + $0xa0] sm:$0xff] (!%p4149_p0)  ;;  %v3475_v33 = vld [vmem:[#allocation13 + $0xa8] sm:$0xff] (!%p4149_p0)  ;;  %v3476_v28 = vld [vmem:[#allocation13 + $0xb0] sm:$0xff] (!%p4149_p0) }
 0x6d7   : > { %3527 = vmax.xlane.f32.xlu0 %v6643_v58  ;;  %3531 = vmax.xlane.f32.xlu1 %v6646_v31  ;;  %v6715_v23 = vadd.f32 %v6632_v59, %v3474_v37  ;;  %v6718_v12 = vadd.f32 %v6632_v59, %v3475_v33  ;;  %v3477_v4 = vld [vmem:[#allocation13 + $0xb8] sm:$0xff]  ;;  %v6723_v54 = vadd.f32 %v6632_v59, %v3476_v28  ;;  %v3478_v0 = vld [vmem:[#allocation13 + $0xc0] sm:$0xff]  ;;  %v3479_v62 = vld [vmem:[#allocation13 + $0xc8] sm:$0xff] }
 0x6d8   : > { %v6726_v39 = vadd.f32 %v6632_v59, %v3477_v4  ;;  %v6731_v11 = vadd.f32 %v6632_v59, %v3478_v0  ;;  %v6734_v36 = vadd.f32 %v6632_v59, %v3479_v62  ;;  %v3480_v32 = vld [vmem:[#allocation13 + $0xd0] sm:$0xff]  ;;  %v3481_v18 = vld [vmem:[#allocation13 + $0xd8] sm:$0xff]  ;;  %v3482_v38 = vld [vmem:[#allocation13 + $0xe0] sm:$0xff] }
 0x6d9   : > { %v6739_v22 = vadd.f32 %v6632_v59, %v3480_v32  ;;  %v6742_v57 = vadd.f32 %v6632_v59, %v3481_v18  ;;  %v3483_v56 = vld [vmem:[#allocation13 + $0xe8] sm:$0xff]  ;;  %v6747_v7 = vadd.f32 %v6632_v59, %v3482_v38  ;;  %v3484_v16 = vld [vmem:[#allocation13 + $0xf0] sm:$0xff]  ;;  %v3485_v20 = vld [vmem:[#allocation13 + $0xf8] sm:$0xff] }
 0x6da   : > { %v6750_v41 = vadd.f32 %v6632_v59, %v3483_v56  ;;  %v6755_v30 = vadd.f32 %v6632_v59, %v3484_v16  ;;  %v6758_v13 = vadd.f32 %v6632_v59, %v3485_v20 }
 0x6db   : > { %3533 = vmax.xlane.f32.xlu0 %v6651_v46  ;;  %3535 = vmax.xlane.f32.xlu1 %v6654_v55 }
 0x6df   : > { %3537 = vmax.xlane.f32.xlu0 %v6659_v26  ;;  %3539 = vmax.xlane.f32.xlu1 %v6662_v52 }
 0x6e3   : > { %3541 = vmax.xlane.f32.xlu0 %v6667_v29  ;;  %3543 = vmax.xlane.f32.xlu1 %v6670_v42 }
 0x6e7   : > { %3545 = vmax.xlane.f32.xlu0 %v6675_v15  ;;  %3547 = vmax.xlane.f32.xlu1 %v6678_v5 }
 0x6eb   : > { %3549 = vmax.xlane.f32.xlu0 %v6683_v24  ;;  %3551 = vmax.xlane.f32.xlu1 %v6686_v53 }
 0x6ef   : > { %3553 = vmax.xlane.f32.xlu0 %v6691_v63  ;;  %3555 = vmax.xlane.f32.xlu1 %v6694_v17 }
 0x6f3   : > { %3557 = vmax.xlane.f32.xlu0 %v6699_v45  ;;  %3559 = vmax.xlane.f32.xlu1 %v6702_v3 }
 0x6f7   : > { %3561 = vmax.xlane.f32.xlu0 %v6707_v1  ;;  %3563 = vmax.xlane.f32.xlu1 %v6710_v27 }
 0x6fb   : > { %3565 = vmax.xlane.f32.xlu0 %v6715_v23  ;;  %3567 = vmax.xlane.f32.xlu1 %v6718_v12 }
 0x6ff   : > { %3569 = vmax.xlane.f32.xlu0 %v6723_v54  ;;  %3571 = vmax.xlane.f32.xlu1 %v6726_v39 }
 0x703   : > { %3573 = vmax.xlane.f32.xlu0 %v6731_v11  ;;  %3575 = vmax.xlane.f32.xlu1 %v6734_v36 }
 0x707   : > { %3577 = vmax.xlane.f32.xlu0 %v6739_v22  ;;  %3579 = vmax.xlane.f32.xlu1 %v6742_v57 }
 0x70b   : > { %3581 = vmax.xlane.f32.xlu0 %v6747_v7  ;;  %3583 = vmax.xlane.f32.xlu1 %v6750_v41 }
 0x70f   : > { %3585 = vmax.xlane.f32.xlu0 %v6755_v30  ;;  %3587 = vmax.xlane.f32.xlu1 %v6758_v13 }
 0x760   : > { %v3526_v14 = vpop.xlane.xlu0 %3525  ;;  %v3530_v50 = vpop.xlane.xlu1 %3529 }
 0x761   : > { %v6763_v35 = vsub.f32 %v6635_v44, %v3526_v14  ;;  %v6766_v21 = vsub.f32 %v6638_v2, %v3530_v50 }
 0x763   : > { %v3621_v19 = vmul.f32 1.442695, %v6763_v35  ;;  %v3625_v49 = vmul.f32 1.442695, %v6766_v21 }
 0x764   : > { %v3528_v51 = vpop.xlane.xlu0 %3527  ;;  %v3532_v60 = vpop.xlane.xlu1 %3531 }
 0x765   : > { %4916 = vpow2.f32 %v3621_v19  ;;  %v6771_v59 = vsub.f32 %v6643_v58, %v3528_v51  ;;  %v6774_v10 = vsub.f32 %v6646_v31, %v3532_v60 }
 0x766   : > { %4918 = vpow2.f32 %v3625_v49 }
 0x767   : > { %v3623_v44 = vmul.f32 1.442695, %v6771_v59  ;;  %v3627_v43 = vmul.f32 1.442695, %v6774_v10 }
 0x768   : > { %v3534_v2 = vpop.xlane.xlu0 %3533  ;;  %v3536_v40 = vpop.xlane.xlu1 %3535 }
 0x769   : > { %4920 = vpow2.f32 %v3623_v44  ;;  %v6779_v48 = vsub.f32 %v6651_v46, %v3534_v2  ;;  %v6782_v47 = vsub.f32 %v6654_v55, %v3536_v40 }
 0x76a   : > { %4922 = vpow2.f32 %v3627_v43 }
 0x76b   : > { %v3629_v58 = vmul.f32 1.442695, %v6779_v48  ;;  %v3631_v31 = vmul.f32 1.442695, %v6782_v47 }
 0x76c   : > { %v3538_v9 = vpop.xlane.xlu0 %3537  ;;  %v3540_v61 = vpop.xlane.xlu1 %3539 }
 0x76d   : > { %4924 = vpow2.f32 %v3629_v58  ;;  %v6787_v25 = vsub.f32 %v6659_v26, %v3538_v9  ;;  %v6790_v8 = vsub.f32 %v6662_v52, %v3540_v61 }
 0x76e   : > { %4926 = vpow2.f32 %v3631_v31 }
 0x76f   : > { %v4917_v6 = vpop.eup %4916  ;;  %v3633_v46 = vmul.f32 1.442695, %v6787_v25  ;;  %v3635_v55 = vmul.f32 1.442695, %v6790_v8 }
 0x770   : > { %3685 = vadd.xlane.f32.xlu0 %v4917_v6  ;;  %v3542_v34 = vpop.xlane.xlu0 %3541  ;;  %v3544_v37 = vpop.xlane.xlu1 %3543 }
 0x771   : > { %v4919_v33 = vpop.eup %4918  ;;  %4928 = vpow2.f32 %v3633_v46  ;;  %v6795_v28 = vsub.f32 %v6667_v29, %v3542_v34  ;;  %v6798_v26 = vsub.f32 %v6670_v42, %v3544_v37 }
 0x772   : > { %4930 = vpow2.f32 %v3635_v55 }
 0x773   : > { %v4921_v4 = vpop.eup %4920  ;;  %v3637_v52 = vmul.f32 1.442695, %v6795_v28  ;;  %v3639_v0 = vmul.f32 1.442695, %v6798_v26 }
 0x774   : > { %3689 = vadd.xlane.f32.xlu0 %v4919_v33  ;;  %3687 = vadd.xlane.f32.xlu1 %v4921_v4  ;;  %v3546_v62 = vpop.xlane.xlu0 %3545  ;;  %v3548_v32 = vpop.xlane.xlu1 %3547 }
 0x775   : > { %v4923_v18 = vpop.eup %4922  ;;  %4932 = vpow2.f32 %v3637_v52  ;;  %v6803_v38 = vsub.f32 %v6675_v15, %v3546_v62  ;;  %v6806_v29 = vsub.f32 %v6678_v5, %v3548_v32 }
 0x776   : > { %4934 = vpow2.f32 %v3639_v0 }
 0x777   : > { %v4925_v42 = vpop.eup %4924  ;;  %v3641_v56 = vmul.f32 1.442695, %v6803_v38  ;;  %v3643_v16 = vmul.f32 1.442695, %v6806_v29 }
 0x778   : > { %3691 = vadd.xlane.f32.xlu1 %v4923_v18  ;;  %3693 = vadd.xlane.f32.xlu0 %v4925_v42  ;;  %v3550_v20 = vpop.xlane.xlu0 %3549  ;;  %v3552_v14 = vpop.xlane.xlu1 %3551 }
 0x779   : > { %v4927_v50 = vpop.eup %4926  ;;  %4936 = vpow2.f32 %v3641_v56  ;;  %v6811_v19 = vsub.f32 %v6683_v24, %v3550_v20  ;;  %v6814_v15 = vsub.f32 %v6686_v53, %v3552_v14 }
 0x77a   : > { %4938 = vpow2.f32 %v3643_v16 }
 0x77b   : > { %v4929_v5 = vpop.eup %4928  ;;  %v3645_v49 = vmul.f32 1.442695, %v6811_v19  ;;  %v3647_v51 = vmul.f32 1.442695, %v6814_v15 }
 0x77c   : > { %3695 = vadd.xlane.f32.xlu1 %v4927_v50  ;;  %3697 = vadd.xlane.f32.xlu0 %v4929_v5  ;;  %v3554_v60 = vpop.xlane.xlu0 %3553  ;;  %v3556_v44 = vpop.xlane.xlu1 %3555 }
 0x77d   : > { %v4931_v43 = vpop.eup %4930  ;;  %4940 = vpow2.f32 %v3645_v49  ;;  %v6819_v2 = vsub.f32 %v6691_v63, %v3554_v60  ;;  %v6822_v24 = vsub.f32 %v6694_v17, %v3556_v44 }
 0x77e   : > { %4942 = vpow2.f32 %v3647_v51 }
 0x77f   : > { %v4933_v53 = vpop.eup %4932  ;;  %v3649_v40 = vmul.f32 1.442695, %v6819_v2  ;;  %v3651_v58 = vmul.f32 1.442695, %v6822_v24 }
 0x780   : > { %3699 = vadd.xlane.f32.xlu1 %v4931_v43  ;;  %3701 = vadd.xlane.f32.xlu0 %v4933_v53  ;;  %v3558_v31 = vpop.xlane.xlu0 %3557  ;;  %v3560_v9 = vpop.xlane.xlu1 %3559 }
 0x781   : > { %v4935_v61 = vpop.eup %4934  ;;  %4944 = vpow2.f32 %v3649_v40  ;;  %v6827_v6 = vsub.f32 %v6699_v45, %v3558_v31  ;;  %v6830_v63 = vsub.f32 %v6702_v3, %v3560_v9 }
 0x782   : > { %4946 = vpow2.f32 %v3651_v58 }
 0x783   : > { %v4937_v17 = vpop.eup %4936  ;;  %v3653_v46 = vmul.f32 1.442695, %v6827_v6  ;;  %v3655_v55 = vmul.f32 1.442695, %v6830_v63 }
 0x784   : > { %3703 = vadd.xlane.f32.xlu1 %v4935_v61  ;;  %3705 = vadd.xlane.f32.xlu0 %v4937_v17  ;;  %v3562_v34 = vpop.xlane.xlu0 %3561  ;;  %v3564_v37 = vpop.xlane.xlu1 %3563 }
 0x785   : > { %v4939_v33 = vpop.eup %4938  ;;  %4948 = vpow2.f32 %v3653_v46  ;;  %v6835_v4 = vsub.f32 %v6707_v1, %v3562_v34  ;;  %v6838_v45 = vsub.f32 %v6710_v27, %v3564_v37 }
 0x786   : > { %4950 = vpow2.f32 %v3655_v55 }
 0x787   : > { %v4941_v3 = vpop.eup %4940  ;;  %v3657_v52 = vmul.f32 1.442695, %v6835_v4  ;;  %v3659_v0 = vmul.f32 1.442695, %v6838_v45 }
 0x788   : > { %3707 = vadd.xlane.f32.xlu1 %v4939_v33  ;;  %3709 = vadd.xlane.f32.xlu0 %v4941_v3  ;;  %v3566_v62 = vpop.xlane.xlu0 %3565  ;;  %v3568_v32 = vpop.xlane.xlu1 %3567 }
 0x789   : > { %v4943_v18 = vpop.eup %4942  ;;  %4952 = vpow2.f32 %v3657_v52  ;;  %v6843_v42 = vsub.f32 %v6715_v23, %v3566_v62  ;;  %v6846_v1 = vsub.f32 %v6718_v12, %v3568_v32 }
 0x78a   : > { %4954 = vpow2.f32 %v3659_v0 }
 0x78b   : > { %v4945_v27 = vpop.eup %4944  ;;  %v3661_v56 = vmul.f32 1.442695, %v6843_v42  ;;  %v3663_v16 = vmul.f32 1.442695, %v6846_v1 }
 0x78c   : > { %3711 = vadd.xlane.f32.xlu1 %v4943_v18  ;;  %3713 = vadd.xlane.f32.xlu0 %v4945_v27  ;;  %v3570_v20 = vpop.xlane.xlu0 %3569  ;;  %v3572_v14 = vpop.xlane.xlu1 %3571 }
 0x78d   : > { %v4947_v50 = vpop.eup %4946  ;;  %4956 = vpow2.f32 %v3661_v56  ;;  %v6851_v5 = vsub.f32 %v6723_v54, %v3570_v20  ;;  %v6854_v23 = vsub.f32 %v6726_v39, %v3572_v14 }
 0x78e   : > { %4958 = vpow2.f32 %v3663_v16 }
 0x78f   : > { %v4949_v12 = vpop.eup %4948  ;;  %v3665_v49 = vmul.f32 1.442695, %v6851_v5  ;;  %v3667_v51 = vmul.f32 1.442695, %v6854_v23 }
 0x790   : > { %3715 = vadd.xlane.f32.xlu1 %v4947_v50  ;;  %3717 = vadd.xlane.f32.xlu0 %v4949_v12  ;;  %v3574_v60 = vpop.xlane.xlu0 %3573  ;;  %v3576_v44 = vpop.xlane.xlu1 %3575 }
 0x791   : > { %v4951_v43 = vpop.eup %4950  ;;  %4960 = vpow2.f32 %v3665_v49  ;;  %v6859_v53 = vsub.f32 %v6731_v11, %v3574_v60  ;;  %v6862_v54 = vsub.f32 %v6734_v36, %v3576_v44 }
 0x792   : > { %4962 = vpow2.f32 %v3667_v51 }
 0x793   : > { %v4953_v39 = vpop.eup %4952  ;;  %v3669_v40 = vmul.f32 1.442695, %v6859_v53  ;;  %v3671_v58 = vmul.f32 1.442695, %v6862_v54 }
 0x794   : > { %3719 = vadd.xlane.f32.xlu1 %v4951_v43  ;;  %3721 = vadd.xlane.f32.xlu0 %v4953_v39  ;;  %v3578_v31 = vpop.xlane.xlu0 %3577  ;;  %v3580_v9 = vpop.xlane.xlu1 %3579 }
 0x795   : > { %v4955_v61 = vpop.eup %4954  ;;  %4964 = vpow2.f32 %v3669_v40  ;;  %v6867_v17 = vsub.f32 %v6739_v22, %v3578_v31  ;;  %v6870_v11 = vsub.f32 %v6742_v57, %v3580_v9 }
 0x796   : > { %4966 = vpow2.f32 %v3671_v58 }
 0x797   : > { %v4957_v36 = vpop.eup %4956  ;;  %v3673_v46 = vmul.f32 1.442695, %v6867_v17  ;;  %v3675_v55 = vmul.f32 1.442695, %v6870_v11 }
 0x798   : > { %3723 = vadd.xlane.f32.xlu1 %v4955_v61  ;;  %3725 = vadd.xlane.f32.xlu0 %v4957_v36  ;;  %v3582_v34 = vpop.xlane.xlu0 %3581  ;;  %v3584_v37 = vpop.xlane.xlu1 %3583 }
 0x799   : > { %v4959_v33 = vpop.eup %4958  ;;  %4968 = vpow2.f32 %v3673_v46  ;;  %v6875_v3 = vsub.f32 %v6747_v7, %v3582_v34  ;;  %v6878_v22 = vsub.f32 %v6750_v41, %v3584_v37 }
 0x79a   : > { %4970 = vpow2.f32 %v3675_v55 }
 0x79b   : > { %v4961_v57 = vpop.eup %4960  ;;  %v3677_v52 = vmul.f32 1.442695, %v6875_v3  ;;  %v3679_v0 = vmul.f32 1.442695, %v6878_v22 }
 0x79c   : > { %3727 = vadd.xlane.f32.xlu1 %v4959_v33  ;;  %3729 = vadd.xlane.f32.xlu0 %v4961_v57  ;;  %v3586_v62 = vpop.xlane.xlu0 %3585  ;;  %v3588_v32 = vpop.xlane.xlu1 %3587 }
 0x79d   : > { %v4963_v18 = vpop.eup %4962  ;;  %4972 = vpow2.f32 %v3677_v52  ;;  %v6883_v27 = vsub.f32 %v6755_v30, %v3586_v62  ;;  %v6886_v7 = vsub.f32 %v6758_v13, %v3588_v32 }
 0x79e   : > { %4974 = vpow2.f32 %v3679_v0 }
 0x79f   : > { %v4965_v41 = vpop.eup %4964  ;;  %v3681_v56 = vmul.f32 1.442695, %v6883_v27  ;;  %v3683_v16 = vmul.f32 1.442695, %v6886_v7 }
 0x7a0   : > { %3731 = vadd.xlane.f32.xlu1 %v4963_v18  ;;  %3733 = vadd.xlane.f32.xlu0 %v4965_v41  ;;  %v4967_v20 = vpop.eup %4966 }
 0x7a1   : > { %4976 = vpow2.f32 %v3681_v56 }
 0x7a2   : > { %4978 = vpow2.f32 %v3683_v16 }
 0x7a3   : > { %v4969_v14 = vpop.eup %4968 }
 0x7a4   : > { %3735 = vadd.xlane.f32.xlu1 %v4967_v20  ;;  %3737 = vadd.xlane.f32.xlu0 %v4969_v14  ;;  %v4971_v50 = vpop.eup %4970 }
 0x7a7   : > { %v4973_v30 = vpop.eup %4972 }
 0x7a8   : > { %3739 = vadd.xlane.f32.xlu1 %v4971_v50  ;;  %3741 = vadd.xlane.f32.xlu0 %v4973_v30  ;;  %v4975_v13 = vpop.eup %4974 }
 0x7ab   : > { %v4977_v12 = vpop.eup %4976 }
 0x7ac   : > { %3743 = vadd.xlane.f32.xlu1 %v4975_v13  ;;  %3745 = vadd.xlane.f32.xlu0 %v4977_v12  ;;  %v4979_v49 = vpop.eup %4978 }
 0x7b0   : > { %3747 = vadd.xlane.f32.xlu1 %v4979_v49 }
 0x7fd   : > { %v3686_v51 = vpop.xlane.xlu0 %3685 }
 0x7fe   : > { %4980 = vlog2.f32 %v3686_v51 }
 0x801   : > { %v3688_v60 = vpop.xlane.xlu1 %3687  ;;  %v3690_v44 = vpop.xlane.xlu0 %3689 }
 0x802   : > { %4982 = vlog2.f32 %v3688_v60 }
 0x803   : > { %4984 = vlog2.f32 %v3690_v44 }
 0x805   : > { %v3692_v43 = vpop.xlane.xlu1 %3691  ;;  %v3694_v39 = vpop.xlane.xlu0 %3693 }
 0x806   : > { %4986 = vlog2.f32 %v3692_v43 }
 0x807   : > { %4988 = vlog2.f32 %v3694_v39 }
 0x808   : > { %v4981_v40 = vpop.eup %4980 }
 0x809   : > { %v3750_v58 = vmul.f32 0.6931472, %v4981_v40  ;;  %v3696_v31 = vpop.xlane.xlu1 %3695  ;;  %v3698_v9 = vpop.xlane.xlu0 %3697 }
 0x80a   : > { %4990 = vlog2.f32 %v3696_v31 }
 0x80b   : > { %v3813_v61 = vsub.f32 %v6763_v35, %v3750_v58  ;;  %4992 = vlog2.f32 %v3698_v9 }
 0x80c   : > { %v4983_v36 = vpop.eup %4982 }
 0x80d   : > { %v4985_v46 = vpop.eup %4984  ;;  %3845 = vst [vmem:[#allocation13] sm:$0xff] %v3813_v61  ;;  %v3752_v55 = vmul.f32 0.6931472, %v4983_v36  ;;  %v3700_v34 = vpop.xlane.xlu1 %3699 }
 0x80e   : > { %v3702_v37 = vpop.xlane.xlu0 %3701  ;;  %v3754_v33 = vmul.f32 0.6931472, %v4985_v46  ;;  %4994 = vlog2.f32 %v3700_v34 }
 0x80f   : > { %v3814_v57 = vsub.f32 %v6771_v59, %v3752_v55  ;;  %4996 = vlog2.f32 %v3702_v37 }
 0x810   : > { %v4987_v52 = vpop.eup %4986  ;;  %v3815_v0 = vsub.f32 %v6766_v21, %v3754_v33 }
 0x811   : > { %v4989_v62 = vpop.eup %4988  ;;  %3846 = vst [vmem:[#allocation13 + $0x8] sm:$0xff] %v3814_v57  ;;  %v3756_v32 = vmul.f32 0.6931472, %v4987_v52  ;;  %v3704_v18 = vpop.xlane.xlu1 %3703 }
 0x812   : > { %v3706_v35 = vpop.xlane.xlu0 %3705  ;;  %3847 = vst [vmem:[#allocation13 + $0x10] sm:$0xff] %v3815_v0  ;;  %v3758_v41 = vmul.f32 0.6931472, %v4989_v62  ;;  %4998 = vlog2.f32 %v3704_v18 }
 0x813   : > { %v3816_v56 = vsub.f32 %v6774_v10, %v3756_v32  ;;  %5000 = vlog2.f32 %v3706_v35 }
 0x814   : > { %v4991_v16 = vpop.eup %4990  ;;  %v3817_v20 = vsub.f32 %v6779_v48, %v3758_v41 }
 0x815   : > { %v4993_v14 = vpop.eup %4992  ;;  %3848 = vst [vmem:[#allocation13 + $0x18] sm:$0xff] %v3816_v56  ;;  %v3760_v59 = vmul.f32 0.6931472, %v4991_v16  ;;  %v3708_v50 = vpop.xlane.xlu1 %3707 }
 0x816   : > { %v3710_v30 = vpop.xlane.xlu0 %3709  ;;  %3849 = vst [vmem:[#allocation13 + $0x20] sm:$0xff] %v3817_v20  ;;  %v3762_v21 = vmul.f32 0.6931472, %v4993_v14  ;;  %5002 = vlog2.f32 %v3708_v50 }
 0x817   : > { %v3818_v13 = vsub.f32 %v6782_v47, %v3760_v59  ;;  %5004 = vlog2.f32 %v3710_v30 }
 0x818   : > { %v4995_v12 = vpop.eup %4994  ;;  %v3819_v49 = vsub.f32 %v6787_v25, %v3762_v21 }
 0x819   : > { %v4997_v51 = vpop.eup %4996  ;;  %3850 = vst [vmem:[#allocation13 + $0x28] sm:$0xff] %v3818_v13  ;;  %v3764_v10 = vmul.f32 0.6931472, %v4995_v12  ;;  %v3712_v60 = vpop.xlane.xlu1 %3711 }
 0x81a   : > { %v3714_v44 = vpop.xlane.xlu0 %3713  ;;  %3851 = vst [vmem:[#allocation13 + $0x30] sm:$0xff] %v3819_v49  ;;  %v3766_v48 = vmul.f32 0.6931472, %v4997_v51  ;;  %5006 = vlog2.f32 %v3712_v60 }
 0x81b   : > { %v3820_v43 = vsub.f32 %v6790_v8, %v3764_v10  ;;  %5008 = vlog2.f32 %v3714_v44 }
 0x81c   : > { %v4999_v39 = vpop.eup %4998  ;;  %v3821_v40 = vsub.f32 %v6795_v28, %v3766_v48 }
 0x81d   : > { %v5001_v58 = vpop.eup %5000  ;;  %3852 = vst [vmem:[#allocation13 + $0x38] sm:$0xff] %v3820_v43  ;;  %v3768_v47 = vmul.f32 0.6931472, %v4999_v39  ;;  %v3716_v31 = vpop.xlane.xlu1 %3715 }
 0x81e   : > { %v3718_v9 = vpop.xlane.xlu0 %3717  ;;  %3853 = vst [vmem:[#allocation13 + $0x40] sm:$0xff] %v3821_v40  ;;  %v3770_v25 = vmul.f32 0.6931472, %v5001_v58  ;;  %5010 = vlog2.f32 %v3716_v31 }
 0x81f   : > { %v3822_v61 = vsub.f32 %v6798_v26, %v3768_v47  ;;  %5012 = vlog2.f32 %v3718_v9 }
 0x820   : > { %v5003_v36 = vpop.eup %5002  ;;  %v3823_v46 = vsub.f32 %v6803_v38, %v3770_v25 }
 0x821   : > { %v5005_v55 = vpop.eup %5004  ;;  %3854 = vst [vmem:[#allocation13 + $0x48] sm:$0xff] %v3822_v61  ;;  %v3772_v8 = vmul.f32 0.6931472, %v5003_v36  ;;  %v3720_v34 = vpop.xlane.xlu1 %3719 }
 0x822   : > { %v3722_v37 = vpop.xlane.xlu0 %3721  ;;  %3855 = vst [vmem:[#allocation13 + $0x50] sm:$0xff] %v3823_v46  ;;  %v3774_v28 = vmul.f32 0.6931472, %v5005_v55  ;;  %5014 = vlog2.f32 %v3720_v34 }
 0x823   : > { %v3824_v33 = vsub.f32 %v6806_v29, %v3772_v8  ;;  %5016 = vlog2.f32 %v3722_v37 }
 0x824   : > { %v5007_v57 = vpop.eup %5006  ;;  %v3825_v52 = vsub.f32 %v6811_v19, %v3774_v28 }
 0x825   : > { %v5009_v0 = vpop.eup %5008  ;;  %3856 = vst [vmem:[#allocation13 + $0x58] sm:$0xff] %v3824_v33  ;;  %v3776_v26 = vmul.f32 0.6931472, %v5007_v57  ;;  %v3724_v62 = vpop.xlane.xlu1 %3723 }
 0x826   : > { %v3726_v32 = vpop.xlane.xlu0 %3725  ;;  %3857 = vst [vmem:[#allocation13 + $0x60] sm:$0xff] %v3825_v52  ;;  %v3778_v38 = vmul.f32 0.6931472, %v5009_v0  ;;  %5018 = vlog2.f32 %v3724_v62 }
 0x827   : > { %v3826_v18 = vsub.f32 %v6814_v15, %v3776_v26  ;;  %5020 = vlog2.f32 %v3726_v32 }
 0x828   : > { %v5011_v35 = vpop.eup %5010  ;;  %v3827_v41 = vsub.f32 %v6819_v2, %v3778_v38 }
 0x829   : > { %v5013_v56 = vpop.eup %5012  ;;  %3858 = vst [vmem:[#allocation13 + $0x68] sm:$0xff] %v3826_v18  ;;  %v3780_v29 = vmul.f32 0.6931472, %v5011_v35  ;;  %v3728_v16 = vpop.xlane.xlu1 %3727 }
 0x82a   : > { %v3730_v20 = vpop.xlane.xlu0 %3729  ;;  %3859 = vst [vmem:[#allocation13 + $0x70] sm:$0xff] %v3827_v41  ;;  %v3782_v19 = vmul.f32 0.6931472, %v5013_v56  ;;  %5022 = vlog2.f32 %v3728_v16 }
 0x82b   : > { %v3828_v14 = vsub.f32 %v6822_v24, %v3780_v29  ;;  %5024 = vlog2.f32 %v3730_v20 }
 0x82c   : > { %v5015_v59 = vpop.eup %5014  ;;  %v3829_v50 = vsub.f32 %v6827_v6, %v3782_v19 }
 0x82d   : > { %v5017_v30 = vpop.eup %5016  ;;  %3860 = vst [vmem:[#allocation13 + $0x78] sm:$0xff] %v3828_v14  ;;  %v3784_v15 = vmul.f32 0.6931472, %v5015_v59  ;;  %v3732_v21 = vpop.xlane.xlu1 %3731 }
 0x82e   : > { %v3734_v13 = vpop.xlane.xlu0 %3733  ;;  %3861 = vst [vmem:[#allocation13 + $0x80] sm:$0xff] %v3829_v50  ;;  %v3786_v2 = vmul.f32 0.6931472, %v5017_v30  ;;  %5026 = vlog2.f32 %v3732_v21 }
 0x82f   : > { %v3830_v12 = vsub.f32 %v6830_v63, %v3784_v15  ;;  %5028 = vlog2.f32 %v3734_v13 }
 0x830   : > { %v5019_v49 = vpop.eup %5018  ;;  %v3831_v51 = vsub.f32 %v6835_v4, %v3786_v2 }
 0x831   : > { %v5021_v10 = vpop.eup %5020  ;;  %3862 = vst [vmem:[#allocation13 + $0x88] sm:$0xff] %v3830_v12  ;;  %v3788_v24 = vmul.f32 0.6931472, %v5019_v49  ;;  %v3736_v60 = vpop.xlane.xlu1 %3735 }
 0x832   : > { %v3738_v44 = vpop.xlane.xlu0 %3737  ;;  %3863 = vst [vmem:[#allocation13 + $0x90] sm:$0xff] %v3831_v51  ;;  %v3790_v6 = vmul.f32 0.6931472, %v5021_v10  ;;  %5030 = vlog2.f32 %v3736_v60 }
 0x833   : > { %v3832_v48 = vsub.f32 %v6838_v45, %v3788_v24  ;;  %5032 = vlog2.f32 %v3738_v44 }
 0x834   : > { %v5023_v43 = vpop.eup %5022  ;;  %v3833_v39 = vsub.f32 %v6843_v42, %v3790_v6 }
 0x835   : > { %v5025_v40 = vpop.eup %5024  ;;  %3864 = vst [vmem:[#allocation13 + $0x98] sm:$0xff] %v3832_v48  ;;  %v3792_v63 = vmul.f32 0.6931472, %v5023_v43  ;;  %v3740_v58 = vpop.xlane.xlu1 %3739 }
 0x836   : > { %v3742_v47 = vpop.xlane.xlu0 %3741  ;;  %3865 = vst [vmem:[#allocation13 + $0xa0] sm:$0xff] %v3833_v39  ;;  %v3794_v4 = vmul.f32 0.6931472, %v5025_v40  ;;  %5034 = vlog2.f32 %v3740_v58 }
 0x837   : > { %v3834_v31 = vsub.f32 %v6846_v1, %v3792_v63  ;;  %5036 = vlog2.f32 %v3742_v47 }
 0x838   : > { %v5027_v9 = vpop.eup %5026  ;;  %v3835_v25 = vsub.f32 %v6851_v5, %v3794_v4 }
 0x839   : > { %v5029_v61 = vpop.eup %5028  ;;  %3866 = vst [vmem:[#allocation13 + $0xa8] sm:$0xff] %v3834_v31  ;;  %v3796_v45 = vmul.f32 0.6931472, %v5027_v9  ;;  %v3744_v36 = vpop.xlane.xlu1 %3743 }
 0x83a   : > { %v3746_v46 = vpop.xlane.xlu0 %3745  ;;  %3867 = vst [vmem:[#allocation13 + $0xb0] sm:$0xff] %v3835_v25  ;;  %v3798_v42 = vmul.f32 0.6931472, %v5029_v61  ;;  %5038 = vlog2.f32 %v3744_v36 }
 0x83b   : > { %v3836_v55 = vsub.f32 %v6854_v23, %v3796_v45  ;;  %5040 = vlog2.f32 %v3746_v46 }
 0x83c   : > { %v5031_v8 = vpop.eup %5030  ;;  %v3837_v34 = vsub.f32 %v6859_v53, %v3798_v42 }
 0x83d   : > { %v5033_v37 = vpop.eup %5032  ;;  %3868 = vst [vmem:[#allocation13 + $0xb8] sm:$0xff] %v3836_v55  ;;  %v3800_v1 = vmul.f32 0.6931472, %v5031_v8  ;;  %v3748_v28 = vpop.xlane.xlu1 %3747 }
 0x83e   : > { %3869 = vst [vmem:[#allocation13 + $0xc0] sm:$0xff] %v3837_v34  ;;  %v3802_v5 = vmul.f32 0.6931472, %v5033_v37  ;;  %5042 = vlog2.f32 %v3748_v28 }
 0x83f   : > { %v3838_v33 = vsub.f32 %v6862_v54, %v3800_v1 }
 0x840   : > { %v5035_v57 = vpop.eup %5034  ;;  %v3839_v52 = vsub.f32 %v6867_v17, %v3802_v5 }
 0x841   : > { %v5037_v0 = vpop.eup %5036  ;;  %3870 = vst [vmem:[#allocation13 + $0xc8] sm:$0xff] %v3838_v33  ;;  %v3804_v26 = vmul.f32 0.6931472, %v5035_v57 }
 0x842   : > { %3871 = vst [vmem:[#allocation13 + $0xd0] sm:$0xff] %v3839_v52  ;;  %v3806_v23 = vmul.f32 0.6931472, %v5037_v0 }
 0x843   : > { %v3840_v62 = vsub.f32 %v6870_v11, %v3804_v26 }
 0x844   : > { %v5039_v53 = vpop.eup %5038  ;;  %v3841_v32 = vsub.f32 %v6875_v3, %v3806_v23 }
 0x845   : > { %v5041_v38 = vpop.eup %5040  ;;  %3872 = vst [vmem:[#allocation13 + $0xd8] sm:$0xff] %v3840_v62  ;;  %v3808_v18 = vmul.f32 0.6931472, %v5039_v53 }
 0x846   : > { %3873 = vst [vmem:[#allocation13 + $0xe0] sm:$0xff] %v3841_v32  ;;  %v3810_v35 = vmul.f32 0.6931472, %v5041_v38 }
 0x847   : > { %v3842_v54 = vsub.f32 %v6878_v22, %v3808_v18 }
 0x848   : > { %v5043_v41 = vpop.eup %5042  ;;  %v3843_v17 = vsub.f32 %v6883_v27, %v3810_v35 }
 0x849   : > { %3874 = vst [vmem:[#allocation13 + $0xe8] sm:$0xff] %v3842_v54  ;;  %v3812_v56 = vmul.f32 0.6931472, %v5043_v41 }
 0x84a   : > { %3875 = vst [vmem:[#allocation13 + $0xf0] sm:$0xff] %v3843_v17 }
 0x84b   : > { %v3844_v29 = vsub.f32 %v6886_v7, %v3812_v56 }
 0x84d   : > { %3876 = vst [vmem:[#allocation13 + $0xf8] sm:$0xff] %v3844_v29 }
 0x84e PF: > { %p4629_p6 = scmp.eq.s32.totalorder %s5378_s16, 3  ;;  %s5260_s30 = smov [#allocation13]  }
 0x84f   : > { %s3883_s21 = sshll.u32 %s5260_s30, 4  ;;  %s3884_s21 = int_to_ptr.vmem [resolvable:$true] %s3883_s21 }
 0x850   : > { %s5158_s20 = scalar_lea.vmem %s3884_s21, 4096  ;;  %p5165_p4 = scmp.lt.s32.totalorder %s3884_s21, %s3884_s21 }
 0x851   : > { %p5159_p12 = scmp.ne.s32.totalorder %s3884_s21, %s5158_s20  ;;  %p5166_p3 = scmp.lt.s32.totalorder %s5158_s20, %s5158_s20 }
 0x853   : > { %p5160_p2 = pnand %p5159_p12, %p4629_p6  ;;  %p5167_p9 = por %p5166_p3, %p5165_p4 }
 0x855   : > { %p5161_p1 = pneg %p5160_p2 }
 0x857   : > { %p5168_p10 = pnand %p5167_p9, %p5161_p1 }
 0x859   : > { %5171 = shalt.err (!%p5168_p10)
}
 0x85a   : > { %s5172_s15 = scalar_lea.hbm %s6971_s8, 4096 }
 0x85b   : > { %p5173_p13 = scmp.ne.s32.totalorder %s6971_s8, %s5172_s15  ;;  %p5178_p8 = scmp.lt.u32.totalorder %s5172_s15, %s6971_s8 }
 0x85d   : > { %p5174_p5 = pnand %p5173_p13, %p4629_p6 }
 0x85f   : > { %p5175_p7 = pneg %p5174_p5 }
 0x861   : > { %p5180_p11 = pnand %p5178_p8, %p5175_p7 }
 0x863   : > { %5183 = shalt.err (!%p5180_p11)
}
 0x864   : > { %s5261_s12 = smov 128   ;;  %s5262_s26 = smov 8  }
 0x865   : > { %4605 = dma.vmem_to_hbm [thread:$0]  (%p4629_p6), %s3884_s21, 4096, %s6971_s8, [#allocation7], %s5261_s12, %s5261_s12, %s5262_s26  }
 0x866   : > { %5225 = dma.done.wait (%p4629_p6), [#allocation7], 4096  }
 0x867   : > { %5227 = vsyncadd (%p4629_p6), [#allocation7], 4294963200 }
 0x868 PF: > { %s7013_s22 = sld [smem:[#allocation19_spill]]  ;;  %s7014_s27 = smov %s5234_s28 }
 0x869   : > { %s7015_s28 = smov %s5238_s29  ;;  %s7016_s29 = smov %s5517_s19 }
 0x86a   : > { %s7017_s30 = smov %s5246_s9  ;;  %s7018_s9 = smov %s7020_s14 }
 0x86e   : > { %s26_s10 = sadd.s32 1, %s7013_s22  }
 0x86f   : > { %p23_p0 = scmp.ge.s32.totalorder %s26_s10, 6  }
 0x871   :  { %25 = sbr.rel (!%p23_p0) target bundleno = 10 (0xa), region = 152 }
 0x878   :  { %3899 = vsyncpa [#allocation6], 1 }
 0x879   :  { %3901 = vsyncpa [#allocation6 + $0x1], 1 }
 0x87a   :  { %3902 = vsyncpa [#allocation9], 1 }
 0x87b   :  { %3904 = vsyncpa [#allocation9 + $0x1], 1 }
 0x87c   :  { %3905 = vsyncpa [#allocation12], 1 }
 0x87d   :  { %3906 = vsyncpa [#allocation7], 1 }
 0x87e   :  { %3908 = vsyncpa [#allocation7 + $0x1], 1 }

</bundles_post_ra>
